<compile_context>
chip_gen: v5e
topology: v5e:2x2
jax: 0.10.0
libtpu: 0.0.40
codegen_flags: <defaults>
</compile_context>

<pallas_src>
import functools

import jax
import jax.numpy as jnp
import numpy as np
from jax.experimental import pallas as pl
from jax.experimental.pallas import tpu as pltpu


def _round_up(n, m):
    return ((n + m - 1) // m) * m


def _sigmoid_via_tanh(x):
    # sigmoid(x) == 0.5 * tanh(0.5 * x) + 0.5 : one EUP op instead of exp + recip.
    return 0.5 * jnp.tanh(0.5 * x) + 0.5


# -----------------------------------------------------------------------------
# Fused kernel: L LSTM layers + FC + sigmoid, single invocation (no grid).
# Gate column order inside the kernel is [i, f, o, g] (sigmoid gates contiguous).
# -----------------------------------------------------------------------------
def _fused_lstm_fc_kernel(*refs, T, B, Hp, L):
    """Ref layout (inputs, outputs, scratch):

      inputs : x (T*B, D) bf16, h0 (L, B, Hp) f32, c0 (L, B, Hp) f32,
               for each layer l: w_ih_t (d_in, 4Hp) bf16, w_hh_t (Hp, 4Hp) bf16,
                                 b (1, 4Hp) f32,
               fc_w_t (Hp, O) bf16, fc_b (1, O) f32
      outputs: out (B, O) f32, hn (L, B, Hp) f32, cn (L, B, Hp) f32
      scratch: y_scr (T*B, Hp) bf16, zx_scr (T*B, 4Hp) f32
    """
    x_ref, h0_ref, c0_ref = refs[0], refs[1], refs[2]
    layer_refs = refs[3:3 + 3 * L]
    fc_w_ref, fc_b_ref = refs[3 + 3 * L], refs[4 + 3 * L]
    out_ref, hn_ref, cn_ref = refs[5 + 3 * L], refs[6 + 3 * L], refs[7 + 3 * L]
    y_scr, zx_scr = refs[8 + 3 * L], refs[9 + 3 * L]

    unroll = T if T <= 16 else 8            # partial unroll for long sequences

    h_last = None
    for l in range(L):                      # static unroll over layers
        w_ih_ref = layer_refs[3 * l + 0]    # (d_in, 4Hp) bf16
        w_hh_ref = layer_refs[3 * l + 1]    # (Hp, 4Hp)  bf16
        b_ref = layer_refs[3 * l + 2]       # (1, 4Hp)   f32

        # ---- hoisted input projection: one big MXU matmul over all T*B rows ----
        seq_in = x_ref[...] if l == 0 else y_scr[...]     # already bf16
        zx_scr[...] = (
            jnp.dot(seq_in, w_ih_ref[...], preferred_element_type=jnp.float32)
            + b_ref[...])                                 # bias folded out of the loop

        h0_l = h0_ref[l]                                  # (B, Hp) f32
        c0_l = c0_ref[l]

        def step(t, carry, _w_hh_ref=w_hh_ref):
            h_prev_bf16, _h_prev_f32, c_prev = carry      # bf16 / f32 / f32 (B, Hp)
            row = pl.multiple_of(t * B, B)                # B is a multiple of 8
            # Only the recurrent matmul sits on the serial critical path.
            z = zx_scr[pl.ds(row, B), :] + jnp.dot(
                h_prev_bf16, _w_hh_ref[...],
                preferred_element_type=jnp.float32)       # (B, 4Hp) f32
            # Gates [i, f, o | g]: one tanh-based sigmoid over the 3Hp slab.
            s = _sigmoid_via_tanh(z[:, :3 * Hp])
            i_g = s[:, 0 * Hp:1 * Hp]
            f_g = s[:, 1 * Hp:2 * Hp]
            o_g = s[:, 2 * Hp:3 * Hp]
            g_g = jnp.tanh(z[:, 3 * Hp:4 * Hp])
            c_new = f_g * c_prev + i_g * g_g              # f32 cell state
            h_new = o_g * jnp.tanh(c_new)                 # f32 hidden
            h_new_bf16 = h_new.astype(jnp.bfloat16)
            y_scr[pl.ds(row, B), :] = h_new_bf16          # stays in VMEM (bf16)
            return h_new_bf16, h_new, c_new

        init = (h0_l.astype(jnp.bfloat16), h0_l, c0_l)
        _, h_fin, c_fin = jax.lax.fori_loop(0, T, step, init, unroll=unroll)
        hn_ref[l] = h_fin
        cn_ref[l] = c_fin
        h_last = h_fin

    # ---- fused FC + sigmoid epilogue on out[:, -1, :] == h_last ----
    logits = (jnp.dot(h_last.astype(jnp.bfloat16), fc_w_ref[...],
                      preferred_element_type=jnp.float32) + fc_b_ref[...])
    out_ref[...] = _sigmoid_via_tanh(logits)


# -----------------------------------------------------------------------------
# Parameter packing: transpose, reorder gates [i,f,g,o] -> [i,f,o,g], zero-pad
# gate/hidden dims to Hp, cast matmul weights to bf16 (zero padding keeps padded
# hidden channels exactly zero through the recurrence).
# -----------------------------------------------------------------------------
def _pack_params(params, Hp):
    H = params["hidden_dim"]
    perm = np.array([0, 1, 3, 2])   # PyTorch [i, f, g, o] -> kernel [i, f, o, g]

    def reorder_pad_gate_cols(w_t):       # (d, 4H) -> (d, 4Hp), per-gate pad
        d = w_t.shape[0]
        w4 = w_t.reshape(d, 4, H)[:, perm, :]
        w4 = jnp.pad(w4, ((0, 0), (0, 0), (0, Hp - H)))
        return w4.reshape(d, 4 * Hp)

    packed_layers = []
    for l, p in enumerate(params["layers"]):
        w_ih_t = reorder_pad_gate_cols(p["w_ih"].T)                    # (d_in, 4Hp)
        if l > 0:                                                      # input is padded y
            w_ih_t = jnp.pad(w_ih_t, ((0, Hp - H), (0, 0)))            # (Hp, 4Hp)
        w_hh_t = jnp.pad(reorder_pad_gate_cols(p["w_hh"].T), ((0, Hp - H), (0, 0)))
        b = (p["b_ih"] + p["b_hh"]).reshape(4, H)[perm]
        b = jnp.pad(b, ((0, 0), (0, Hp - H))).reshape(1, 4 * Hp)
        packed_layers.append({
            "w_ih_t": w_ih_t.astype(jnp.bfloat16),
            "w_hh_t": w_hh_t.astype(jnp.bfloat16),
            "b": b.astype(jnp.float32),
        })
    fc_w_t = jnp.pad(params["fc_w"].T, ((0, Hp - H), (0, 0))).astype(jnp.bfloat16)
    fc_b = params["fc_b"].reshape(1, -1).astype(jnp.float32)
    return {"layers": packed_layers, "fc_w_t": fc_w_t, "fc_b": fc_b}


# -----------------------------------------------------------------------------
# Forward wrapper (mirrors LSTMModel.forward, batch_first=True)
# -----------------------------------------------------------------------------
def lstm_model_forward(x, params, h0=None, c0=None):
    x = x.astype(jnp.float32)
    B, T, D = x.shape
    H = params["hidden_dim"]
    O = params["output_dim"]
    L = len(params["layers"])
    Hp = _round_up(H, 128)          # lane-aligned hidden
    Bp = _round_up(B, 8)            # sublane-aligned batch

    if h0 is None or c0 is None:
        h0 = jnp.zeros((L, B, H), jnp.float32)
        c0 = jnp.zeros((L, B, H), jnp.float32)

    # Time-major, batch padded, flattened to (T*Bp, D) so the hoisted input
    # projection is a single plain 2-D matmul inside the kernel.  bf16 operand.
    x_t = jnp.transpose(x, (1, 0, 2))                                  # (T, B, D)
    x_t = jnp.pad(x_t, ((0, 0), (0, Bp - B), (0, 0))).reshape(T * Bp, D)
    x_t = x_t.astype(jnp.bfloat16)
    h0p = jnp.pad(h0.astype(jnp.float32), ((0, 0), (0, Bp - B), (0, Hp - H)))
    c0p = jnp.pad(c0.astype(jnp.float32), ((0, 0), (0, Bp - B), (0, Hp - H)))

    packed = _pack_params(params, Hp)
    flat_w = []
    for l in range(L):
        pw = packed["layers"][l]
        flat_w += [pw["w_ih_t"], pw["w_hh_t"], pw["b"]]

    inputs = (x_t, h0p, c0p, *flat_w, packed["fc_w_t"], packed["fc_b"])
    n_in = len(inputs)

    # ---- VMEM budget (generation-aware ceiling) and scheduler cost hint ----
    def _nbytes(a):
        return int(np.prod(a.shape)) * jnp.dtype(a.dtype).itemsize

    in_bytes = sum(_nbytes(a) for a in inputs)
    out_bytes = (Bp * O + 2 * L * Bp * Hp) * 4
    scratch_bytes = T * Bp * Hp * 2 + T * Bp * 4 * Hp * 4   # y (bf16) + zx (f32)
    footprint = in_bytes + out_bytes + scratch_bytes
    # TODO(synk): on v5e/v6e (128 MiB physical VMEM) this cap can go to ~100 MiB;
    #             56 MiB keeps headroom under v7x's 64 MiB physical VMEM.
    vmem_limit = int(min(max(2 * footprint, 32 << 20), 56 << 20))

    flops = 0
    for l in range(L):
        d_in = D if l == 0 else Hp
        flops += 2 * T * Bp * d_in * 4 * Hp      # hoisted input projection
        flops += 2 * T * Bp * Hp * 4 * Hp        # recurrent matmuls
    flops += 2 * Bp * Hp * O                     # FC epilogue
    transcendentals = L * T * Bp * 5 * Hp + Bp * O
    cost = pl.CostEstimate(flops=flops, transcendentals=transcendentals,
                           bytes_accessed=in_bytes + out_bytes)

    vmem = pl.BlockSpec(memory_space=pltpu.MemorySpace.VMEM)
    kernel = functools.partial(_fused_lstm_fc_kernel, T=T, B=Bp, Hp=Hp, L=L)

    out_p, hn_p, cn_p = pl.pallas_call(
        kernel,
        out_shape=(
            jax.ShapeDtypeStruct((Bp, O), jnp.float32),
            jax.ShapeDtypeStruct((L, Bp, Hp), jnp.float32),
            jax.ShapeDtypeStruct((L, Bp, Hp), jnp.float32),
        ),
        in_specs=[vmem] * n_in,
        out_specs=(vmem, vmem, vmem),
        scratch_shapes=[
            pltpu.VMEM((T * Bp, Hp), jnp.bfloat16),      # inter-layer y (VMEM only)
            pltpu.VMEM((T * Bp, 4 * Hp), jnp.float32),   # hoisted input projection
        ],
        compiler_params=pltpu.CompilerParams(vmem_limit_bytes=vmem_limit),
        cost_estimate=cost,
    )(*inputs)

    # Strip batch / hidden padding.
    return out_p[:B], hn_p[:, :B, :H], cn_p[:, :B, :H]


# -----------------------------------------------------------------------------
# Pure-JAX reference (mirrors nn.LSTM eval semantics) for a sanity check.
# -----------------------------------------------------------------------------
def lstm_model_reference(x, params, h0=None, c0=None):
    x = x.astype(jnp.float32)
    B, T, _ = x.shape
    H = params["hidden_dim"]
    L = len(params["layers"])
    if h0 is None or c0 is None:
        h0 = jnp.zeros((L, B, H), jnp.float32)
        c0 = jnp.zeros((L, B, H), jnp.float32)
    layer_in = x
    hns, cns = [], []
    for l, p in enumerate(params["layers"]):
        b = p["b_ih"] + p["b_hh"]
        h, c = h0[l], c0[l]
        ys = []
        for t in range(T):
            z = layer_in[:, t, :] @ p["w_ih"].T + h @ p["w_hh"].T + b
            i = jax.nn.sigmoid(z[:, 0 * H:1 * H])
            f = jax.nn.sigmoid(z[:, 1 * H:2 * H])
            g = jnp.tanh(z[:, 2 * H:3 * H])
            o = jax.nn.sigmoid(z[:, 3 * H:4 * H])
            c = f * c + i * g
            h = o * jnp.tanh(c)
            ys.append(h)
        layer_in = jnp.stack(ys, axis=1)
        hns.append(h)
        cns.append(c)
    out = jax.nn.sigmoid(layer_in[:, -1, :] @ params["fc_w"].T + params["fc_b"])
    return out, jnp.stack(hns, 0), jnp.stack(cns, 0)


# -----------------------------------------------------------------------------
# Deterministic parameter init (shapes follow nn.LSTM / nn.Linear)
# -----------------------------------------------------------------------------
def init_params(key, input_dim, hidden_dim, layer_dim, output_dim):
    k = float(hidden_dim) ** -0.5
    layers = []
    for l in range(layer_dim):
        d_in = input_dim if l == 0 else hidden_dim
        key, k1, k2, k3, k4 = jax.random.split(key, 5)
        layers.append({
            "w_ih": jax.random.uniform(k1, (4 * hidden_dim, d_in), jnp.float32, -k, k),
            "w_hh": jax.random.uniform(k2, (4 * hidden_dim, hidden_dim), jnp.float32, -k, k),
            "b_ih": jax.random.uniform(k3, (4 * hidden_dim,), jnp.float32, -k, k),
            "b_hh": jax.random.uniform(k4, (4 * hidden_dim,), jnp.float32, -k, k),
        })
    key, k5, k6 = jax.random.split(key, 3)
    fc_w = jax.random.uniform(k5, (output_dim, hidden_dim), jnp.float32, -k, k)
    fc_b = jax.random.uniform(k6, (output_dim,), jnp.float32, -k, k)
    return {"layers": layers, "fc_w": fc_w, "fc_b": fc_b,
            "hidden_dim": hidden_dim, "output_dim": output_dim}


if __name__ == "__main__":
    B, T = 2, 8
    input_dim, hidden_dim, layer_dim, output_dim = 16, 32, 2, 4

    key = jax.random.PRNGKey(0)
    key, xkey = jax.random.split(key)
    x = jax.random.normal(xkey, (B, T, input_dim), jnp.float32)
    params = init_params(key, input_dim, hidden_dim, layer_dim, output_dim)

    out, hn, cn = lstm_model_forward(x, params)
    jax.block_until_ready((out, hn, cn))

    assert out.shape == (B, output_dim)
    assert hn.shape == (layer_dim, B, hidden_dim)
    assert cn.shape == (layer_dim, B, hidden_dim)

    # Sanity check against the pure-JAX reference (loose tol: bf16 matmul operands
    # and bf16 inter-layer activations).
    out_r, hn_r, cn_r = lstm_model_reference(x, params)
    np.testing.assert_allclose(np.asarray(out), np.asarray(out_r), atol=5e-2, rtol=5e-2)
    np.testing.assert_allclose(np.asarray(hn), np.asarray(hn_r), atol=5e-2, rtol=5e-2)
    np.testing.assert_allclose(np.asarray(cn), np.asarray(cn_r), atol=5e-2, rtol=5e-2)

    print("KERNEL_OK")
</pallas_src>

<mosaic_0001>
module attributes {stable_mosaic.version = 11 : i64} {
  func.func @_fused_lstm_fc_kernel(%arg0: memref<64x16xbf16, #tpu.memory_space<vmem>>, %arg1: memref<2x8x128xf32, #tpu.memory_space<vmem>>, %arg2: memref<2x8x128xf32, #tpu.memory_space<vmem>>, %arg3: memref<16x512xbf16, #tpu.memory_space<vmem>>, %arg4: memref<128x512xbf16, #tpu.memory_space<vmem>>, %arg5: memref<1x512xf32, #tpu.memory_space<vmem>>, %arg6: memref<128x512xbf16, #tpu.memory_space<vmem>>, %arg7: memref<128x512xbf16, #tpu.memory_space<vmem>>, %arg8: memref<1x512xf32, #tpu.memory_space<vmem>>, %arg9: memref<128x4xbf16, #tpu.memory_space<vmem>>, %arg10: memref<1x4xf32, #tpu.memory_space<vmem>>, %arg11: memref<8x4xf32, #tpu.memory_space<vmem>>, %arg12: memref<2x8x128xf32, #tpu.memory_space<vmem>>, %arg13: memref<2x8x128xf32, #tpu.memory_space<vmem>>, %arg14: memref<64x128xbf16, #tpu.memory_space<vmem>>, %arg15: memref<64x512xf32, #tpu.memory_space<vmem>>) attributes {dimension_semantics = [], scalar_prefetch = 0 : i64, scratch_operands = 2 : i64, tpu.core_type = #tpu.core_type<tc>} {
    %c0 = arith.constant 0 : index
    %c0_0 = arith.constant 0 : index
    %0 = vector.load %arg0[%c0, %c0_0] : memref<64x16xbf16, #tpu.memory_space<vmem>>, vector<64x16xbf16>
    %c0_1 = arith.constant 0 : index
    %c0_2 = arith.constant 0 : index
    %1 = vector.load %arg3[%c0_1, %c0_2] : memref<16x512xbf16, #tpu.memory_space<vmem>>, vector<16x512xbf16>
    %cst = arith.constant dense<0.000000e+00> : vector<64x512xf32>
    %2 = tpu.matmul %0, %1, %cst {dimension_numbers = #tpu.dot_dimension_numbers<[1], [0], [0], [1], [0, 0, 1, 1], [], []>} : vector<64x16xbf16>, vector<16x512xbf16>, vector<64x512xf32> -> vector<64x512xf32>
    %c0_3 = arith.constant 0 : index
    %c0_4 = arith.constant 0 : index
    %3 = vector.load %arg5[%c0_3, %c0_4] : memref<1x512xf32, #tpu.memory_space<vmem>>, vector<1x512xf32>
    %4 = vector.broadcast %3 : vector<1x512xf32> to vector<64x512xf32>
    %5 = arith.addf %2, %4 : vector<64x512xf32>
    %c0_5 = arith.constant 0 : index
    %c0_6 = arith.constant 0 : index
    %6 = vector.load %arg15[%c0_5, %c0_6] : memref<64x512xf32, #tpu.memory_space<vmem>>, vector<64x512xf32>
    tpu.vector_store %arg15[%c0_5, %c0_6], %5 {strides = array<i32>} : memref<64x512xf32, #tpu.memory_space<vmem>>, vector<64x512xf32>,
    %c0_7 = arith.constant 0 : index
    %c0_8 = arith.constant 0 : index
    %c0_9 = arith.constant 0 : index
    %7 = vector.load %arg1[%c0_7, %c0_8, %c0_9] : memref<2x8x128xf32, #tpu.memory_space<vmem>>, vector<1x8x128xf32>
    %8 = vector.shape_cast %7 : vector<1x8x128xf32> to vector<8x128xf32>
    %c0_10 = arith.constant 0 : index
    %c0_11 = arith.constant 0 : index
    %c0_12 = arith.constant 0 : index
    %9 = vector.load %arg2[%c0_10, %c0_11, %c0_12] : memref<2x8x128xf32, #tpu.memory_space<vmem>>, vector<1x8x128xf32>
    %10 = vector.shape_cast %9 : vector<1x8x128xf32> to vector<8x128xf32>
    %11 = arith.truncf %8 : vector<8x128xf32> to vector<8x128xbf16>
    %c0_i32 = arith.constant 0 : i32
    %c8_i32 = arith.constant 8 : i32
    %12 = arith.muli %c0_i32, %c8_i32 : i32
    %13 = tpu.assume_multiple %12, 8 : i32
    %14 = arith.index_cast %13 : i32 to index
    %c0_13 = arith.constant 0 : index
    %15 = vector.load %arg15[%14, %c0_13] : memref<64x512xf32, #tpu.memory_space<vmem>>, vector<8x512xf32>
    %c0_14 = arith.constant 0 : index
    %c0_15 = arith.constant 0 : index
    %16 = vector.load %arg4[%c0_14, %c0_15] : memref<128x512xbf16, #tpu.memory_space<vmem>>, vector<128x512xbf16>
    %cst_16 = arith.constant dense<0.000000e+00> : vector<8x512xf32>
    %17 = tpu.matmul %11, %16, %cst_16 {dimension_numbers = #tpu.dot_dimension_numbers<[1], [0], [0], [1], [0, 0, 1, 1], [], []>} : vector<8x128xbf16>, vector<128x512xbf16>, vector<8x512xf32> -> vector<8x512xf32>
    %18 = arith.addf %15, %17 : vector<8x512xf32>
    %19 = vector.extract_strided_slice %18 {offsets = [0, 0], sizes = [8, 384], strides = [1, 1]} : vector<8x512xf32> to vector<8x384xf32>
    %cst_17 = arith.constant 5.000000e-01 : f32
    %20 = vector.broadcast %cst_17 : f32 to vector<8x384xf32>
    %21 = arith.mulf %20, %19 : vector<8x384xf32>
    %22 = math.tanh %21 : vector<8x384xf32>
    %cst_18 = arith.constant 5.000000e-01 : f32
    %23 = vector.broadcast %cst_18 : f32 to vector<8x384xf32>
    %24 = arith.mulf %23, %22 : vector<8x384xf32>
    %cst_19 = arith.constant 5.000000e-01 : f32
    %25 = vector.broadcast %cst_19 : f32 to vector<8x384xf32>
    %26 = arith.addf %24, %25 : vector<8x384xf32>
    %27 = vector.extract_strided_slice %26 {offsets = [0, 0], sizes = [8, 128], strides = [1, 1]} : vector<8x384xf32> to vector<8x128xf32>
    %28 = vector.extract_strided_slice %26 {offsets = [0, 128], sizes = [8, 128], strides = [1, 1]} : vector<8x384xf32> to vector<8x128xf32>
    %29 = vector.extract_strided_slice %26 {offsets = [0, 256], sizes = [8, 128], strides = [1, 1]} : vector<8x384xf32> to vector<8x128xf32>
    %30 = vector.extract_strided_slice %18 {offsets = [0, 384], sizes = [8, 128], strides = [1, 1]} : vector<8x512xf32> to vector<8x128xf32>
    %31 = math.tanh %30 : vector<8x128xf32>
    %32 = arith.mulf %28, %10 : vector<8x128xf32>
    %33 = arith.mulf %27, %31 : vector<8x128xf32>
    %34 = arith.addf %32, %33 : vector<8x128xf32>
    %35 = math.tanh %34 : vector<8x128xf32>
    %36 = arith.mulf %29, %35 : vector<8x128xf32>
    %37 = arith.truncf %36 : vector<8x128xf32> to vector<8x128xbf16>
    %38 = arith.index_cast %13 : i32 to index
    %c0_20 = arith.constant 0 : index
    %39 = vector.load %arg14[%38, %c0_20] : memref<64x128xbf16, #tpu.memory_space<vmem>>, vector<8x128xbf16>
    tpu.vector_store %arg14[%38, %c0_20], %37 {strides = array<i32>} : memref<64x128xbf16, #tpu.memory_space<vmem>>, vector<8x128xbf16>,
    %c1_i32 = arith.constant 1 : i32
    %c8_i32_21 = arith.constant 8 : i32
    %40 = arith.muli %c1_i32, %c8_i32_21 : i32
    %41 = tpu.assume_multiple %40, 8 : i32
    %42 = arith.index_cast %41 : i32 to index
    %c0_22 = arith.constant 0 : index
    %43 = vector.load %arg15[%42, %c0_22] : memref<64x512xf32, #tpu.memory_space<vmem>>, vector<8x512xf32>
    %c0_23 = arith.constant 0 : index
    %c0_24 = arith.constant 0 : index
    %44 = vector.load %arg4[%c0_23, %c0_24] : memref<128x512xbf16, #tpu.memory_space<vmem>>, vector<128x512xbf16>
    %cst_25 = arith.constant dense<0.000000e+00> : vector<8x512xf32>
    %45 = tpu.matmul %37, %44, %cst_25 {dimension_numbers = #tpu.dot_dimension_numbers<[1], [0], [0], [1], [0, 0, 1, 1], [], []>} : vector<8x128xbf16>, vector<128x512xbf16>, vector<8x512xf32> -> vector<8x512xf32>
    %46 = arith.addf %43, %45 : vector<8x512xf32>
    %47 = vector.extract_strided_slice %46 {offsets = [0, 0], sizes = [8, 384], strides = [1, 1]} : vector<8x512xf32> to vector<8x384xf32>
    %cst_26 = arith.constant 5.000000e-01 : f32
    %48 = vector.broadcast %cst_26 : f32 to vector<8x384xf32>
    %49 = arith.mulf %48, %47 : vector<8x384xf32>
    %50 = math.tanh %49 : vector<8x384xf32>
    %cst_27 = arith.constant 5.000000e-01 : f32
    %51 = vector.broadcast %cst_27 : f32 to vector<8x384xf32>
    %52 = arith.mulf %51, %50 : vector<8x384xf32>
    %cst_28 = arith.constant 5.000000e-01 : f32
    %53 = vector.broadcast %cst_28 : f32 to vector<8x384xf32>
    %54 = arith.addf %52, %53 : vector<8x384xf32>
    %55 = vector.extract_strided_slice %54 {offsets = [0, 0], sizes = [8, 128], strides = [1, 1]} : vector<8x384xf32> to vector<8x128xf32>
    %56 = vector.extract_strided_slice %54 {offsets = [0, 128], sizes = [8, 128], strides = [1, 1]} : vector<8x384xf32> to vector<8x128xf32>
    %57 = vector.extract_strided_slice %54 {offsets = [0, 256], sizes = [8, 128], strides = [1, 1]} : vector<8x384xf32> to vector<8x128xf32>
    %58 = vector.extract_strided_slice %46 {offsets = [0, 384], sizes = [8, 128], strides = [1, 1]} : vector<8x512xf32> to vector<8x128xf32>
    %59 = math.tanh %58 : vector<8x128xf32>
    %60 = arith.mulf %56, %34 : vector<8x128xf32>
    %61 = arith.mulf %55, %59 : vector<8x128xf32>
    %62 = arith.addf %60, %61 : vector<8x128xf32>
    %63 = math.tanh %62 : vector<8x128xf32>
    %64 = arith.mulf %57, %63 : vector<8x128xf32>
    %65 = arith.truncf %64 : vector<8x128xf32> to vector<8x128xbf16>
    %66 = arith.index_cast %41 : i32 to index
    %c0_29 = arith.constant 0 : index
    %67 = vector.load %arg14[%66, %c0_29] : memref<64x128xbf16, #tpu.memory_space<vmem>>, vector<8x128xbf16>
    tpu.vector_store %arg14[%66, %c0_29], %65 {strides = array<i32>} : memref<64x128xbf16, #tpu.memory_space<vmem>>, vector<8x128xbf16>,
    %c2_i32 = arith.constant 2 : i32
    %c8_i32_30 = arith.constant 8 : i32
    %68 = arith.muli %c2_i32, %c8_i32_30 : i32
    %69 = tpu.assume_multiple %68, 8 : i32
    %70 = arith.index_cast %69 : i32 to index
    %c0_31 = arith.constant 0 : index
    %71 = vector.load %arg15[%70, %c0_31] : memref<64x512xf32, #tpu.memory_space<vmem>>, vector<8x512xf32>
    %c0_32 = arith.constant 0 : index
    %c0_33 = arith.constant 0 : index
    %72 = vector.load %arg4[%c0_32, %c0_33] : memref<128x512xbf16, #tpu.memory_space<vmem>>, vector<128x512xbf16>
    %cst_34 = arith.constant dense<0.000000e+00> : vector<8x512xf32>
    %73 = tpu.matmul %65, %72, %cst_34 {dimension_numbers = #tpu.dot_dimension_numbers<[1], [0], [0], [1], [0, 0, 1, 1], [], []>} : vector<8x128xbf16>, vector<128x512xbf16>, vector<8x512xf32> -> vector<8x512xf32>
    %74 = arith.addf %71, %73 : vector<8x512xf32>
    %75 = vector.extract_strided_slice %74 {offsets = [0, 0], sizes = [8, 384], strides = [1, 1]} : vector<8x512xf32> to vector<8x384xf32>
    %cst_35 = arith.constant 5.000000e-01 : f32
    %76 = vector.broadcast %cst_35 : f32 to vector<8x384xf32>
    %77 = arith.mulf %76, %75 : vector<8x384xf32>
    %78 = math.tanh %77 : vector<8x384xf32>
    %cst_36 = arith.constant 5.000000e-01 : f32
    %79 = vector.broadcast %cst_36 : f32 to vector<8x384xf32>
    %80 = arith.mulf %79, %78 : vector<8x384xf32>
    %cst_37 = arith.constant 5.000000e-01 : f32
    %81 = vector.broadcast %cst_37 : f32 to vector<8x384xf32>
    %82 = arith.addf %80, %81 : vector<8x384xf32>
    %83 = vector.extract_strided_slice %82 {offsets = [0, 0], sizes = [8, 128], strides = [1, 1]} : vector<8x384xf32> to vector<8x128xf32>
    %84 = vector.extract_strided_slice %82 {offsets = [0, 128], sizes = [8, 128], strides = [1, 1]} : vector<8x384xf32> to vector<8x128xf32>
    %85 = vector.extract_strided_slice %82 {offsets = [0, 256], sizes = [8, 128], strides = [1, 1]} : vector<8x384xf32> to vector<8x128xf32>
    %86 = vector.extract_strided_slice %74 {offsets = [0, 384], sizes = [8, 128], strides = [1, 1]} : vector<8x512xf32> to vector<8x128xf32>
    %87 = math.tanh %86 : vector<8x128xf32>
    %88 = arith.mulf %84, %62 : vector<8x128xf32>
    %89 = arith.mulf %83, %87 : vector<8x128xf32>
    %90 = arith.addf %88, %89 : vector<8x128xf32>
    %91 = math.tanh %90 : vector<8x128xf32>
    %92 = arith.mulf %85, %91 : vector<8x128xf32>
    %93 = arith.truncf %92 : vector<8x128xf32> to vector<8x128xbf16>
    %94 = arith.index_cast %69 : i32 to index
    %c0_38 = arith.constant 0 : index
    %95 = vector.load %arg14[%94, %c0_38] : memref<64x128xbf16, #tpu.memory_space<vmem>>, vector<8x128xbf16>
    tpu.vector_store %arg14[%94, %c0_38], %93 {strides = array<i32>} : memref<64x128xbf16, #tpu.memory_space<vmem>>, vector<8x128xbf16>,
    %c3_i32 = arith.constant 3 : i32
    %c8_i32_39 = arith.constant 8 : i32
    %96 = arith.muli %c3_i32, %c8_i32_39 : i32
    %97 = tpu.assume_multiple %96, 8 : i32
    %98 = arith.index_cast %97 : i32 to index
    %c0_40 = arith.constant 0 : index
    %99 = vector.load %arg15[%98, %c0_40] : memref<64x512xf32, #tpu.memory_space<vmem>>, vector<8x512xf32>
    %c0_41 = arith.constant 0 : index
    %c0_42 = arith.constant 0 : index
    %100 = vector.load %arg4[%c0_41, %c0_42] : memref<128x512xbf16, #tpu.memory_space<vmem>>, vector<128x512xbf16>
    %cst_43 = arith.constant dense<0.000000e+00> : vector<8x512xf32>
    %101 = tpu.matmul %93, %100, %cst_43 {dimension_numbers = #tpu.dot_dimension_numbers<[1], [0], [0], [1], [0, 0, 1, 1], [], []>} : vector<8x128xbf16>, vector<128x512xbf16>, vector<8x512xf32> -> vector<8x512xf32>
    %102 = arith.addf %99, %101 : vector<8x512xf32>
    %103 = vector.extract_strided_slice %102 {offsets = [0, 0], sizes = [8, 384], strides = [1, 1]} : vector<8x512xf32> to vector<8x384xf32>
    %cst_44 = arith.constant 5.000000e-01 : f32
    %104 = vector.broadcast %cst_44 : f32 to vector<8x384xf32>
    %105 = arith.mulf %104, %103 : vector<8x384xf32>
    %106 = math.tanh %105 : vector<8x384xf32>
    %cst_45 = arith.constant 5.000000e-01 : f32
    %107 = vector.broadcast %cst_45 : f32 to vector<8x384xf32>
    %108 = arith.mulf %107, %106 : vector<8x384xf32>
    %cst_46 = arith.constant 5.000000e-01 : f32
    %109 = vector.broadcast %cst_46 : f32 to vector<8x384xf32>
    %110 = arith.addf %108, %109 : vector<8x384xf32>
    %111 = vector.extract_strided_slice %110 {offsets = [0, 0], sizes = [8, 128], strides = [1, 1]} : vector<8x384xf32> to vector<8x128xf32>
    %112 = vector.extract_strided_slice %110 {offsets = [0, 128], sizes = [8, 128], strides = [1, 1]} : vector<8x384xf32> to vector<8x128xf32>
    %113 = vector.extract_strided_slice %110 {offsets = [0, 256], sizes = [8, 128], strides = [1, 1]} : vector<8x384xf32> to vector<8x128xf32>
    %114 = vector.extract_strided_slice %102 {offsets = [0, 384], sizes = [8, 128], strides = [1, 1]} : vector<8x512xf32> to vector<8x128xf32>
    %115 = math.tanh %114 : vector<8x128xf32>
    %116 = arith.mulf %112, %90 : vector<8x128xf32>
    %117 = arith.mulf %111, %115 : vector<8x128xf32>
    %118 = arith.addf %116, %117 : vector<8x128xf32>
    %119 = math.tanh %118 : vector<8x128xf32>
    %120 = arith.mulf %113, %119 : vector<8x128xf32>
    %121 = arith.truncf %120 : vector<8x128xf32> to vector<8x128xbf16>
    %122 = arith.index_cast %97 : i32 to index
    %c0_47 = arith.constant 0 : index
    %123 = vector.load %arg14[%122, %c0_47] : memref<64x128xbf16, #tpu.memory_space<vmem>>, vector<8x128xbf16>
    tpu.vector_store %arg14[%122, %c0_47], %121 {strides = array<i32>} : memref<64x128xbf16, #tpu.memory_space<vmem>>, vector<8x128xbf16>,
    %c4_i32 = arith.constant 4 : i32
    %c8_i32_48 = arith.constant 8 : i32
    %124 = arith.muli %c4_i32, %c8_i32_48 : i32
    %125 = tpu.assume_multiple %124, 8 : i32
    %126 = arith.index_cast %125 : i32 to index
    %c0_49 = arith.constant 0 : index
    %127 = vector.load %arg15[%126, %c0_49] : memref<64x512xf32, #tpu.memory_space<vmem>>, vector<8x512xf32>
    %c0_50 = arith.constant 0 : index
    %c0_51 = arith.constant 0 : index
    %128 = vector.load %arg4[%c0_50, %c0_51] : memref<128x512xbf16, #tpu.memory_space<vmem>>, vector<128x512xbf16>
    %cst_52 = arith.constant dense<0.000000e+00> : vector<8x512xf32>
    %129 = tpu.matmul %121, %128, %cst_52 {dimension_numbers = #tpu.dot_dimension_numbers<[1], [0], [0], [1], [0, 0, 1, 1], [], []>} : vector<8x128xbf16>, vector<128x512xbf16>, vector<8x512xf32> -> vector<8x512xf32>
    %130 = arith.addf %127, %129 : vector<8x512xf32>
    %131 = vector.extract_strided_slice %130 {offsets = [0, 0], sizes = [8, 384], strides = [1, 1]} : vector<8x512xf32> to vector<8x384xf32>
    %cst_53 = arith.constant 5.000000e-01 : f32
    %132 = vector.broadcast %cst_53 : f32 to vector<8x384xf32>
    %133 = arith.mulf %132, %131 : vector<8x384xf32>
    %134 = math.tanh %133 : vector<8x384xf32>
    %cst_54 = arith.constant 5.000000e-01 : f32
    %135 = vector.broadcast %cst_54 : f32 to vector<8x384xf32>
    %136 = arith.mulf %135, %134 : vector<8x384xf32>
    %cst_55 = arith.constant 5.000000e-01 : f32
    %137 = vector.broadcast %cst_55 : f32 to vector<8x384xf32>
    %138 = arith.addf %136, %137 : vector<8x384xf32>
    %139 = vector.extract_strided_slice %138 {offsets = [0, 0], sizes = [8, 128], strides = [1, 1]} : vector<8x384xf32> to vector<8x128xf32>
    %140 = vector.extract_strided_slice %138 {offsets = [0, 128], sizes = [8, 128], strides = [1, 1]} : vector<8x384xf32> to vector<8x128xf32>
    %141 = vector.extract_strided_slice %138 {offsets = [0, 256], sizes = [8, 128], strides = [1, 1]} : vector<8x384xf32> to vector<8x128xf32>
    %142 = vector.extract_strided_slice %130 {offsets = [0, 384], sizes = [8, 128], strides = [1, 1]} : vector<8x512xf32> to vector<8x128xf32>
    %143 = math.tanh %142 : vector<8x128xf32>
    %144 = arith.mulf %140, %118 : vector<8x128xf32>
    %145 = arith.mulf %139, %143 : vector<8x128xf32>
    %146 = arith.addf %144, %145 : vector<8x128xf32>
    %147 = math.tanh %146 : vector<8x128xf32>
    %148 = arith.mulf %141, %147 : vector<8x128xf32>
    %149 = arith.truncf %148 : vector<8x128xf32> to vector<8x128xbf16>
    %150 = arith.index_cast %125 : i32 to index
    %c0_56 = arith.constant 0 : index
    %151 = vector.load %arg14[%150, %c0_56] : memref<64x128xbf16, #tpu.memory_space<vmem>>, vector<8x128xbf16>
    tpu.vector_store %arg14[%150, %c0_56], %149 {strides = array<i32>} : memref<64x128xbf16, #tpu.memory_space<vmem>>, vector<8x128xbf16>,
    %c5_i32 = arith.constant 5 : i32
    %c8_i32_57 = arith.constant 8 : i32
    %152 = arith.muli %c5_i32, %c8_i32_57 : i32
    %153 = tpu.assume_multiple %152, 8 : i32
    %154 = arith.index_cast %153 : i32 to index
    %c0_58 = arith.constant 0 : index
    %155 = vector.load %arg15[%154, %c0_58] : memref<64x512xf32, #tpu.memory_space<vmem>>, vector<8x512xf32>
    %c0_59 = arith.constant 0 : index
    %c0_60 = arith.constant 0 : index
    %156 = vector.load %arg4[%c0_59, %c0_60] : memref<128x512xbf16, #tpu.memory_space<vmem>>, vector<128x512xbf16>
    %cst_61 = arith.constant dense<0.000000e+00> : vector<8x512xf32>
    %157 = tpu.matmul %149, %156, %cst_61 {dimension_numbers = #tpu.dot_dimension_numbers<[1], [0], [0], [1], [0, 0, 1, 1], [], []>} : vector<8x128xbf16>, vector<128x512xbf16>, vector<8x512xf32> -> vector<8x512xf32>
    %158 = arith.addf %155, %157 : vector<8x512xf32>
    %159 = vector.extract_strided_slice %158 {offsets = [0, 0], sizes = [8, 384], strides = [1, 1]} : vector<8x512xf32> to vector<8x384xf32>
    %cst_62 = arith.constant 5.000000e-01 : f32
    %160 = vector.broadcast %cst_62 : f32 to vector<8x384xf32>
    %161 = arith.mulf %160, %159 : vector<8x384xf32>
    %162 = math.tanh %161 : vector<8x384xf32>
    %cst_63 = arith.constant 5.000000e-01 : f32
    %163 = vector.broadcast %cst_63 : f32 to vector<8x384xf32>
    %164 = arith.mulf %163, %162 : vector<8x384xf32>
    %cst_64 = arith.constant 5.000000e-01 : f32
    %165 = vector.broadcast %cst_64 : f32 to vector<8x384xf32>
    %166 = arith.addf %164, %165 : vector<8x384xf32>
    %167 = vector.extract_strided_slice %166 {offsets = [0, 0], sizes = [8, 128], strides = [1, 1]} : vector<8x384xf32> to vector<8x128xf32>
    %168 = vector.extract_strided_slice %166 {offsets = [0, 128], sizes = [8, 128], strides = [1, 1]} : vector<8x384xf32> to vector<8x128xf32>
    %169 = vector.extract_strided_slice %166 {offsets = [0, 256], sizes = [8, 128], strides = [1, 1]} : vector<8x384xf32> to vector<8x128xf32>
    %170 = vector.extract_strided_slice %158 {offsets = [0, 384], sizes = [8, 128], strides = [1, 1]} : vector<8x512xf32> to vector<8x128xf32>
    %171 = math.tanh %170 : vector<8x128xf32>
    %172 = arith.mulf %168, %146 : vector<8x128xf32>
    %173 = arith.mulf %167, %171 : vector<8x128xf32>
    %174 = arith.addf %172, %173 : vector<8x128xf32>
    %175 = math.tanh %174 : vector<8x128xf32>
    %176 = arith.mulf %169, %175 : vector<8x128xf32>
    %177 = arith.truncf %176 : vector<8x128xf32> to vector<8x128xbf16>
    %178 = arith.index_cast %153 : i32 to index
    %c0_65 = arith.constant 0 : index
    %179 = vector.load %arg14[%178, %c0_65] : memref<64x128xbf16, #tpu.memory_space<vmem>>, vector<8x128xbf16>
    tpu.vector_store %arg14[%178, %c0_65], %177 {strides = array<i32>} : memref<64x128xbf16, #tpu.memory_space<vmem>>, vector<8x128xbf16>,
    %c6_i32 = arith.constant 6 : i32
    %c8_i32_66 = arith.constant 8 : i32
    %180 = arith.muli %c6_i32, %c8_i32_66 : i32
    %181 = tpu.assume_multiple %180, 8 : i32
    %182 = arith.index_cast %181 : i32 to index
    %c0_67 = arith.constant 0 : index
    %183 = vector.load %arg15[%182, %c0_67] : memref<64x512xf32, #tpu.memory_space<vmem>>, vector<8x512xf32>
    %c0_68 = arith.constant 0 : index
    %c0_69 = arith.constant 0 : index
    %184 = vector.load %arg4[%c0_68, %c0_69] : memref<128x512xbf16, #tpu.memory_space<vmem>>, vector<128x512xbf16>
    %cst_70 = arith.constant dense<0.000000e+00> : vector<8x512xf32>
    %185 = tpu.matmul %177, %184, %cst_70 {dimension_numbers = #tpu.dot_dimension_numbers<[1], [0], [0], [1], [0, 0, 1, 1], [], []>} : vector<8x128xbf16>, vector<128x512xbf16>, vector<8x512xf32> -> vector<8x512xf32>
    %186 = arith.addf %183, %185 : vector<8x512xf32>
    %187 = vector.extract_strided_slice %186 {offsets = [0, 0], sizes = [8, 384], strides = [1, 1]} : vector<8x512xf32> to vector<8x384xf32>
    %cst_71 = arith.constant 5.000000e-01 : f32
    %188 = vector.broadcast %cst_71 : f32 to vector<8x384xf32>
    %189 = arith.mulf %188, %187 : vector<8x384xf32>
    %190 = math.tanh %189 : vector<8x384xf32>
    %cst_72 = arith.constant 5.000000e-01 : f32
    %191 = vector.broadcast %cst_72 : f32 to vector<8x384xf32>
    %192 = arith.mulf %191, %190 : vector<8x384xf32>
    %cst_73 = arith.constant 5.000000e-01 : f32
    %193 = vector.broadcast %cst_73 : f32 to vector<8x384xf32>
    %194 = arith.addf %192, %193 : vector<8x384xf32>
    %195 = vector.extract_strided_slice %194 {offsets = [0, 0], sizes = [8, 128], strides = [1, 1]} : vector<8x384xf32> to vector<8x128xf32>
    %196 = vector.extract_strided_slice %194 {offsets = [0, 128], sizes = [8, 128], strides = [1, 1]} : vector<8x384xf32> to vector<8x128xf32>
    %197 = vector.extract_strided_slice %194 {offsets = [0, 256], sizes = [8, 128], strides = [1, 1]} : vector<8x384xf32> to vector<8x128xf32>
    %198 = vector.extract_strided_slice %186 {offsets = [0, 384], sizes = [8, 128], strides = [1, 1]} : vector<8x512xf32> to vector<8x128xf32>
    %199 = math.tanh %198 : vector<8x128xf32>
    %200 = arith.mulf %196, %174 : vector<8x128xf32>
    %201 = arith.mulf %195, %199 : vector<8x128xf32>
    %202 = arith.addf %200, %201 : vector<8x128xf32>
    %203 = math.tanh %202 : vector<8x128xf32>
    %204 = arith.mulf %197, %203 : vector<8x128xf32>
    %205 = arith.truncf %204 : vector<8x128xf32> to vector<8x128xbf16>
    %206 = arith.index_cast %181 : i32 to index
    %c0_74 = arith.constant 0 : index
    %207 = vector.load %arg14[%206, %c0_74] : memref<64x128xbf16, #tpu.memory_space<vmem>>, vector<8x128xbf16>
    tpu.vector_store %arg14[%206, %c0_74], %205 {strides = array<i32>} : memref<64x128xbf16, #tpu.memory_space<vmem>>, vector<8x128xbf16>,
    %c7_i32 = arith.constant 7 : i32
    %c8_i32_75 = arith.constant 8 : i32
    %208 = arith.muli %c7_i32, %c8_i32_75 : i32
    %209 = tpu.assume_multiple %208, 8 : i32
    %210 = arith.index_cast %209 : i32 to index
    %c0_76 = arith.constant 0 : index
    %211 = vector.load %arg15[%210, %c0_76] : memref<64x512xf32, #tpu.memory_space<vmem>>, vector<8x512xf32>
    %c0_77 = arith.constant 0 : index
    %c0_78 = arith.constant 0 : index
    %212 = vector.load %arg4[%c0_77, %c0_78] : memref<128x512xbf16, #tpu.memory_space<vmem>>, vector<128x512xbf16>
    %cst_79 = arith.constant dense<0.000000e+00> : vector<8x512xf32>
    %213 = tpu.matmul %205, %212, %cst_79 {dimension_numbers = #tpu.dot_dimension_numbers<[1], [0], [0], [1], [0, 0, 1, 1], [], []>} : vector<8x128xbf16>, vector<128x512xbf16>, vector<8x512xf32> -> vector<8x512xf32>
    %214 = arith.addf %211, %213 : vector<8x512xf32>
    %215 = vector.extract_strided_slice %214 {offsets = [0, 0], sizes = [8, 384], strides = [1, 1]} : vector<8x512xf32> to vector<8x384xf32>
    %cst_80 = arith.constant 5.000000e-01 : f32
    %216 = vector.broadcast %cst_80 : f32 to vector<8x384xf32>
    %217 = arith.mulf %216, %215 : vector<8x384xf32>
    %218 = math.tanh %217 : vector<8x384xf32>
    %cst_81 = arith.constant 5.000000e-01 : f32
    %219 = vector.broadcast %cst_81 : f32 to vector<8x384xf32>
    %220 = arith.mulf %219, %218 : vector<8x384xf32>
    %cst_82 = arith.constant 5.000000e-01 : f32
    %221 = vector.broadcast %cst_82 : f32 to vector<8x384xf32>
    %222 = arith.addf %220, %221 : vector<8x384xf32>
    %223 = vector.extract_strided_slice %222 {offsets = [0, 0], sizes = [8, 128], strides = [1, 1]} : vector<8x384xf32> to vector<8x128xf32>
    %224 = vector.extract_strided_slice %222 {offsets = [0, 128], sizes = [8, 128], strides = [1, 1]} : vector<8x384xf32> to vector<8x128xf32>
    %225 = vector.extract_strided_slice %222 {offsets = [0, 256], sizes = [8, 128], strides = [1, 1]} : vector<8x384xf32> to vector<8x128xf32>
    %226 = vector.extract_strided_slice %214 {offsets = [0, 384], sizes = [8, 128], strides = [1, 1]} : vector<8x512xf32> to vector<8x128xf32>
    %227 = math.tanh %226 : vector<8x128xf32>
    %228 = arith.mulf %224, %202 : vector<8x128xf32>
    %229 = arith.mulf %223, %227 : vector<8x128xf32>
    %230 = arith.addf %228, %229 : vector<8x128xf32>
    %231 = math.tanh %230 : vector<8x128xf32>
    %232 = arith.mulf %225, %231 : vector<8x128xf32>
    %233 = arith.truncf %232 : vector<8x128xf32> to vector<8x128xbf16>
    %234 = arith.index_cast %209 : i32 to index
    %c0_83 = arith.constant 0 : index
    %235 = vector.load %arg14[%234, %c0_83] : memref<64x128xbf16, #tpu.memory_space<vmem>>, vector<8x128xbf16>
    tpu.vector_store %arg14[%234, %c0_83], %233 {strides = array<i32>} : memref<64x128xbf16, #tpu.memory_space<vmem>>, vector<8x128xbf16>,
    %c8_i32_84 = arith.constant 8 : i32
    %c0_85 = arith.constant 0 : index
    %c0_86 = arith.constant 0 : index
    %c0_87 = arith.constant 0 : index
    %236 = vector.load %arg12[%c0_85, %c0_86, %c0_87] : memref<2x8x128xf32, #tpu.memory_space<vmem>>, vector<1x8x128xf32>
    %237 = vector.shape_cast %236 : vector<1x8x128xf32> to vector<8x128xf32>
    %238 = vector.shape_cast %232 : vector<8x128xf32> to vector<1x8x128xf32>
    tpu.vector_store %arg12[%c0_85, %c0_86, %c0_87], %238 {strides = array<i32>} : memref<2x8x128xf32, #tpu.memory_space<vmem>>, vector<1x8x128xf32>,
    %c0_88 = arith.constant 0 : index
    %c0_89 = arith.constant 0 : index
    %c0_90 = arith.constant 0 : index
    %239 = vector.load %arg13[%c0_88, %c0_89, %c0_90] : memref<2x8x128xf32, #tpu.memory_space<vmem>>, vector<1x8x128xf32>
    %240 = vector.shape_cast %239 : vector<1x8x128xf32> to vector<8x128xf32>
    %241 = vector.shape_cast %230 : vector<8x128xf32> to vector<1x8x128xf32>
    tpu.vector_store %arg13[%c0_88, %c0_89, %c0_90], %241 {strides = array<i32>} : memref<2x8x128xf32, #tpu.memory_space<vmem>>, vector<1x8x128xf32>,
    %c0_91 = arith.constant 0 : index
    %c0_92 = arith.constant 0 : index
    %242 = vector.load %arg14[%c0_91, %c0_92] : memref<64x128xbf16, #tpu.memory_space<vmem>>, vector<64x128xbf16>
    %c0_93 = arith.constant 0 : index
    %c0_94 = arith.constant 0 : index
    %243 = vector.load %arg6[%c0_93, %c0_94] : memref<128x512xbf16, #tpu.memory_space<vmem>>, vector<128x512xbf16>
    %cst_95 = arith.constant dense<0.000000e+00> : vector<64x512xf32>
    %244 = tpu.matmul %242, %243, %cst_95 {dimension_numbers = #tpu.dot_dimension_numbers<[1], [0], [0], [1], [0, 0, 1, 1], [], []>} : vector<64x128xbf16>, vector<128x512xbf16>, vector<64x512xf32> -> vector<64x512xf32>
    %c0_96 = arith.constant 0 : index
    %c0_97 = arith.constant 0 : index
    %245 = vector.load %arg8[%c0_96, %c0_97] : memref<1x512xf32, #tpu.memory_space<vmem>>, vector<1x512xf32>
    %246 = vector.broadcast %245 : vector<1x512xf32> to vector<64x512xf32>
    %247 = arith.addf %244, %246 : vector<64x512xf32>
    %c0_98 = arith.constant 0 : index
    %c0_99 = arith.constant 0 : index
    %248 = vector.load %arg15[%c0_98, %c0_99] : memref<64x512xf32, #tpu.memory_space<vmem>>, vector<64x512xf32>
    tpu.vector_store %arg15[%c0_98, %c0_99], %247 {strides = array<i32>} : memref<64x512xf32, #tpu.memory_space<vmem>>, vector<64x512xf32>,
    %c1 = arith.constant 1 : index
    %c0_100 = arith.constant 0 : index
    %c0_101 = arith.constant 0 : index
    %249 = vector.load %arg1[%c1, %c0_100, %c0_101] : memref<2x8x128xf32, #tpu.memory_space<vmem>>, vector<1x8x128xf32>
    %250 = vector.shape_cast %249 : vector<1x8x128xf32> to vector<8x128xf32>
    %c1_102 = arith.constant 1 : index
    %c0_103 = arith.constant 0 : index
    %c0_104 = arith.constant 0 : index
    %251 = vector.load %arg2[%c1_102, %c0_103, %c0_104] : memref<2x8x128xf32, #tpu.memory_space<vmem>>, vector<1x8x128xf32>
    %252 = vector.shape_cast %251 : vector<1x8x128xf32> to vector<8x128xf32>
    %253 = arith.truncf %250 : vector<8x128xf32> to vector<8x128xbf16>
    %c0_i32_105 = arith.constant 0 : i32
    %c8_i32_106 = arith.constant 8 : i32
    %254 = arith.muli %c0_i32_105, %c8_i32_106 : i32
    %255 = tpu.assume_multiple %254, 8 : i32
    %256 = arith.index_cast %255 : i32 to index
    %c0_107 = arith.constant 0 : index
    %257 = vector.load %arg15[%256, %c0_107] : memref<64x512xf32, #tpu.memory_space<vmem>>, vector<8x512xf32>
    %c0_108 = arith.constant 0 : index
    %c0_109 = arith.constant 0 : index
    %258 = vector.load %arg7[%c0_108, %c0_109] : memref<128x512xbf16, #tpu.memory_space<vmem>>, vector<128x512xbf16>
    %cst_110 = arith.constant dense<0.000000e+00> : vector<8x512xf32>
    %259 = tpu.matmul %253, %258, %cst_110 {dimension_numbers = #tpu.dot_dimension_numbers<[1], [0], [0], [1], [0, 0, 1, 1], [], []>} : vector<8x128xbf16>, vector<128x512xbf16>, vector<8x512xf32> -> vector<8x512xf32>
    %260 = arith.addf %257, %259 : vector<8x512xf32>
    %261 = vector.extract_strided_slice %260 {offsets = [0, 0], sizes = [8, 384], strides = [1, 1]} : vector<8x512xf32> to vector<8x384xf32>
    %cst_111 = arith.constant 5.000000e-01 : f32
    %262 = vector.broadcast %cst_111 : f32 to vector<8x384xf32>
    %263 = arith.mulf %262, %261 : vector<8x384xf32>
    %264 = math.tanh %263 : vector<8x384xf32>
    %cst_112 = arith.constant 5.000000e-01 : f32
    %265 = vector.broadcast %cst_112 : f32 to vector<8x384xf32>
    %266 = arith.mulf %265, %264 : vector<8x384xf32>
    %cst_113 = arith.constant 5.000000e-01 : f32
    %267 = vector.broadcast %cst_113 : f32 to vector<8x384xf32>
    %268 = arith.addf %266, %267 : vector<8x384xf32>
    %269 = vector.extract_strided_slice %268 {offsets = [0, 0], sizes = [8, 128], strides = [1, 1]} : vector<8x384xf32> to vector<8x128xf32>
    %270 = vector.extract_strided_slice %268 {offsets = [0, 128], sizes = [8, 128], strides = [1, 1]} : vector<8x384xf32> to vector<8x128xf32>
    %271 = vector.extract_strided_slice %268 {offsets = [0, 256], sizes = [8, 128], strides = [1, 1]} : vector<8x384xf32> to vector<8x128xf32>
    %272 = vector.extract_strided_slice %260 {offsets = [0, 384], sizes = [8, 128], strides = [1, 1]} : vector<8x512xf32> to vector<8x128xf32>
    %273 = math.tanh %272 : vector<8x128xf32>
    %274 = arith.mulf %270, %252 : vector<8x128xf32>
    %275 = arith.mulf %269, %273 : vector<8x128xf32>
    %276 = arith.addf %274, %275 : vector<8x128xf32>
    %277 = math.tanh %276 : vector<8x128xf32>
    %278 = arith.mulf %271, %277 : vector<8x128xf32>
    %279 = arith.truncf %278 : vector<8x128xf32> to vector<8x128xbf16>
    %280 = arith.index_cast %255 : i32 to index
    %c0_114 = arith.constant 0 : index
    %281 = vector.load %arg14[%280, %c0_114] : memref<64x128xbf16, #tpu.memory_space<vmem>>, vector<8x128xbf16>
    tpu.vector_store %arg14[%280, %c0_114], %279 {strides = array<i32>} : memref<64x128xbf16, #tpu.memory_space<vmem>>, vector<8x128xbf16>,
    %c1_i32_115 = arith.constant 1 : i32
    %c8_i32_116 = arith.constant 8 : i32
    %282 = arith.muli %c1_i32_115, %c8_i32_116 : i32
    %283 = tpu.assume_multiple %282, 8 : i32
    %284 = arith.index_cast %283 : i32 to index
    %c0_117 = arith.constant 0 : index
    %285 = vector.load %arg15[%284, %c0_117] : memref<64x512xf32, #tpu.memory_space<vmem>>, vector<8x512xf32>
    %c0_118 = arith.constant 0 : index
    %c0_119 = arith.constant 0 : index
    %286 = vector.load %arg7[%c0_118, %c0_119] : memref<128x512xbf16, #tpu.memory_space<vmem>>, vector<128x512xbf16>
    %cst_120 = arith.constant dense<0.000000e+00> : vector<8x512xf32>
    %287 = tpu.matmul %279, %286, %cst_120 {dimension_numbers = #tpu.dot_dimension_numbers<[1], [0], [0], [1], [0, 0, 1, 1], [], []>} : vector<8x128xbf16>, vector<128x512xbf16>, vector<8x512xf32> -> vector<8x512xf32>
    %288 = arith.addf %285, %287 : vector<8x512xf32>
    %289 = vector.extract_strided_slice %288 {offsets = [0, 0], sizes = [8, 384], strides = [1, 1]} : vector<8x512xf32> to vector<8x384xf32>
    %cst_121 = arith.constant 5.000000e-01 : f32
    %290 = vector.broadcast %cst_121 : f32 to vector<8x384xf32>
    %291 = arith.mulf %290, %289 : vector<8x384xf32>
    %292 = math.tanh %291 : vector<8x384xf32>
    %cst_122 = arith.constant 5.000000e-01 : f32
    %293 = vector.broadcast %cst_122 : f32 to vector<8x384xf32>
    %294 = arith.mulf %293, %292 : vector<8x384xf32>
    %cst_123 = arith.constant 5.000000e-01 : f32
    %295 = vector.broadcast %cst_123 : f32 to vector<8x384xf32>
    %296 = arith.addf %294, %295 : vector<8x384xf32>
    %297 = vector.extract_strided_slice %296 {offsets = [0, 0], sizes = [8, 128], strides = [1, 1]} : vector<8x384xf32> to vector<8x128xf32>
    %298 = vector.extract_strided_slice %296 {offsets = [0, 128], sizes = [8, 128], strides = [1, 1]} : vector<8x384xf32> to vector<8x128xf32>
    %299 = vector.extract_strided_slice %296 {offsets = [0, 256], sizes = [8, 128], strides = [1, 1]} : vector<8x384xf32> to vector<8x128xf32>
    %300 = vector.extract_strided_slice %288 {offsets = [0, 384], sizes = [8, 128], strides = [1, 1]} : vector<8x512xf32> to vector<8x128xf32>
    %301 = math.tanh %300 : vector<8x128xf32>
    %302 = arith.mulf %298, %276 : vector<8x128xf32>
    %303 = arith.mulf %297, %301 : vector<8x128xf32>
    %304 = arith.addf %302, %303 : vector<8x128xf32>
    %305 = math.tanh %304 : vector<8x128xf32>
    %306 = arith.mulf %299, %305 : vector<8x128xf32>
    %307 = arith.truncf %306 : vector<8x128xf32> to vector<8x128xbf16>
    %308 = arith.index_cast %283 : i32 to index
    %c0_124 = arith.constant 0 : index
    %309 = vector.load %arg14[%308, %c0_124] : memref<64x128xbf16, #tpu.memory_space<vmem>>, vector<8x128xbf16>
    tpu.vector_store %arg14[%308, %c0_124], %307 {strides = array<i32>} : memref<64x128xbf16, #tpu.memory_space<vmem>>, vector<8x128xbf16>,
    %c2_i32_125 = arith.constant 2 : i32
    %c8_i32_126 = arith.constant 8 : i32
    %310 = arith.muli %c2_i32_125, %c8_i32_126 : i32
    %311 = tpu.assume_multiple %310, 8 : i32
    %312 = arith.index_cast %311 : i32 to index
    %c0_127 = arith.constant 0 : index
    %313 = vector.load %arg15[%312, %c0_127] : memref<64x512xf32, #tpu.memory_space<vmem>>, vector<8x512xf32>
    %c0_128 = arith.constant 0 : index
    %c0_129 = arith.constant 0 : index
    %314 = vector.load %arg7[%c0_128, %c0_129] : memref<128x512xbf16, #tpu.memory_space<vmem>>, vector<128x512xbf16>
    %cst_130 = arith.constant dense<0.000000e+00> : vector<8x512xf32>
    %315 = tpu.matmul %307, %314, %cst_130 {dimension_numbers = #tpu.dot_dimension_numbers<[1], [0], [0], [1], [0, 0, 1, 1], [], []>} : vector<8x128xbf16>, vector<128x512xbf16>, vector<8x512xf32> -> vector<8x512xf32>
    %316 = arith.addf %313, %315 : vector<8x512xf32>
    %317 = vector.extract_strided_slice %316 {offsets = [0, 0], sizes = [8, 384], strides = [1, 1]} : vector<8x512xf32> to vector<8x384xf32>
    %cst_131 = arith.constant 5.000000e-01 : f32
    %318 = vector.broadcast %cst_131 : f32 to vector<8x384xf32>
    %319 = arith.mulf %318, %317 : vector<8x384xf32>
    %320 = math.tanh %319 : vector<8x384xf32>
    %cst_132 = arith.constant 5.000000e-01 : f32
    %321 = vector.broadcast %cst_132 : f32 to vector<8x384xf32>
    %322 = arith.mulf %321, %320 : vector<8x384xf32>
    %cst_133 = arith.constant 5.000000e-01 : f32
    %323 = vector.broadcast %cst_133 : f32 to vector<8x384xf32>
    %324 = arith.addf %322, %323 : vector<8x384xf32>
    %325 = vector.extract_strided_slice %324 {offsets = [0, 0], sizes = [8, 128], strides = [1, 1]} : vector<8x384xf32> to vector<8x128xf32>
    %326 = vector.extract_strided_slice %324 {offsets = [0, 128], sizes = [8, 128], strides = [1, 1]} : vector<8x384xf32> to vector<8x128xf32>
    %327 = vector.extract_strided_slice %324 {offsets = [0, 256], sizes = [8, 128], strides = [1, 1]} : vector<8x384xf32> to vector<8x128xf32>
    %328 = vector.extract_strided_slice %316 {offsets = [0, 384], sizes = [8, 128], strides = [1, 1]} : vector<8x512xf32> to vector<8x128xf32>
    %329 = math.tanh %328 : vector<8x128xf32>
    %330 = arith.mulf %326, %304 : vector<8x128xf32>
    %331 = arith.mulf %325, %329 : vector<8x128xf32>
    %332 = arith.addf %330, %331 : vector<8x128xf32>
    %333 = math.tanh %332 : vector<8x128xf32>
    %334 = arith.mulf %327, %333 : vector<8x128xf32>
    %335 = arith.truncf %334 : vector<8x128xf32> to vector<8x128xbf16>
    %336 = arith.index_cast %311 : i32 to index
    %c0_134 = arith.constant 0 : index
    %337 = vector.load %arg14[%336, %c0_134] : memref<64x128xbf16, #tpu.memory_space<vmem>>, vector<8x128xbf16>
    tpu.vector_store %arg14[%336, %c0_134], %335 {strides = array<i32>} : memref<64x128xbf16, #tpu.memory_space<vmem>>, vector<8x128xbf16>,
    %c3_i32_135 = arith.constant 3 : i32
    %c8_i32_136 = arith.constant 8 : i32
    %338 = arith.muli %c3_i32_135, %c8_i32_136 : i32
    %339 = tpu.assume_multiple %338, 8 : i32
    %340 = arith.index_cast %339 : i32 to index
    %c0_137 = arith.constant 0 : index
    %341 = vector.load %arg15[%340, %c0_137] : memref<64x512xf32, #tpu.memory_space<vmem>>, vector<8x512xf32>
    %c0_138 = arith.constant 0 : index
    %c0_139 = arith.constant 0 : index
    %342 = vector.load %arg7[%c0_138, %c0_139] : memref<128x512xbf16, #tpu.memory_space<vmem>>, vector<128x512xbf16>
    %cst_140 = arith.constant dense<0.000000e+00> : vector<8x512xf32>
    %343 = tpu.matmul %335, %342, %cst_140 {dimension_numbers = #tpu.dot_dimension_numbers<[1], [0], [0], [1], [0, 0, 1, 1], [], []>} : vector<8x128xbf16>, vector<128x512xbf16>, vector<8x512xf32> -> vector<8x512xf32>
    %344 = arith.addf %341, %343 : vector<8x512xf32>
    %345 = vector.extract_strided_slice %344 {offsets = [0, 0], sizes = [8, 384], strides = [1, 1]} : vector<8x512xf32> to vector<8x384xf32>
    %cst_141 = arith.constant 5.000000e-01 : f32
    %346 = vector.broadcast %cst_141 : f32 to vector<8x384xf32>
    %347 = arith.mulf %346, %345 : vector<8x384xf32>
    %348 = math.tanh %347 : vector<8x384xf32>
    %cst_142 = arith.constant 5.000000e-01 : f32
    %349 = vector.broadcast %cst_142 : f32 to vector<8x384xf32>
    %350 = arith.mulf %349, %348 : vector<8x384xf32>
    %cst_143 = arith.constant 5.000000e-01 : f32
    %351 = vector.broadcast %cst_143 : f32 to vector<8x384xf32>
    %352 = arith.addf %350, %351 : vector<8x384xf32>
    %353 = vector.extract_strided_slice %352 {offsets = [0, 0], sizes = [8, 128], strides = [1, 1]} : vector<8x384xf32> to vector<8x128xf32>
    %354 = vector.extract_strided_slice %352 {offsets = [0, 128], sizes = [8, 128], strides = [1, 1]} : vector<8x384xf32> to vector<8x128xf32>
    %355 = vector.extract_strided_slice %352 {offsets = [0, 256], sizes = [8, 128], strides = [1, 1]} : vector<8x384xf32> to vector<8x128xf32>
    %356 = vector.extract_strided_slice %344 {offsets = [0, 384], sizes = [8, 128], strides = [1, 1]} : vector<8x512xf32> to vector<8x128xf32>
    %357 = math.tanh %356 : vector<8x128xf32>
    %358 = arith.mulf %354, %332 : vector<8x128xf32>
    %359 = arith.mulf %353, %357 : vector<8x128xf32>
    %360 = arith.addf %358, %359 : vector<8x128xf32>
    %361 = math.tanh %360 : vector<8x128xf32>
    %362 = arith.mulf %355, %361 : vector<8x128xf32>
    %363 = arith.truncf %362 : vector<8x128xf32> to vector<8x128xbf16>
    %364 = arith.index_cast %339 : i32 to index
    %c0_144 = arith.constant 0 : index
    %365 = vector.load %arg14[%364, %c0_144] : memref<64x128xbf16, #tpu.memory_space<vmem>>, vector<8x128xbf16>
    tpu.vector_store %arg14[%364, %c0_144], %363 {strides = array<i32>} : memref<64x128xbf16, #tpu.memory_space<vmem>>, vector<8x128xbf16>,
    %c4_i32_145 = arith.constant 4 : i32
    %c8_i32_146 = arith.constant 8 : i32
    %366 = arith.muli %c4_i32_145, %c8_i32_146 : i32
    %367 = tpu.assume_multiple %366, 8 : i32
    %368 = arith.index_cast %367 : i32 to index
    %c0_147 = arith.constant 0 : index
    %369 = vector.load %arg15[%368, %c0_147] : memref<64x512xf32, #tpu.memory_space<vmem>>, vector<8x512xf32>
    %c0_148 = arith.constant 0 : index
    %c0_149 = arith.constant 0 : index
    %370 = vector.load %arg7[%c0_148, %c0_149] : memref<128x512xbf16, #tpu.memory_space<vmem>>, vector<128x512xbf16>
    %cst_150 = arith.constant dense<0.000000e+00> : vector<8x512xf32>
    %371 = tpu.matmul %363, %370, %cst_150 {dimension_numbers = #tpu.dot_dimension_numbers<[1], [0], [0], [1], [0, 0, 1, 1], [], []>} : vector<8x128xbf16>, vector<128x512xbf16>, vector<8x512xf32> -> vector<8x512xf32>
    %372 = arith.addf %369, %371 : vector<8x512xf32>
    %373 = vector.extract_strided_slice %372 {offsets = [0, 0], sizes = [8, 384], strides = [1, 1]} : vector<8x512xf32> to vector<8x384xf32>
    %cst_151 = arith.constant 5.000000e-01 : f32
    %374 = vector.broadcast %cst_151 : f32 to vector<8x384xf32>
    %375 = arith.mulf %374, %373 : vector<8x384xf32>
    %376 = math.tanh %375 : vector<8x384xf32>
    %cst_152 = arith.constant 5.000000e-01 : f32
    %377 = vector.broadcast %cst_152 : f32 to vector<8x384xf32>
    %378 = arith.mulf %377, %376 : vector<8x384xf32>
    %cst_153 = arith.constant 5.000000e-01 : f32
    %379 = vector.broadcast %cst_153 : f32 to vector<8x384xf32>
    %380 = arith.addf %378, %379 : vector<8x384xf32>
    %381 = vector.extract_strided_slice %380 {offsets = [0, 0], sizes = [8, 128], strides = [1, 1]} : vector<8x384xf32> to vector<8x128xf32>
    %382 = vector.extract_strided_slice %380 {offsets = [0, 128], sizes = [8, 128], strides = [1, 1]} : vector<8x384xf32> to vector<8x128xf32>
    %383 = vector.extract_strided_slice %380 {offsets = [0, 256], sizes = [8, 128], strides = [1, 1]} : vector<8x384xf32> to vector<8x128xf32>
    %384 = vector.extract_strided_slice %372 {offsets = [0, 384], sizes = [8, 128], strides = [1, 1]} : vector<8x512xf32> to vector<8x128xf32>
    %385 = math.tanh %384 : vector<8x128xf32>
    %386 = arith.mulf %382, %360 : vector<8x128xf32>
    %387 = arith.mulf %381, %385 : vector<8x128xf32>
    %388 = arith.addf %386, %387 : vector<8x128xf32>
    %389 = math.tanh %388 : vector<8x128xf32>
    %390 = arith.mulf %383, %389 : vector<8x128xf32>
    %391 = arith.truncf %390 : vector<8x128xf32> to vector<8x128xbf16>
    %392 = arith.index_cast %367 : i32 to index
    %c0_154 = arith.constant 0 : index
    %393 = vector.load %arg14[%392, %c0_154] : memref<64x128xbf16, #tpu.memory_space<vmem>>, vector<8x128xbf16>
    tpu.vector_store %arg14[%392, %c0_154], %391 {strides = array<i32>} : memref<64x128xbf16, #tpu.memory_space<vmem>>, vector<8x128xbf16>,
    %c5_i32_155 = arith.constant 5 : i32
    %c8_i32_156 = arith.constant 8 : i32
    %394 = arith.muli %c5_i32_155, %c8_i32_156 : i32
    %395 = tpu.assume_multiple %394, 8 : i32
    %396 = arith.index_cast %395 : i32 to index
    %c0_157 = arith.constant 0 : index
    %397 = vector.load %arg15[%396, %c0_157] : memref<64x512xf32, #tpu.memory_space<vmem>>, vector<8x512xf32>
    %c0_158 = arith.constant 0 : index
    %c0_159 = arith.constant 0 : index
    %398 = vector.load %arg7[%c0_158, %c0_159] : memref<128x512xbf16, #tpu.memory_space<vmem>>, vector<128x512xbf16>
    %cst_160 = arith.constant dense<0.000000e+00> : vector<8x512xf32>
    %399 = tpu.matmul %391, %398, %cst_160 {dimension_numbers = #tpu.dot_dimension_numbers<[1], [0], [0], [1], [0, 0, 1, 1], [], []>} : vector<8x128xbf16>, vector<128x512xbf16>, vector<8x512xf32> -> vector<8x512xf32>
    %400 = arith.addf %397, %399 : vector<8x512xf32>
    %401 = vector.extract_strided_slice %400 {offsets = [0, 0], sizes = [8, 384], strides = [1, 1]} : vector<8x512xf32> to vector<8x384xf32>
    %cst_161 = arith.constant 5.000000e-01 : f32
    %402 = vector.broadcast %cst_161 : f32 to vector<8x384xf32>
    %403 = arith.mulf %402, %401 : vector<8x384xf32>
    %404 = math.tanh %403 : vector<8x384xf32>
    %cst_162 = arith.constant 5.000000e-01 : f32
    %405 = vector.broadcast %cst_162 : f32 to vector<8x384xf32>
    %406 = arith.mulf %405, %404 : vector<8x384xf32>
    %cst_163 = arith.constant 5.000000e-01 : f32
    %407 = vector.broadcast %cst_163 : f32 to vector<8x384xf32>
    %408 = arith.addf %406, %407 : vector<8x384xf32>
    %409 = vector.extract_strided_slice %408 {offsets = [0, 0], sizes = [8, 128], strides = [1, 1]} : vector<8x384xf32> to vector<8x128xf32>
    %410 = vector.extract_strided_slice %408 {offsets = [0, 128], sizes = [8, 128], strides = [1, 1]} : vector<8x384xf32> to vector<8x128xf32>
    %411 = vector.extract_strided_slice %408 {offsets = [0, 256], sizes = [8, 128], strides = [1, 1]} : vector<8x384xf32> to vector<8x128xf32>
    %412 = vector.extract_strided_slice %400 {offsets = [0, 384], sizes = [8, 128], strides = [1, 1]} : vector<8x512xf32> to vector<8x128xf32>
    %413 = math.tanh %412 : vector<8x128xf32>
    %414 = arith.mulf %410, %388 : vector<8x128xf32>
    %415 = arith.mulf %409, %413 : vector<8x128xf32>
    %416 = arith.addf %414, %415 : vector<8x128xf32>
    %417 = math.tanh %416 : vector<8x128xf32>
    %418 = arith.mulf %411, %417 : vector<8x128xf32>
    %419 = arith.truncf %418 : vector<8x128xf32> to vector<8x128xbf16>
    %420 = arith.index_cast %395 : i32 to index
    %c0_164 = arith.constant 0 : index
    %421 = vector.load %arg14[%420, %c0_164] : memref<64x128xbf16, #tpu.memory_space<vmem>>, vector<8x128xbf16>
    tpu.vector_store %arg14[%420, %c0_164], %419 {strides = array<i32>} : memref<64x128xbf16, #tpu.memory_space<vmem>>, vector<8x128xbf16>,
    %c6_i32_165 = arith.constant 6 : i32
    %c8_i32_166 = arith.constant 8 : i32
    %422 = arith.muli %c6_i32_165, %c8_i32_166 : i32
    %423 = tpu.assume_multiple %422, 8 : i32
    %424 = arith.index_cast %423 : i32 to index
    %c0_167 = arith.constant 0 : index
    %425 = vector.load %arg15[%424, %c0_167] : memref<64x512xf32, #tpu.memory_space<vmem>>, vector<8x512xf32>
    %c0_168 = arith.constant 0 : index
    %c0_169 = arith.constant 0 : index
    %426 = vector.load %arg7[%c0_168, %c0_169] : memref<128x512xbf16, #tpu.memory_space<vmem>>, vector<128x512xbf16>
    %cst_170 = arith.constant dense<0.000000e+00> : vector<8x512xf32>
    %427 = tpu.matmul %419, %426, %cst_170 {dimension_numbers = #tpu.dot_dimension_numbers<[1], [0], [0], [1], [0, 0, 1, 1], [], []>} : vector<8x128xbf16>, vector<128x512xbf16>, vector<8x512xf32> -> vector<8x512xf32>
    %428 = arith.addf %425, %427 : vector<8x512xf32>
    %429 = vector.extract_strided_slice %428 {offsets = [0, 0], sizes = [8, 384], strides = [1, 1]} : vector<8x512xf32> to vector<8x384xf32>
    %cst_171 = arith.constant 5.000000e-01 : f32
    %430 = vector.broadcast %cst_171 : f32 to vector<8x384xf32>
    %431 = arith.mulf %430, %429 : vector<8x384xf32>
    %432 = math.tanh %431 : vector<8x384xf32>
    %cst_172 = arith.constant 5.000000e-01 : f32
    %433 = vector.broadcast %cst_172 : f32 to vector<8x384xf32>
    %434 = arith.mulf %433, %432 : vector<8x384xf32>
    %cst_173 = arith.constant 5.000000e-01 : f32
    %435 = vector.broadcast %cst_173 : f32 to vector<8x384xf32>
    %436 = arith.addf %434, %435 : vector<8x384xf32>
    %437 = vector.extract_strided_slice %436 {offsets = [0, 0], sizes = [8, 128], strides = [1, 1]} : vector<8x384xf32> to vector<8x128xf32>
    %438 = vector.extract_strided_slice %436 {offsets = [0, 128], sizes = [8, 128], strides = [1, 1]} : vector<8x384xf32> to vector<8x128xf32>
    %439 = vector.extract_strided_slice %436 {offsets = [0, 256], sizes = [8, 128], strides = [1, 1]} : vector<8x384xf32> to vector<8x128xf32>
    %440 = vector.extract_strided_slice %428 {offsets = [0, 384], sizes = [8, 128], strides = [1, 1]} : vector<8x512xf32> to vector<8x128xf32>
    %441 = math.tanh %440 : vector<8x128xf32>
    %442 = arith.mulf %438, %416 : vector<8x128xf32>
    %443 = arith.mulf %437, %441 : vector<8x128xf32>
    %444 = arith.addf %442, %443 : vector<8x128xf32>
    %445 = math.tanh %444 : vector<8x128xf32>
    %446 = arith.mulf %439, %445 : vector<8x128xf32>
    %447 = arith.truncf %446 : vector<8x128xf32> to vector<8x128xbf16>
    %448 = arith.index_cast %423 : i32 to index
    %c0_174 = arith.constant 0 : index
    %449 = vector.load %arg14[%448, %c0_174] : memref<64x128xbf16, #tpu.memory_space<vmem>>, vector<8x128xbf16>
    tpu.vector_store %arg14[%448, %c0_174], %447 {strides = array<i32>} : memref<64x128xbf16, #tpu.memory_space<vmem>>, vector<8x128xbf16>,
    %c7_i32_175 = arith.constant 7 : i32
    %c8_i32_176 = arith.constant 8 : i32
    %450 = arith.muli %c7_i32_175, %c8_i32_176 : i32
    %451 = tpu.assume_multiple %450, 8 : i32
    %452 = arith.index_cast %451 : i32 to index
    %c0_177 = arith.constant 0 : index
    %453 = vector.load %arg15[%452, %c0_177] : memref<64x512xf32, #tpu.memory_space<vmem>>, vector<8x512xf32>
    %c0_178 = arith.constant 0 : index
    %c0_179 = arith.constant 0 : index
    %454 = vector.load %arg7[%c0_178, %c0_179] : memref<128x512xbf16, #tpu.memory_space<vmem>>, vector<128x512xbf16>
    %cst_180 = arith.constant dense<0.000000e+00> : vector<8x512xf32>
    %455 = tpu.matmul %447, %454, %cst_180 {dimension_numbers = #tpu.dot_dimension_numbers<[1], [0], [0], [1], [0, 0, 1, 1], [], []>} : vector<8x128xbf16>, vector<128x512xbf16>, vector<8x512xf32> -> vector<8x512xf32>
    %456 = arith.addf %453, %455 : vector<8x512xf32>
    %457 = vector.extract_strided_slice %456 {offsets = [0, 0], sizes = [8, 384], strides = [1, 1]} : vector<8x512xf32> to vector<8x384xf32>
    %cst_181 = arith.constant 5.000000e-01 : f32
    %458 = vector.broadcast %cst_181 : f32 to vector<8x384xf32>
    %459 = arith.mulf %458, %457 : vector<8x384xf32>
    %460 = math.tanh %459 : vector<8x384xf32>
    %cst_182 = arith.constant 5.000000e-01 : f32
    %461 = vector.broadcast %cst_182 : f32 to vector<8x384xf32>
    %462 = arith.mulf %461, %460 : vector<8x384xf32>
    %cst_183 = arith.constant 5.000000e-01 : f32
    %463 = vector.broadcast %cst_183 : f32 to vector<8x384xf32>
    %464 = arith.addf %462, %463 : vector<8x384xf32>
    %465 = vector.extract_strided_slice %464 {offsets = [0, 0], sizes = [8, 128], strides = [1, 1]} : vector<8x384xf32> to vector<8x128xf32>
    %466 = vector.extract_strided_slice %464 {offsets = [0, 128], sizes = [8, 128], strides = [1, 1]} : vector<8x384xf32> to vector<8x128xf32>
    %467 = vector.extract_strided_slice %464 {offsets = [0, 256], sizes = [8, 128], strides = [1, 1]} : vector<8x384xf32> to vector<8x128xf32>
    %468 = vector.extract_strided_slice %456 {offsets = [0, 384], sizes = [8, 128], strides = [1, 1]} : vector<8x512xf32> to vector<8x128xf32>
    %469 = math.tanh %468 : vector<8x128xf32>
    %470 = arith.mulf %466, %444 : vector<8x128xf32>
    %471 = arith.mulf %465, %469 : vector<8x128xf32>
    %472 = arith.addf %470, %471 : vector<8x128xf32>
    %473 = math.tanh %472 : vector<8x128xf32>
    %474 = arith.mulf %467, %473 : vector<8x128xf32>
    %475 = arith.truncf %474 : vector<8x128xf32> to vector<8x128xbf16>
    %476 = arith.index_cast %451 : i32 to index
    %c0_184 = arith.constant 0 : index
    %477 = vector.load %arg14[%476, %c0_184] : memref<64x128xbf16, #tpu.memory_space<vmem>>, vector<8x128xbf16>
    tpu.vector_store %arg14[%476, %c0_184], %475 {strides = array<i32>} : memref<64x128xbf16, #tpu.memory_space<vmem>>, vector<8x128xbf16>,
    %c8_i32_185 = arith.constant 8 : i32
    %c1_186 = arith.constant 1 : index
    %c0_187 = arith.constant 0 : index
    %c0_188 = arith.constant 0 : index
    %478 = vector.load %arg12[%c1_186, %c0_187, %c0_188] : memref<2x8x128xf32, #tpu.memory_space<vmem>>, vector<1x8x128xf32>
    %479 = vector.shape_cast %478 : vector<1x8x128xf32> to vector<8x128xf32>
    %480 = vector.shape_cast %474 : vector<8x128xf32> to vector<1x8x128xf32>
    tpu.vector_store %arg12[%c1_186, %c0_187, %c0_188], %480 {strides = array<i32>} : memref<2x8x128xf32, #tpu.memory_space<vmem>>, vector<1x8x128xf32>,
    %c1_189 = arith.constant 1 : index
    %c0_190 = arith.constant 0 : index
    %c0_191 = arith.constant 0 : index
    %481 = vector.load %arg13[%c1_189, %c0_190, %c0_191] : memref<2x8x128xf32, #tpu.memory_space<vmem>>, vector<1x8x128xf32>
    %482 = vector.shape_cast %481 : vector<1x8x128xf32> to vector<8x128xf32>
    %483 = vector.shape_cast %472 : vector<8x128xf32> to vector<1x8x128xf32>
    tpu.vector_store %arg13[%c1_189, %c0_190, %c0_191], %483 {strides = array<i32>} : memref<2x8x128xf32, #tpu.memory_space<vmem>>, vector<1x8x128xf32>,
    %484 = arith.truncf %474 : vector<8x128xf32> to vector<8x128xbf16>
    %c0_192 = arith.constant 0 : index
    %c0_193 = arith.constant 0 : index
    %485 = vector.load %arg9[%c0_192, %c0_193] : memref<128x4xbf16, #tpu.memory_space<vmem>>, vector<128x4xbf16>
    %cst_194 = arith.constant dense<0.000000e+00> : vector<8x4xf32>
    %486 = tpu.matmul %484, %485, %cst_194 {dimension_numbers = #tpu.dot_dimension_numbers<[1], [0], [0], [1], [0, 0, 1, 1], [], []>} : vector<8x128xbf16>, vector<128x4xbf16>, vector<8x4xf32> -> vector<8x4xf32>
    %c0_195 = arith.constant 0 : index
    %c0_196 = arith.constant 0 : index
    %487 = vector.load %arg10[%c0_195, %c0_196] : memref<1x4xf32, #tpu.memory_space<vmem>>, vector<1x4xf32>
    %488 = vector.broadcast %487 : vector<1x4xf32> to vector<8x4xf32>
    %489 = arith.addf %486, %488 : vector<8x4xf32>
    %cst_197 = arith.constant 5.000000e-01 : f32
    %490 = vector.broadcast %cst_197 : f32 to vector<8x4xf32>
    %491 = arith.mulf %490, %489 : vector<8x4xf32>
    %492 = math.tanh %491 : vector<8x4xf32>
    %cst_198 = arith.constant 5.000000e-01 : f32
    %493 = vector.broadcast %cst_198 : f32 to vector<8x4xf32>
    %494 = arith.mulf %493, %492 : vector<8x4xf32>
    %cst_199 = arith.constant 5.000000e-01 : f32
    %495 = vector.broadcast %cst_199 : f32 to vector<8x4xf32>
    %496 = arith.addf %494, %495 : vector<8x4xf32>
    %c0_200 = arith.constant 0 : index
    %c0_201 = arith.constant 0 : index
    %497 = vector.load %arg11[%c0_200, %c0_201] : memref<8x4xf32, #tpu.memory_space<vmem>>, vector<8x4xf32>
    tpu.vector_store %arg11[%c0_200, %c0_201], %496 {strides = array<i32>} : memref<8x4xf32, #tpu.memory_space<vmem>>, vector<8x4xf32>,
    return
  }
}

</mosaic_0001>

<bundles_post_ra>
// kernel: tpu_custom_call.1
= control target key start
LH: loop header
LB: loop body
LE: loop exit
PB: predicated region body
PF: predicated region fallthrough
CT: control target
= control target key end

     0   :  { %19 = vsyncpa [#allocation5], 0  ;;  %s8904_s0 = inlined_call_operand.vmem [shape: bf16[64,16], index: 0, kind: input, shape index: {}]   ;;  %s8905_s1 = inlined_call_operand.vmem [shape: f32[2,8,128], index: 1, kind: input, shape index: {}]   ;;  %s8906_s2 = inlined_call_operand.vmem [shape: f32[2,8,128], index: 2, kind: input, shape index: {}]   ;;  %s8907_s3 = inlined_call_operand.vmem [shape: bf16[16,512], index: 3, kind: input, shape index: {}]   ;;  %s8908_s4 = inlined_call_operand.hbm [shape: bf16[128,512], index: 4, kind: input, shape index: {}]   ;;  %s8909_s5 = inlined_call_operand.vmem [shape: f32[1,512], index: 5, kind: input, shape index: {}]   ;;  %s8910_s6 = inlined_call_operand.hbm [shape: bf16[128,512], index: 6, kind: input, shape index: {}]   ;;  %s8911_s7 = inlined_call_operand.hbm [shape: bf16[128,512], index: 7, kind: input, shape index: {}]   ;;  %s8912_s8 = inlined_call_operand.vmem [shape: f32[1,512], index: 8, kind: input, shape index: {}]   ;;  %s8913_s9 = inlined_call_operand.vmem [shape: bf16[128,4], index: 9, kind: input, shape index: {}]   ;;  %s8914_s10 = inlined_call_operand.vmem [shape: f32[1,4], index: 10, kind: input, shape index: {}]   ;;  %s8915_s11 = inlined_call_operand.vmem [shape: f32[8,4], index: 11, kind: output, shape index: {0}]   ;;  %s8916_s12 = inlined_call_operand.hbm [shape: f32[2,8,128], index: 12, kind: output, shape index: {1}]   ;;  %s8917_s13 = inlined_call_operand.hbm [shape: f32[2,8,128], index: 13, kind: output, shape index: {2}]  }
   0x1   :  { %20 = vsyncpa [#allocation8], 0 }
   0x2   :  { %21 = vsyncpa [#allocation6], 0 }
   0x3   :  { %22 = vsyncpa [#allocation12], 0  ;;  %s50_s27 = sshll.u32 %s8910_s6, 4  ;;  %s8368_s28 = smov [#allocation7]   ;;  %s51_s27 = int_to_ptr.hbm [resolvable:$true] %s50_s27 }
   0x4   :  { %s52_s29 = sshll.u32 %s8368_s28, 4  ;;  %s35_s15 = sshll.u32 %s8908_s4, 4  ;;  %s53_s29 = int_to_ptr.vmem [resolvable:$true] %s52_s29  ;;  %s36_s15 = int_to_ptr.hbm [resolvable:$true] %s35_s15 }
   0x5   :  { %s8369_s16 = smov 256   ;;  %s8370_s17 = smov 16  }
   0x6   :  { %58 = dma.hbm_to_vmem [thread:$0]  %s51_s27, 4096, %s53_s29, [#allocation8], %s8369_s16, %s8369_s16, %s8370_s17  }
   0x7   :  { %s8371_s18 = smov [#allocation4]   ;;  %s63_s22 = sshll.u32 %s8911_s7, 4  ;;  %s64_s22 = int_to_ptr.hbm [resolvable:$true] %s63_s22 }
   0x8   :  { %s37_s19 = sshll.u32 %s8371_s18, 4  ;;  %s8372_s6 = smov [#allocation9]   ;;  %s38_s19 = int_to_ptr.vmem [resolvable:$true] %s37_s19 }
   0x9   :  { %43 = dma.hbm_to_vmem [thread:$0]  %s36_s15, 4096, %s38_s19, [#allocation5], %s8369_s16, %s8369_s16, %s8370_s17  }
   0xa   :  { %s65_s23 = sshll.u32 %s8372_s6, 4  ;;  %s66_s23 = int_to_ptr.vmem [resolvable:$true] %s65_s23 }
   0xb   :  { %71 = dma.hbm_to_vmem [thread:$0]  %s64_s22, 4096, %s66_s23, [#allocation8], %s8369_s16, %s8369_s16, %s8370_s17  }
   0xc   :  { %8360 = dma.done.wait [#allocation5], 4096  }
   0xd   :  { %8361 = vsyncadd [#allocation5], 4294963200 }
   0xe   :  { %8362 = dma.done.wait [#allocation8], 8192  }
   0xf   :  { %8363 = vsyncadd [#allocation8], 4294959104  ;;  %v5247_v0 = vld [vmem:[%s8907_s3] sm:$0xf]  ;;  %v7509_v1 = vld [vmem:[%s8907_s3 + $0xc] sm:$0xf0] }
  0x10   :  { %v5255_v2 = vld [vmem:[%s8907_s3 + $0x8] sm:$0xf]  ;;  %v5248_v3 = vor.u32 %v7509_v1, %v5247_v0  ;;  %v7510_v4 = vld [vmem:[%s8907_s3 + $0x14] sm:$0xf0]  ;;  %v7508_v5 = vld [vmem:[%s8907_s3 + $0xc] sm:$0xf] }
  0x11   :  { %v5257_v6 = vld [vmem:[%s8907_s3 + $0x18] sm:$0xf0]  ;;  %v5256_v7 = vor.u32 %v7510_v4, %v5255_v2  ;;  %v8477_v9 = vld [vmem:[%s8904_s0] sm:$0xff]  ;;  %vm153_vm0 = vcmask 130048   ;;  %v5249_v12 = vld [vmem:[%s8907_s3 + $0x10] sm:$0xf0] }
  0x12   :  { %v5260_v8 = vor.u32 %v7508_v5, %v5257_v6  ;;  %v8482_v10 = vld [vmem:[%s8904_s0 + $0x18] sm:$0xff]  ;;  %v7507_v11 = vld [vmem:[%s8907_s3 + $0x4] sm:$0xf]  ;;  %173 = vmatpush.bf16.msra.mxu0 %v5248_v3  ;;  %8067 = vmatpush.bf16.msra.mxu1 %v5248_v3  ;;  %v5393_v15 = vld [vmem:[#allocation4 + $0xf0] sm:$0xf0]  ;;  %s5188_s28 = sshll.u32 %s8916_s12, 4  ;;  %s5189_s28 = int_to_ptr.hbm [resolvable:$true] %s5188_s28 }
  0x13   :  { %v7539_v13 = vld [vmem:[#allocation4 + $0xe4] sm:$0xf]  ;;  %231 = vmatpush.bf16.msra.mxu2 %v5256_v7  ;;  %v5252_v14 = vor.u32 %v7507_v11, %v5249_v12  ;;  %v7540_v16 = vld [vmem:[#allocation4 + $0xec] sm:$0xf]  ;;  %v5401_v17 = vld [vmem:[#allocation4 + $0xf8] sm:$0xf0] }
  0x14   :  { %260 = vmatpush.bf16.msra.mxu3 %v5260_v8  ;;  %v5396_v18 = vor.u32 %v7539_v13, %v5393_v15  ;;  %v5404_v19 = vor.u32 %v7540_v16, %v5401_v17  ;;  %v5391_v20 = vld [vmem:[#allocation4 + $0xe0] sm:$0xf]  ;;  %v7541_v21 = vld [vmem:[#allocation4 + $0xec] sm:$0xf0]  ;;  %v5399_v25 = vld [vmem:[#allocation4 + $0xe8] sm:$0xf] }
  0x15   :  { %v5375_v22 = vld [vmem:[#allocation4 + $0xc0] sm:$0xf]  ;;  %5261 = vmatmul.msk.bf16.vlgmr.msra.gmra.mxu0 %vm153_vm0, %v8477_v9  ;;  %5264 = vmatmul.msk.bf16.vlgmr.msra.gmra.mxu1 %vm153_vm0, %v8482_v10  ;;  %v5392_v23 = vor.u32 %v7541_v21, %v5391_v20  ;;  %v7537_v24 = vld [vmem:[#allocation4 + $0xcc] sm:$0xf0]  ;;  %v7542_v26 = vld [vmem:[#allocation4 + $0xf4] sm:$0xf0] }
  0x16   :  { %202 = vmatpush.bf16.msrb.mxu1 %v5252_v14  ;;  %5269 = vmatmul.msk.bf16.vlgmr.msra.gmra.mxu2 %vm153_vm0, %v8477_v9  ;;  %v5400_v27 = vor.u32 %v7542_v26, %v5399_v25  ;;  %v7535_v28 = vld [vmem:[#allocation4 + $0xc4] sm:$0xf]  ;;  %v5377_v29 = vld [vmem:[#allocation4 + $0xd0] sm:$0xf0]  ;;  %v7536_v30 = vld [vmem:[#allocation4 + $0xcc] sm:$0xf]  ;;  %v5376_v33 = vor.u32 %v7537_v24, %v5375_v22 }
  0x17   :  { %5273 = vmatmul.msk.bf16.vlgmr.msra.gmra.mxu3 %vm153_vm0, %v8477_v9  ;;  %v5380_v31 = vor.u32 %v7535_v28, %v5377_v29  ;;  %v5385_v32 = vld [vmem:[#allocation4 + $0xd8] sm:$0xf0]  ;;  %516 = vmatpush.bf16.msrb.mxu0 %v5392_v23  ;;  %v5359_v35 = vld [vmem:[#allocation4 + $0xa0] sm:$0xf]  ;;  %v5383_v36 = vld [vmem:[#allocation4 + $0xc8] sm:$0xf] }
  0x18   :  { %555 = vmatpush.bf16.msrb.mxu3 %v5404_v19  ;;  %v5388_v34 = vor.u32 %v7536_v30, %v5385_v32  ;;  %542 = vmatpush.bf16.msrb.mxu2 %v5400_v27  ;;  %v7533_v37 = vld [vmem:[#allocation4 + $0xac] sm:$0xf0]  ;;  %v7538_v38 = vld [vmem:[#allocation4 + $0xd4] sm:$0xf0]  ;;  %v7531_v39 = vld [vmem:[#allocation4 + $0xa4] sm:$0xf] }
  0x19   :  { %v5384_v40 = vor.u32 %v7538_v38, %v5383_v36  ;;  %v5361_v41 = vld [vmem:[#allocation4 + $0xb0] sm:$0xf0]  ;;  %v7532_v42 = vld [vmem:[#allocation4 + $0xac] sm:$0xf]  ;;  %v5369_v43 = vld [vmem:[#allocation4 + $0xb8] sm:$0xf0]  ;;  %v5360_v46 = vor.u32 %v7533_v37, %v5359_v35 }
  0x1a   :  { %529 = vmatpush.bf16.msra.mxu1 %v5396_v18  ;;  %v5343_v44 = vld [vmem:[#allocation4 + $0x80] sm:$0xf]  ;;  %v5364_v45 = vor.u32 %v7531_v39, %v5361_v41  ;;  %v7529_v47 = vld [vmem:[#allocation4 + $0x8c] sm:$0xf0]  ;;  %v5372_v48 = vor.u32 %v7532_v42, %v5369_v43  ;;  %v5367_v49 = vld [vmem:[#allocation4 + $0xa8] sm:$0xf] }
  0x1b   :  { %517 = vmatpush.bf16.msrb.mxu0 %v5376_v33  ;;  %v7534_v50 = vld [vmem:[#allocation4 + $0xb4] sm:$0xf0]  ;;  %v7527_v52 = vld [vmem:[#allocation4 + $0x84] sm:$0xf]  ;;  %v5345_v53 = vld [vmem:[#allocation4 + $0x90] sm:$0xf0]  ;;  %v5344_v57 = vor.u32 %v7529_v47, %v5343_v44 }
  0x1c   :  { %556 = vmatpush.bf16.msrb.mxu3 %v5388_v34  ;;  %543 = vmatpush.bf16.msrb.mxu2 %v5384_v40  ;;  %v5368_v51 = vor.u32 %v7534_v50, %v5367_v49  ;;  %v7528_v54 = vld [vmem:[#allocation4 + $0x8c] sm:$0xf]  ;;  %v5353_v55 = vld [vmem:[#allocation4 + $0x98] sm:$0xf0]  ;;  %v5348_v56 = vor.u32 %v7527_v52, %v5345_v53  ;;  %v5351_v59 = vld [vmem:[#allocation4 + $0x88] sm:$0xf] }
  0x1d   :  { %v5356_v58 = vor.u32 %v7528_v54, %v5353_v55  ;;  %v7530_v60 = vld [vmem:[#allocation4 + $0x94] sm:$0xf0]  ;;  %v8501_v61 = vld [vmem:[%s8904_s0 + $0x8] sm:$0xff]  ;;  %v5327_v62 = vld [vmem:[#allocation4 + $0x60] sm:$0xf]  ;;  %s8374_s29 = smov 128  }
  0x1e   :  { %530 = vmatpush.bf16.msra.mxu1 %v5380_v31  ;;  %v7525_v63 = vld [vmem:[#allocation4 + $0x6c] sm:$0xf0]  ;;  %v5352_v0 = vor.u32 %v7530_v60, %v5351_v59  ;;  %v5311_v2 = vld [vmem:[#allocation4 + $0x40] sm:$0xf]  ;;  %v7524_v4 = vld [vmem:[#allocation4 + $0x6c] sm:$0xf] }
  0x1f   :  { %518 = vmatpush.bf16.msrb.mxu0 %v5360_v46  ;;  %v5328_v1 = vor.u32 %v7525_v63, %v5327_v62  ;;  %v7521_v3 = vld [vmem:[#allocation4 + $0x4c] sm:$0xf0]  ;;  %v5337_v5 = vld [vmem:[#allocation4 + $0x78] sm:$0xf0]  ;;  %v5335_v6 = vld [vmem:[#allocation4 + $0x68] sm:$0xf] }
  0x20   :  { %557 = vmatpush.bf16.msrb.mxu3 %v5372_v48  ;;  %544 = vmatpush.bf16.msrb.mxu2 %v5368_v51  ;;  %v5340_v7 = vor.u32 %v7524_v4, %v5337_v5  ;;  %v7526_v8 = vld [vmem:[#allocation4 + $0x74] sm:$0xf0]  ;;  %v5295_v11 = vld [vmem:[#allocation4 + $0x20] sm:$0xf]  ;;  %v7523_v12 = vld [vmem:[#allocation4 + $0x64] sm:$0xf]  ;;  %v5312_v16 = vor.u32 %v7521_v3, %v5311_v2 }
  0x21   :  { %v5329_v13 = vld [vmem:[#allocation4 + $0x70] sm:$0xf0]  ;;  %v5336_v14 = vor.u32 %v7526_v8, %v5335_v6  ;;  %v5319_v15 = vld [vmem:[#allocation4 + $0x48] sm:$0xf]  ;;  %v7522_v17 = vld [vmem:[#allocation4 + $0x54] sm:$0xf0] }
  0x22   :  { %531 = vmatpush.bf16.msra.mxu1 %v5364_v45  ;;  %v7520_v18 = vld [vmem:[#allocation4 + $0x4c] sm:$0xf]  ;;  %v5321_v19 = vld [vmem:[#allocation4 + $0x58] sm:$0xf0]  ;;  %v7517_v20 = vld [vmem:[#allocation4 + $0x2c] sm:$0xf0]  ;;  %v5320_v27 = vor.u32 %v7522_v17, %v5319_v15 }
  0x23   :  { %519 = vmatpush.bf16.msrb.mxu0 %v5344_v57  ;;  %v5324_v21 = vor.u32 %v7520_v18, %v5321_v19  ;;  %v7519_v22 = vld [vmem:[#allocation4 + $0x44] sm:$0xf]  ;;  %v5313_v23 = vld [vmem:[#allocation4 + $0x50] sm:$0xf0]  ;;  %v7516_v25 = vld [vmem:[#allocation4 + $0x2c] sm:$0xf]  ;;  %v5296_v28 = vor.u32 %v7517_v20, %v5295_v11 }
  0x24   :  { %558 = vmatpush.bf16.msrb.mxu3 %v5356_v58  ;;  %545 = vmatpush.bf16.msrb.mxu2 %v5352_v0  ;;  %v5316_v24 = vor.u32 %v7519_v22, %v5313_v23  ;;  %v5305_v26 = vld [vmem:[#allocation4 + $0x38] sm:$0xf0]  ;;  %v5279_v29 = vld [vmem:[#allocation4] sm:$0xf]  ;;  %v5303_v30 = vld [vmem:[#allocation4 + $0x28] sm:$0xf] }
  0x25   :  { %5262 = vmatmul.msk.bf16.gmra.mxu0 %vm153_vm0, %v8501_v61  ;;  %5265 = vmatmul.msk.bf16.vlgmr.msrb.gmra.mxu1 %vm153_vm0, %v8477_v9  ;;  %v5332_v9 = vor.u32 %v7523_v12, %v5329_v13  ;;  %v7518_v31 = vld [vmem:[#allocation4 + $0x34] sm:$0xf0]  ;;  %v5308_v32 = vor.u32 %v7516_v25, %v5305_v26  ;;  %v7513_v33 = vld [vmem:[#allocation4 + $0xc] sm:$0xf0]  ;;  %v7512_v34 = vld [vmem:[#allocation4 + $0xc] sm:$0xf] }
  0x26   :  { %532 = vmatpush.bf16.msra.mxu1 %v5348_v56  ;;  %5270 = vmatmul.msk.bf16.gmra.mxu2 %vm153_vm0, %v8501_v61  ;;  %v5289_v35 = vld [vmem:[#allocation4 + $0x18] sm:$0xf0]  ;;  %v5304_v36 = vor.u32 %v7518_v31, %v5303_v30  ;;  %v5280_v37 = vor.u32 %v7513_v33, %v5279_v29  ;;  %v5287_v38 = vld [vmem:[#allocation4 + $0x8] sm:$0xf]  ;;  %v7514_v39 = vld [vmem:[#allocation4 + $0x14] sm:$0xf0] }
  0x27   :  { %5274 = vmatmul.msk.bf16.gmra.mxu3 %vm153_vm0, %v8501_v61  ;;  %520 = vmatpush.bf16.msrb.mxu0 %v5328_v1  ;;  %v5292_v40 = vor.u32 %v7512_v34, %v5289_v35  ;;  %v7505_v41 = vld [vmem:[%s8904_s0 + $0x10] sm:$0xff]  ;;  %v5288_v42 = vor.u32 %v7514_v39, %v5287_v38  ;;  %v7515_v43 = vld [vmem:[#allocation4 + $0x24] sm:$0xf]  ;;  %v103_v51 = vld [vmem:[%s8909_s5] sm:$0xf]  ;;  %s8375_s30 = smov 8  }
  0x28   :  { %559 = vmatpush.bf16.msrb.mxu3 %v5340_v7  ;;  %546 = vmatpush.bf16.msrb.mxu2 %v5336_v14  ;;  %v5297_v44 = vld [vmem:[#allocation4 + $0x30] sm:$0xf0]  ;;  %v7511_v46 = vld [vmem:[#allocation4 + $0x4] sm:$0xf]  ;;  %v8532_v52 = vperm.slane %v103_v51, 0  ;;  %v8556_v0 = vperm.slane %v103_v51, 2 }
  0x29   :  { %v5300_v45 = vor.u32 %v7515_v43, %v5297_v44  ;;  %v5281_v47 = vld [vmem:[#allocation4 + $0x10] sm:$0xf0]  ;;  %v314_v49 = vld [vmem:[%s8905_s1] sm:$0xff]  ;;  %v8558_v1 = vperm.slane %v103_v51, 3  ;;  %v8572_v11 = vperm.slane %v103_v51, 1  ;;  %vm5178_vm1 = vcmask 31744  }
  0x2a   :  { %533 = vmatpush.bf16.msra.mxu1 %v5332_v9  ;;  %v5284_v48 = vor.u32 %v7511_v46, %v5281_v47  ;;  %v316_v50 = vpack.c.bf16 %v314_v49, %v314_v49  ;;  %v5519_v23 = vld [vmem:[#allocation4 + $0xe0] sm:$0xf]  ;;  %v7571_v25 = vld [vmem:[#allocation4 + $0xe4] sm:$0xf]  ;;  %v5521_v29 = vld [vmem:[#allocation4 + $0xf0] sm:$0xf0] }
  0x2b   :  { %521 = vmatpush.bf16.msrb.mxu0 %v5312_v16  ;;  %v5527_v30 = vld [vmem:[#allocation4 + $0xe8] sm:$0xf]  ;;  %v7574_v31 = vld [vmem:[#allocation4 + $0xf4] sm:$0xf0]  ;;  %v5524_v33 = vor.u32 %v7571_v25, %v5521_v29  ;;  %v7572_v35 = vld [vmem:[#allocation4 + $0xec] sm:$0xf] }
  0x2c   :  { %560 = vmatpush.bf16.msrb.mxu3 %v5324_v21  ;;  %547 = vmatpush.bf16.msrb.mxu2 %v5320_v27  ;;  %v5528_v34 = vor.u32 %v7574_v31, %v5527_v30  ;;  %v5503_v39 = vld [vmem:[#allocation4 + $0xc0] sm:$0xf]  ;;  %v5505_v43 = vld [vmem:[#allocation4 + $0xd0] sm:$0xf0]  ;;  %v5511_v44 = vld [vmem:[#allocation4 + $0xc8] sm:$0xf] }
  0x2d   :  { %v7570_v46 = vld [vmem:[#allocation4 + $0xd4] sm:$0xf0]  ;;  %v7568_v47 = vld [vmem:[#allocation4 + $0xcc] sm:$0xf]  ;;  %v5513_v49 = vld [vmem:[#allocation4 + $0xd8] sm:$0xf0] }
  0x2e   :  { %534 = vmatpush.bf16.msra.mxu1 %v5316_v24  ;;  %v7573_v24 = vld [vmem:[#allocation4 + $0xec] sm:$0xf0]  ;;  %v5516_v51 = vor.u32 %v7568_v47, %v5513_v49  ;;  %v7566_v25 = vld [vmem:[#allocation4 + $0xb4] sm:$0xf0]  ;;  %v5455_v49 = vld [vmem:[#allocation4 + $0x60] sm:$0xf] }
  0x2f   :  { %522 = vmatpush.bf16.msrb.mxu0 %v5296_v28  ;;  %v5520_v28 = vor.u32 %v7573_v24, %v5519_v23  ;;  %v5489_v23 = vld [vmem:[#allocation4 + $0xb0] sm:$0xf0]  ;;  %v5495_v24 = vld [vmem:[#allocation4 + $0xa8] sm:$0xf] }
  0x30   :  { %561 = vmatpush.bf16.msrb.mxu3 %v5308_v32  ;;  %548 = vmatpush.bf16.msrb.mxu2 %v5304_v36  ;;  %v5529_v36 = vld [vmem:[#allocation4 + $0xf8] sm:$0xf0]  ;;  %v5496_v31 = vor.u32 %v7566_v25, %v5495_v24  ;;  %v7556_v24 = vld [vmem:[#allocation4 + $0x6c] sm:$0xf] }
  0x31   :  { %v5532_v38 = vor.u32 %v7572_v35, %v5529_v36  ;;  %v5471_v35 = vld [vmem:[#allocation4 + $0x80] sm:$0xf]  ;;  %v7561_v36 = vld [vmem:[#allocation4 + $0x8c] sm:$0xf0]  ;;  %v5465_v25 = vld [vmem:[#allocation4 + $0x78] sm:$0xf0] }
  0x32   :  { %535 = vmatpush.bf16.msra.mxu1 %v5300_v45 }
  0x33   :  { %523 = vmatpush.bf16.msrb.mxu0 %v5280_v37 }
  0x34   :  { %562 = vmatpush.bf16.msrb.mxu3 %v5292_v40  ;;  %549 = vmatpush.bf16.msrb.mxu2 %v5288_v42  ;;  %v7569_v40 = vld [vmem:[#allocation4 + $0xcc] sm:$0xf0]  ;;  %v7567_v42 = vld [vmem:[#allocation4 + $0xc4] sm:$0xf] }
  0x35   :  { %5263 = vmatmul.msk.bf16.gmra.mxu0 %vm153_vm0, %v7505_v41  ;;  %5266 = vmatmul.msk.bf16.gmra.mxu1 %vm153_vm0, %v8501_v61  ;;  %v5508_v45 = vor.u32 %v7567_v42, %v5505_v43  ;;  %v7562_v43 = vld [vmem:[#allocation4 + $0x94] sm:$0xf0] }
  0x36   :  { %5271 = vmatmul.msk.bf16.gmra.mxu2 %vm153_vm0, %v7505_v41  ;;  %536 = vmatpush.bf16.msra.mxu1 %v5284_v48  ;;  %v5512_v48 = vor.u32 %v7570_v46, %v5511_v44  ;;  %v7560_v44 = vld [vmem:[#allocation4 + $0x8c] sm:$0xf] }
  0x37   :  { %5275 = vmatmul.msk.bf16.gmra.mxu3 %vm153_vm0, %v7505_v41  ;;  %791 = vmatpush.bf16.msra.mxu0 %v5520_v28 }
  0x38   :  { %817 = vmatpush.bf16.msra.mxu2 %v5528_v34  ;;  %830 = vmatpush.bf16.msra.mxu3 %v5532_v38  ;;  %v7559_v38 = vld [vmem:[#allocation4 + $0x84] sm:$0xf] }
  0x3a   :  { %804 = vmatpush.bf16.msrb.mxu1 %v5524_v33 }
  0x3c   :  { %818 = vmatpush.bf16.msra.mxu2 %v5512_v48  ;;  %831 = vmatpush.bf16.msra.mxu3 %v5516_v51  ;;  %v7555_v51 = vld [vmem:[#allocation4 + $0x64] sm:$0xf] }
  0x3e   :  { %805 = vmatpush.bf16.msrb.mxu1 %v5508_v45  ;;  %v5481_v45 = vld [vmem:[#allocation4 + $0x98] sm:$0xf0] }
  0x3f   :  { %v5484_v48 = vor.u32 %v7560_v44, %v5481_v45  ;;  %v7549_v45 = vld [vmem:[#allocation4 + $0x2c] sm:$0xf0] }
  0x40   :  { %819 = vmatpush.bf16.msra.mxu2 %v5496_v31  ;;  %v5468_v31 = vor.u32 %v7556_v24, %v5465_v25  ;;  %v7545_v24 = vld [vmem:[#allocation4 + $0xc] sm:$0xf0] }
  0x45   :  { %5267 = vmatmul.msk.bf16.gmra.mxu1 %vm153_vm0, %v7505_v41  ;;  %524 = vmatmul.bf16.vlgmr.msrb.gmra.mxu0 %v316_v50  ;;  %v5504_v41 = vor.u32 %v7569_v40, %v5503_v39  ;;  %v5472_v39 = vor.u32 %v7561_v36, %v5471_v35  ;;  %v5473_v40 = vld [vmem:[#allocation4 + $0x90] sm:$0xf0]  ;;  %v5447_v36 = vld [vmem:[#allocation4 + $0x48] sm:$0xf] }
  0x46   :  { %5272 = vmatmul.msk.bf16.gmra.mxu2 %vm153_vm0, %v8482_v10  ;;  %v5476_v42 = vor.u32 %v7559_v38, %v5473_v40  ;;  %v5441_v35 = vld [vmem:[#allocation4 + $0x50] sm:$0xf0]  ;;  %v7554_v38 = vld [vmem:[#allocation4 + $0x54] sm:$0xf0] }
  0x47   :  { %5276 = vmatmul.msk.bf16.gmra.mxu3 %vm153_vm0, %v8482_v10  ;;  %792 = vmatpush.bf16.msra.mxu0 %v5504_v41  ;;  %v5479_v41 = vld [vmem:[#allocation4 + $0x88] sm:$0xf]  ;;  %v5448_v40 = vor.u32 %v7554_v38, %v5447_v36  ;;  %v7546_v36 = vld [vmem:[#allocation4 + $0x14] sm:$0xf0]  ;;  %v7544_v38 = vld [vmem:[#allocation4 + $0xc] sm:$0xf] }
  0x48   :  { %v5480_v47 = vor.u32 %v7562_v43, %v5479_v41  ;;  %v7552_v41 = vld [vmem:[#allocation4 + $0x4c] sm:$0xf]  ;;  %v5423_v43 = vld [vmem:[#allocation4 + $0x20] sm:$0xf] }
  0x4a   :  { %820 = vmatpush.bf16.msra.mxu2 %v5480_v47  ;;  %v7547_v47 = vld [vmem:[#allocation4 + $0x24] sm:$0xf] }
  0x55   :  { %5268 = vmatmul.msk.bf16.gmra.mxu1 %vm153_vm0, %v8482_v10 }
  0x56   :  { %550 = vmatmul.bf16.vlgmr.msrb.gmra.mxu2 %v316_v50 }
  0x57   :  { %563 = vmatmul.bf16.vlgmr.msrb.gmra.mxu3 %v316_v50 }
  0x65   :  { %537 = vmatmul.bf16.vlgmr.msra.gmra.mxu1 %v316_v50 }
  0x92   :  { %v8534_v53 = vpop.f32.mrf.mxu0  ;;  %v190_v54 = vpop.f32.mrf.mxu1 }
  0x93   :  { %v8537_v55 = vadd.f32 %v190_v54, %v8532_v52  ;;  %v5487_v54 = vld [vmem:[#allocation4 + $0xa0] sm:$0xf] }
  0x99   :  { %v8539_v56 = vpop.f32.mrf.mxu2 }
  0x9a   :  { %v8541_v57 = vpop.f32.mrf.mxu3  ;;  %v8543_v10 = vpop.f32.mrf.mxu0 }
  0x9b   :  { %v8545_v58 = vpop.f32.mrf.mxu1 }
  0xa1   :  { %v8547_v59 = vpop.f32.mrf.mxu2 }
  0xa2   :  { %v8549_v60 = vpop.f32.mrf.mxu3  ;;  %v180_v61 = vpop.f32.mrf.mxu0 }
  0xa3   :  { %v8552_v62 = vadd.f32 %v180_v61, %v8532_v52  ;;  %v8554_v63 = vpop.f32.mrf.mxu1  ;;  %v7565_v61 = vld [vmem:[#allocation4 + $0xac] sm:$0xf0] }
  0xa9   :  { %v238_v2 = vpop.f32.mrf.mxu2 }
  0xaa   :  { %v8561_v3 = vadd.f32 %v238_v2, %v8556_v0  ;;  %v267_v4 = vpop.f32.mrf.mxu3  ;;  %v8563_v5 = vpop.f32.mrf.mxu0  ;;  %v7563_v2 = vld [vmem:[#allocation4 + $0xa4] sm:$0xf] }
  0xab   :  { %v8566_v6 = vadd.f32 %v267_v4, %v8558_v1  ;;  %v8568_v7 = vpop.f32.mrf.mxu1  ;;  %v176_v4 = vadd.f32 %v8534_v53, %v8532_v52  ;;  %v5492_v30 = vor.u32 %v7563_v2, %v5489_v23  ;;  %v5497_v53 = vld [vmem:[#allocation4 + $0xb8] sm:$0xf0]  ;;  %v5457_v2 = vld [vmem:[#allocation4 + $0x70] sm:$0xf0] }
  0xad   :  { %806 = vmatpush.bf16.msrb.mxu1 %v5492_v30 }
  0xb1   :  { %v8570_v8 = vpop.f32.mrf.mxu2  ;;  %807 = vmatpush.bf16.msrb.mxu1 %v5476_v42  ;;  %v5449_v42 = vld [vmem:[#allocation4 + $0x58] sm:$0xf0] }
  0xb2   :  { %v8574_v12 = vpop.f32.mrf.mxu3  ;;  %v185_v13 = vpop.f32.mrf.mxu0  ;;  %v5452_v44 = vor.u32 %v7552_v41, %v5449_v42 }
  0xb3   :  { %v8577_v14 = vadd.f32 %v185_v13, %v8532_v52  ;;  %v209_v15 = vpop.f32.mrf.mxu1 }
  0xb4   :  { %v8580_v16 = vadd.f32 %v209_v15, %v8572_v11 }
  0xb9   :  { %v243_v9 = vpop.f32.mrf.mxu2 }
  0xba   :  { %v8583_v17 = vadd.f32 %v243_v9, %v8556_v0  ;;  %v272_v18 = vpop.f32.mrf.mxu3  ;;  %v8585_v19 = vpop.f32.mrf.mxu0 }
  0xbb   :  { %v8588_v20 = vadd.f32 %v272_v18, %v8558_v1  ;;  %v8590_v21 = vpop.f32.mrf.mxu1  ;;  %v5488_v18 = vor.u32 %v7565_v61, %v5487_v54 }
  0xbd   :  { %793 = vmatpush.bf16.msra.mxu0 %v5488_v18  ;;  %v5460_v18 = vor.u32 %v7555_v51, %v5457_v2  ;;  %v7550_v2 = vld [vmem:[#allocation4 + $0x34] sm:$0xf0] }
  0xbf   :  { %808 = vmatpush.bf16.msrb.mxu1 %v5460_v18  ;;  %v5433_v18 = vld [vmem:[#allocation4 + $0x38] sm:$0xf0] }
  0xc1   :  { %v8592_v22 = vpop.f32.mrf.mxu2  ;;  %794 = vmatpush.bf16.msra.mxu0 %v5472_v39 }
  0xc2   :  { %v8594_v26 = vpop.f32.mrf.mxu3  ;;  %v525_v27 = vpop.f32.mrf.mxu0 }
  0xc3   :  { %v214_v32 = vpop.f32.mrf.mxu1  ;;  %v568_v33 = vadd.f32 %v525_v27, %v176_v4  ;;  %v5463_v4 = vld [vmem:[#allocation4 + $0x68] sm:$0xf] }
  0xc4   :  { %v8597_v37 = vadd.f32 %v214_v32, %v8572_v11  ;;  %v7564_v32 = vld [vmem:[#allocation4 + $0xac] sm:$0xf] }
  0xc5   :  { %v5500_v34 = vor.u32 %v7564_v32, %v5497_v53  ;;  %v572_v46 = vmul.f32 0.5, %v568_v33  ;;  %v5439_v32 = vld [vmem:[#allocation4 + $0x40] sm:$0xf]  ;;  %v7553_v53 = vld [vmem:[#allocation4 + $0x4c] sm:$0xf0] }
  0xc6   :  { %v7551_v33 = vld [vmem:[#allocation4 + $0x44] sm:$0xf] }
  0xc7   :  { %832 = vmatpush.bf16.msra.mxu3 %v5500_v34  ;;  %8078 = vtanh.f32 %v572_v46  ;;  %v5440_v34 = vor.u32 %v7553_v53, %v5439_v32  ;;  %v5444_v39 = vor.u32 %v7551_v33, %v5441_v35  ;;  %v5425_v46 = vld [vmem:[#allocation4 + $0x30] sm:$0xf0] }
  0xc8   :  { %v5428_v51 = vor.u32 %v7547_v47, %v5425_v46  ;;  %v5409_v33 = vld [vmem:[#allocation4 + $0x10] sm:$0xf0] }
  0xc9   :  { %v248_v50 = vpop.f32.mrf.mxu2  ;;  %809 = vmatpush.bf16.msrb.mxu1 %v5444_v39 }
  0xca   :  { %v8602_v13 = vadd.f32 %v248_v50, %v8556_v0  ;;  %v277_v15 = vpop.f32.mrf.mxu3  ;;  %v527_v9 = vpop.f32.mrf.mxu0  ;;  %v7557_v50 = vld [vmem:[#allocation4 + $0x6c] sm:$0xf0] }
  0xcb   :  { %v8605_v28 = vadd.f32 %v277_v15, %v8558_v1  ;;  %v8607_v29 = vpop.f32.mrf.mxu1  ;;  %v5456_v61 = vor.u32 %v7557_v50, %v5455_v49  ;;  %v7558_v15 = vld [vmem:[#allocation4 + $0x74] sm:$0xf0]  ;;  %833 = vmatpush.bf16.msra.mxu3 %v5484_v48  ;;  %v263_v48 = vadd.f32 %v8541_v57, %v8558_v1  ;;  %v5424_v50 = vor.u32 %v7549_v45, %v5423_v43  ;;  %v7543_v57 = vld [vmem:[#allocation4 + $0x4] sm:$0xf] }
  0xcc   :  { %v5464_v23 = vor.u32 %v7558_v15, %v5463_v4  ;;  %v7548_v4 = vld [vmem:[#allocation4 + $0x2c] sm:$0xf]  ;;  %v5412_v39 = vor.u32 %v7543_v57, %v5409_v33 }
  0xcd   :  { %795 = vmatpush.bf16.msra.mxu0 %v5456_v61  ;;  %v5431_v61 = vld [vmem:[#allocation4 + $0x28] sm:$0xf]  ;;  %v8079_v25 = vpop.eup %8078  ;;  %v5436_v53 = vor.u32 %v7548_v4, %v5433_v18  ;;  %810 = vmatpush.bf16.msrb.mxu1 %v5428_v51 }
  0xce   :  { %821 = vmatpush.bf16.msra.mxu2 %v5464_v23  ;;  %v5407_v23 = vld [vmem:[#allocation4] sm:$0xf]  ;;  %v578_v41 = vmul.f32 0.5, %v8079_v25 }
  0xcf   :  { %834 = vmatpush.bf16.msra.mxu3 %v5468_v31  ;;  %v5408_v35 = vor.u32 %v7545_v24, %v5407_v23 }
  0xd0   :  { %v581_v47 = vadd.f32 0.5, %v578_v41  ;;  %v5649_v41 = vld [vmem:[#allocation4 + $0xf0] sm:$0xf0] }
  0xd1   :  { %v8609_v27 = vpop.f32.mrf.mxu2  ;;  %796 = vmatpush.bf16.msra.mxu0 %v5440_v34  ;;  %v5415_v34 = vld [vmem:[#allocation4 + $0x8] sm:$0xf]  ;;  %811 = vmatpush.bf16.msrb.mxu1 %v5412_v39  ;;  %v7603_v39 = vld [vmem:[#allocation4 + $0xe4] sm:$0xf] }
  0xd2   :  { %v8611_v54 = vpop.f32.mrf.mxu3  ;;  %822 = vmatpush.bf16.msra.mxu2 %v5448_v40  ;;  %v5417_v40 = vld [vmem:[#allocation4 + $0x18] sm:$0xf0]  ;;  %v5416_v42 = vor.u32 %v7546_v36, %v5415_v34  ;;  %v5647_v36 = vld [vmem:[#allocation4 + $0xe0] sm:$0xf] }
  0xd3   :  { %v219_v9 = vpop.f32.mrf.mxu1  ;;  %835 = vmatpush.bf16.msra.mxu3 %v5452_v44  ;;  %v5420_v43 = vor.u32 %v7544_v38, %v5417_v40  ;;  %v205_v44 = vadd.f32 %v8554_v63, %v8572_v11  ;;  %v315_v63 = vld [vmem:[%s8906_s2] sm:$0xff]  ;;  %v7605_v38 = vld [vmem:[#allocation4 + $0xec] sm:$0xf0] }
  0xd4   :  { %v8614_v30 = vadd.f32 %v219_v9, %v8572_v11  ;;  %v5432_v9 = vor.u32 %v7550_v2, %v5431_v61  ;;  %v234_v2 = vadd.f32 %v8539_v56, %v8556_v0  ;;  %v5648_v40 = vor.u32 %v7605_v38, %v5647_v36 }
  0xd5   :  { %797 = vmatpush.bf16.msra.mxu0 %v5424_v50 }
  0xd6   :  { %823 = vmatpush.bf16.msra.mxu2 %v5432_v9 }
  0xd7   :  { %836 = vmatpush.bf16.msra.mxu3 %v5436_v53 }
  0xd9   :  { %v551_v49 = vpop.f32.mrf.mxu2  ;;  %798 = vmatpush.bf16.msra.mxu0 %v5408_v35 }
  0xda   :  { %v564_v15 = vpop.f32.mrf.mxu3  ;;  %824 = vmatpush.bf16.msra.mxu2 %v5416_v42  ;;  %v5655_v42 = vld [vmem:[#allocation4 + $0xe8] sm:$0xf] }
  0xdb   :  { %v571_v31 = vadd.f32 %v564_v15, %v263_v48  ;;  %v8618_v32 = vpop.f32.mrf.mxu1  ;;  %837 = vmatpush.bf16.msra.mxu3 %v5420_v43  ;;  %v570_v15 = vadd.f32 %v551_v49, %v234_v2  ;;  %v7606_v43 = vld [vmem:[#allocation4 + $0xf4] sm:$0xf0] }
  0xdd   :  { %8080 = vtanh.f32 %v571_v31  ;;  %v574_v9 = vmul.f32 0.5, %v570_v15  ;;  %1067 = vmatpush.bf16.msrb.mxu0 %v5648_v40  ;;  %v5639_v15 = vld [vmem:[#allocation4 + $0xc8] sm:$0xf]  ;;  %v5625_v40 = vld [vmem:[#allocation4 + $0xb8] sm:$0xf0] }
  0xe1   :  { %v553_v45 = vpop.f32.mrf.mxu2 }
  0xe2   :  { %v566_v46 = vpop.f32.mrf.mxu3  ;;  %v5652_v45 = vor.u32 %v7603_v39, %v5649_v41  ;;  %v7596_v39 = vld [vmem:[#allocation4 + $0xac] sm:$0xf] }
  0xe3   :  { %v8081_v48 = vpop.eup %8080  ;;  %v538_v50 = vpop.f32.mrf.mxu1  ;;  %v5657_v46 = vld [vmem:[#allocation4 + $0xf8] sm:$0xf0]  ;;  %v5628_v41 = vor.u32 %v7596_v39, %v5625_v40  ;;  %v5569_v39 = vld [vmem:[#allocation4 + $0x50] sm:$0xf0]  ;;  %v5575_v40 = vld [vmem:[#allocation4 + $0x48] sm:$0xf] }
  0xe4   :  { %v586_v51 = vmul.f32 %v8081_v48, %v581_v47  ;;  %v569_v61 = vadd.f32 %v538_v50, %v205_v44  ;;  %v5656_v44 = vor.u32 %v7606_v43, %v5655_v42  ;;  %v7604_v47 = vld [vmem:[#allocation4 + $0xec] sm:$0xf]  ;;  %1080 = vmatpush.bf16.msra.mxu1 %v5652_v45  ;;  %v5631_v50 = vld [vmem:[#allocation4 + $0xc0] sm:$0xf]  ;;  %v7593_v43 = vld [vmem:[#allocation4 + $0x8c] sm:$0xf0] }
  0xe5   :  { %v5660_v48 = vor.u32 %v7604_v47, %v5657_v46  ;;  %v5599_v42 = vld [vmem:[#allocation4 + $0x80] sm:$0xf]  ;;  %v7591_v45 = vld [vmem:[#allocation4 + $0x84] sm:$0xf]  ;;  %v5601_v47 = vld [vmem:[#allocation4 + $0x90] sm:$0xf0] }
  0xe6   :  { %v573_v4 = vmul.f32 0.5, %v569_v61  ;;  %1093 = vmatpush.bf16.msrb.mxu2 %v5656_v44  ;;  %v7599_v61 = vld [vmem:[#allocation4 + $0xc4] sm:$0xf]  ;;  %v5600_v44 = vor.u32 %v7593_v43, %v5599_v42  ;;  %v5607_v46 = vld [vmem:[#allocation4 + $0x88] sm:$0xf] }
  0xe7   :  { %1106 = vmatpush.bf16.msrb.mxu3 %v5660_v48  ;;  %v7594_v48 = vld [vmem:[#allocation4 + $0x94] sm:$0xf0] }
  0xe8   :  { %8082 = vtanh.f32 %v573_v4  ;;  %v5633_v4 = vld [vmem:[#allocation4 + $0xd0] sm:$0xf0] }
  0xe9   :  { %8084 = vtanh.f32 %v574_v9  ;;  %v7602_v9 = vld [vmem:[#allocation4 + $0xd4] sm:$0xf0] }
  0xeb   :  { %v540_v18 = vpop.f32.mrf.mxu1 }
  0xec   :  { %v5636_v18 = vor.u32 %v7599_v61, %v5633_v4  ;;  %v7592_v61 = vld [vmem:[#allocation4 + $0x8c] sm:$0xf] }
  0xee   :  { %v8083_v23 = vpop.eup %8082  ;;  %1081 = vmatpush.bf16.msra.mxu1 %v5636_v18  ;;  %v7587_v18 = vld [vmem:[#allocation4 + $0x64] sm:$0xf] }
  0xef   :  { %v579_v24 = vmul.f32 0.5, %v8083_v23  ;;  %v8085_v53 = vpop.eup %8084  ;;  %v5640_v23 = vor.u32 %v7602_v9, %v5639_v15  ;;  %v5583_v15 = vld [vmem:[#allocation4 + $0x60] sm:$0xf]  ;;  %v7589_v9 = vld [vmem:[#allocation4 + $0x6c] sm:$0xf0] }
  0xf0   :  { %v580_v56 = vmul.f32 0.5, %v8085_v53  ;;  %v7597_v53 = vld [vmem:[#allocation4 + $0xac] sm:$0xf0] }
  0xf1   :  { %v582_v25 = vadd.f32 0.5, %v579_v24  ;;  %v7600_v24 = vld [vmem:[#allocation4 + $0xcc] sm:$0xf]  ;;  %1094 = vmatpush.bf16.msrb.mxu2 %v5640_v23  ;;  %v5584_v23 = vor.u32 %v7589_v9, %v5583_v15 }
  0xf2   :  { %v583_v33 = vadd.f32 0.5, %v580_v56  ;;  %v7595_v56 = vld [vmem:[#allocation4 + $0xa4] sm:$0xf] }
  0xf3   :  { %v585_v31 = vmul.f32 %v582_v25, %v315_v63  ;;  %v5641_v63 = vld [vmem:[#allocation4 + $0xd8] sm:$0xf0] }
  0xf4   :  { %v5644_v25 = vor.u32 %v7600_v24, %v5641_v63  ;;  %v5585_v24 = vld [vmem:[#allocation4 + $0x70] sm:$0xf0]  ;;  %v5591_v63 = vld [vmem:[#allocation4 + $0x68] sm:$0xf] }
  0xf5   :  { %v8627_v57 = vadd.f32 %v586_v51, %v585_v31  ;;  %v7601_v51 = vld [vmem:[#allocation4 + $0xcc] sm:$0xf0]  ;;  %v5615_v31 = vld [vmem:[#allocation4 + $0xa0] sm:$0xf] }
  0xf6   :  { %v5632_v2 = vor.u32 %v7601_v51, %v5631_v50  ;;  %1107 = vmatpush.bf16.msrb.mxu3 %v5644_v25  ;;  %v5604_v50 = vor.u32 %v7591_v45, %v5601_v47  ;;  %v5608_v51 = vor.u32 %v7594_v48, %v5607_v46  ;;  %v7590_v25 = vld [vmem:[#allocation4 + $0x74] sm:$0xf0]  ;;  %v7584_v45 = vld [vmem:[#allocation4 + $0x4c] sm:$0xf]  ;;  %v5551_v46 = vld [vmem:[#allocation4 + $0x20] sm:$0xf] }
  0xf7   :  { %8086 = vtanh.f32 %v8627_v57  ;;  %v7581_v48 = vld [vmem:[#allocation4 + $0x2c] sm:$0xf0] }
  0xf8   :  { %1068 = vmatpush.bf16.msrb.mxu0 %v5632_v2  ;;  %v5609_v2 = vld [vmem:[#allocation4 + $0x98] sm:$0xf0] }
  0xf9   :  { %v5612_v4 = vor.u32 %v7592_v61, %v5609_v2  ;;  %v5553_v61 = vld [vmem:[#allocation4 + $0x30] sm:$0xf0]  ;;  %v5559_v2 = vld [vmem:[#allocation4 + $0x28] sm:$0xf] }
  0xfa   :  { %1108 = vmatpush.bf16.msrb.mxu3 %v5628_v41  ;;  %v7586_v41 = vld [vmem:[#allocation4 + $0x54] sm:$0xf0] }
  0xfb   :  { %v5576_v43 = vor.u32 %v7586_v41, %v5575_v40  ;;  %v178_v40 = vadd.f32 %v8543_v10, %v8532_v52  ;;  %v207_v41 = vadd.f32 %v8568_v7, %v8572_v11 }
  0xfd   :  { %v8087_v49 = vpop.eup %8086 }
  0xfe   :  { %v589_v34 = vmul.f32 %v8087_v49, %v583_v33  ;;  %v5616_v33 = vor.u32 %v7597_v53, %v5615_v31  ;;  %v5617_v49 = vld [vmem:[#allocation4 + $0xb0] sm:$0xf0]  ;;  %1109 = vmatpush.bf16.msrb.mxu3 %v5612_v4  ;;  %v5588_v31 = vor.u32 %v7587_v18, %v5585_v24  ;;  %v5592_v53 = vor.u32 %v7590_v25, %v5591_v63  ;;  %v7582_v4 = vld [vmem:[#allocation4 + $0x34] sm:$0xf0]  ;;  %v7580_v18 = vld [vmem:[#allocation4 + $0x2c] sm:$0xf] }
  0xff   :  { %v5620_v36 = vor.u32 %v7595_v56, %v5617_v49  ;;  %v7588_v56 = vld [vmem:[#allocation4 + $0x6c] sm:$0xf]  ;;  %v5560_v9 = vor.u32 %v7582_v4, %v5559_v2  ;;  %v5535_v24 = vld [vmem:[#allocation4] sm:$0xf]  ;;  %v7577_v25 = vld [vmem:[#allocation4 + $0xc] sm:$0xf0] }
 0x100   :  { %v590_v35 = vpack.c.bf16 %v589_v34, %v589_v34  ;;  %v5623_v34 = vld [vmem:[#allocation4 + $0xa8] sm:$0xf]  ;;  %1069 = vmatpush.bf16.msrb.mxu0 %v5616_v33  ;;  %v5593_v33 = vld [vmem:[#allocation4 + $0x78] sm:$0xf0] }
 0x101   :  { %1082 = vmatpush.bf16.msra.mxu1 %v5620_v36  ;;  %v5596_v49 = vor.u32 %v7588_v56, %v5593_v33  ;;  %v7583_v36 = vld [vmem:[#allocation4 + $0x44] sm:$0xf]  ;;  %v5536_v56 = vor.u32 %v7577_v25, %v5535_v24  ;;  %v5543_v33 = vld [vmem:[#allocation4 + $0x8] sm:$0xf] }
 0x102   :  { %591 = vst [vmem:[#allocation2] sm:$0xf] %v590_v35  ;;  %799 = vmatmul.bf16.vlgmr.msra.gmra.mxu0 %v590_v35  ;;  %812 = vmatmul.bf16.vlgmr.msrb.gmra.mxu1 %v590_v35  ;;  %v5572_v42 = vor.u32 %v7583_v36, %v5569_v39 }
 0x103   :  { %825 = vmatmul.bf16.vlgmr.msra.gmra.mxu2 %v590_v35  ;;  %838 = vmatmul.bf16.vlgmr.msra.gmra.mxu3 %v590_v35  ;;  %v7598_v35 = vld [vmem:[#allocation4 + $0xb4] sm:$0xf0] }
 0x104   :  { %v5624_v38 = vor.u32 %v7598_v35, %v5623_v34  ;;  %1070 = vmatpush.bf16.msrb.mxu0 %v5600_v44  ;;  %v5567_v34 = vld [vmem:[#allocation4 + $0x40] sm:$0xf]  ;;  %v7585_v35 = vld [vmem:[#allocation4 + $0x4c] sm:$0xf0]  ;;  %1110 = vmatpush.bf16.msrb.mxu3 %v5596_v49  ;;  %v5577_v44 = vld [vmem:[#allocation4 + $0x58] sm:$0xf0] }
 0x105   :  { %1083 = vmatpush.bf16.msra.mxu1 %v5604_v50  ;;  %v5580_v47 = vor.u32 %v7584_v45, %v5577_v44  ;;  %v7579_v50 = vld [vmem:[#allocation4 + $0x24] sm:$0xf]  ;;  %v7578_v49 = vld [vmem:[#allocation4 + $0x14] sm:$0xf0] }
 0x106   :  { %1095 = vmatpush.bf16.msrb.mxu2 %v5624_v38  ;;  %v5568_v38 = vor.u32 %v7585_v35, %v5567_v34  ;;  %v5556_v15 = vor.u32 %v7579_v50, %v5553_v61  ;;  %v7576_v34 = vld [vmem:[#allocation4 + $0xc] sm:$0xf]  ;;  %v5544_v36 = vor.u32 %v7578_v49, %v5543_v33  ;;  %v265_v50 = vadd.f32 %v8549_v60, %v8558_v1 }
 0x108   :  { %1071 = vmatpush.bf16.msrb.mxu0 %v5584_v23  ;;  %1111 = vmatpush.bf16.msrb.mxu3 %v5580_v47  ;;  %v5561_v23 = vld [vmem:[#allocation4 + $0x38] sm:$0xf0] }
 0x109   :  { %1084 = vmatpush.bf16.msra.mxu1 %v5588_v31  ;;  %v5564_v63 = vor.u32 %v7580_v18, %v5561_v23  ;;  %v7575_v31 = vld [vmem:[#allocation4 + $0x4] sm:$0xf] }
 0x10a   :  { %1096 = vmatpush.bf16.msrb.mxu2 %v5608_v51  ;;  %v5552_v51 = vor.u32 %v7581_v48, %v5551_v46  ;;  %v236_v48 = vadd.f32 %v8547_v59, %v8556_v0 }
 0x10c   :  { %1072 = vmatpush.bf16.msrb.mxu0 %v5568_v38  ;;  %v5545_v38 = vld [vmem:[#allocation4 + $0x18] sm:$0xf0]  ;;  %1112 = vmatpush.bf16.msrb.mxu3 %v5564_v63 }
 0x10d   :  { %1085 = vmatpush.bf16.msra.mxu1 %v5572_v42  ;;  %v5548_v39 = vor.u32 %v7576_v34, %v5545_v38 }
 0x10e   :  { %1097 = vmatpush.bf16.msrb.mxu2 %v5592_v53  ;;  %v5537_v53 = vld [vmem:[#allocation4 + $0x10] sm:$0xf0] }
 0x10f   :  { %v5540_v35 = vor.u32 %v7575_v31, %v5537_v53 }
 0x110   :  { %1073 = vmatpush.bf16.msrb.mxu0 %v5552_v51  ;;  %1113 = vmatpush.bf16.msrb.mxu3 %v5548_v39 }
 0x111   :  { %1086 = vmatpush.bf16.msra.mxu1 %v5556_v15 }
 0x112   :  { %1098 = vmatpush.bf16.msrb.mxu2 %v5576_v43 }
 0x114   :  { %1074 = vmatpush.bf16.msrb.mxu0 %v5536_v56 }
 0x115   :  { %1087 = vmatpush.bf16.msra.mxu1 %v5540_v35 }
 0x116   :  { %1099 = vmatpush.bf16.msrb.mxu2 %v5560_v9 }
 0x11a   :  { %1100 = vmatpush.bf16.msrb.mxu2 %v5544_v36 }
 0x17f   :  { %v800_v42 = vpop.f32.mrf.mxu0  ;;  %v813_v43 = vpop.f32.mrf.mxu1 }
 0x180   :  { %v843_v45 = vadd.f32 %v800_v42, %v178_v40  ;;  %v844_v44 = vadd.f32 %v813_v43, %v207_v41  ;;  %v5775_v40 = vld [vmem:[#allocation4 + $0xe0] sm:$0xf]  ;;  %v7637_v41 = vld [vmem:[#allocation4 + $0xec] sm:$0xf0]  ;;  %v7635_v42 = vld [vmem:[#allocation4 + $0xe4] sm:$0xf] }
 0x181   :  { %v5777_v43 = vld [vmem:[#allocation4 + $0xf0] sm:$0xf0] }
 0x182   :  { %v847_v47 = vmul.f32 0.5, %v843_v45  ;;  %v848_v46 = vmul.f32 0.5, %v844_v44  ;;  %v5783_v45 = vld [vmem:[#allocation4 + $0xe8] sm:$0xf]  ;;  %v7638_v44 = vld [vmem:[#allocation4 + $0xf4] sm:$0xf0] }
 0x184   :  { %8088 = vtanh.f32 %v847_v47  ;;  %v5780_v47 = vor.u32 %v7635_v42, %v5777_v43  ;;  %v7625_v42 = vld [vmem:[#allocation4 + $0x8c] sm:$0xf0] }
 0x185   :  { %8090 = vtanh.f32 %v848_v46  ;;  %v5784_v46 = vor.u32 %v7638_v44, %v5783_v45  ;;  %v5729_v45 = vld [vmem:[#allocation4 + $0x90] sm:$0xf0]  ;;  %v5735_v44 = vld [vmem:[#allocation4 + $0x88] sm:$0xf] }
 0x186   :  { %v826_v51 = vpop.f32.mrf.mxu2  ;;  %v839_v10 = vpop.f32.mrf.mxu3  ;;  %1356 = vmatpush.bf16.msrb.mxu1 %v5780_v47  ;;  %v7626_v47 = vld [vmem:[#allocation4 + $0x94] sm:$0xf0] }
 0x187   :  { %v845_v61 = vadd.f32 %v826_v51, %v236_v48  ;;  %v846_v2 = vadd.f32 %v839_v10, %v265_v50  ;;  %v802_v7 = vpop.f32.mrf.mxu0  ;;  %v815_v4 = vpop.f32.mrf.mxu1  ;;  %v7636_v48 = vld [vmem:[#allocation4 + $0xec] sm:$0xf]  ;;  %v5785_v50 = vld [vmem:[#allocation4 + $0xf8] sm:$0xf0]  ;;  %1369 = vmatpush.bf16.msra.mxu2 %v5784_v46  ;;  %v5759_v10 = vld [vmem:[#allocation4 + $0xc0] sm:$0xf] }
 0x188   :  { %v5788_v51 = vor.u32 %v7636_v48, %v5785_v50  ;;  %v5761_v4 = vld [vmem:[#allocation4 + $0xd0] sm:$0xf0]  ;;  %v5736_v48 = vor.u32 %v7626_v47, %v5735_v44  ;;  %v7624_v50 = vld [vmem:[#allocation4 + $0x8c] sm:$0xf]  ;;  %v5687_v47 = vld [vmem:[#allocation4 + $0x28] sm:$0xf] }
 0x189   :  { %v849_v15 = vmul.f32 0.5, %v845_v61  ;;  %8092 = vtanh.f32 %v846_v2  ;;  %v7633_v61 = vld [vmem:[#allocation4 + $0xcc] sm:$0xf0]  ;;  %v7631_v2 = vld [vmem:[#allocation4 + $0xc4] sm:$0xf] }
 0x18a   :  { %v8089_v9 = vpop.eup %8088  ;;  %1382 = vmatpush.bf16.msra.mxu3 %v5788_v51  ;;  %v5760_v7 = vor.u32 %v7633_v61, %v5759_v10  ;;  %v5737_v51 = vld [vmem:[#allocation4 + $0x98] sm:$0xf0]  ;;  %v5711_v61 = vld [vmem:[#allocation4 + $0x60] sm:$0xf]  ;;  %v5681_v44 = vld [vmem:[#allocation4 + $0x30] sm:$0xf0] }
 0x18b   :  { %v8091_v18 = vpop.eup %8090  ;;  %v853_v23 = vmul.f32 0.5, %v8089_v9  ;;  %8094 = vtanh.f32 %v849_v15  ;;  %v5767_v15 = vld [vmem:[#allocation4 + $0xc8] sm:$0xf]  ;;  %v7634_v9 = vld [vmem:[#allocation4 + $0xd4] sm:$0xf0]  ;;  %v5740_v10 = vor.u32 %v7624_v50, %v5737_v51 }
 0x18c   :  { %v854_v24 = vmul.f32 0.5, %v8091_v18  ;;  %v5764_v18 = vor.u32 %v7631_v2, %v5761_v4  ;;  %v7621_v2 = vld [vmem:[#allocation4 + $0x6c] sm:$0xf0]  ;;  %v7612_v51 = vld [vmem:[#allocation4 + $0x2c] sm:$0xf] }
 0x18d   :  { %v856_v63 = vadd.f32 0.5, %v853_v23  ;;  %v5768_v23 = vor.u32 %v7634_v9, %v5767_v15  ;;  %v5712_v4 = vor.u32 %v7621_v2, %v5711_v61  ;;  %v5713_v15 = vld [vmem:[#allocation4 + $0x70] sm:$0xf0]  ;;  %v5719_v9 = vld [vmem:[#allocation4 + $0x68] sm:$0xf] }
 0x18e   :  { %v857_v25 = vadd.f32 0.5, %v854_v24  ;;  %v828_v59 = vpop.f32.mrf.mxu2  ;;  %v841_v31 = vpop.f32.mrf.mxu3  ;;  %v7632_v24 = vld [vmem:[#allocation4 + $0xcc] sm:$0xf]  ;;  %1357 = vmatpush.bf16.msrb.mxu1 %v5764_v18  ;;  %v7622_v18 = vld [vmem:[#allocation4 + $0x74] sm:$0xf0] }
 0x18f   :  { %v8093_v53 = vpop.eup %8092  ;;  %1370 = vmatpush.bf16.msra.mxu2 %v5768_v23  ;;  %v5743_v59 = vld [vmem:[#allocation4 + $0xa0] sm:$0xf]  ;;  %v7629_v31 = vld [vmem:[#allocation4 + $0xac] sm:$0xf0] }
 0x190   :  { %v860_v60 = vmul.f32 %v857_v25, %v8627_v57  ;;  %v861_v56 = vmul.f32 %v8093_v53, %v856_v63  ;;  %v5776_v57 = vor.u32 %v7637_v41, %v5775_v40  ;;  %v5769_v63 = vld [vmem:[#allocation4 + $0xd8] sm:$0xf0]  ;;  %v7627_v53 = vld [vmem:[#allocation4 + $0xa4] sm:$0xf]  ;;  %v5727_v41 = vld [vmem:[#allocation4 + $0x80] sm:$0xf] }
 0x191   :  { %v8095_v33 = vpop.eup %8094  ;;  %v5772_v25 = vor.u32 %v7632_v24, %v5769_v63  ;;  %v5728_v43 = vor.u32 %v7625_v42, %v5727_v41  ;;  %v5720_v24 = vor.u32 %v7622_v18, %v5719_v9  ;;  %v7620_v63 = vld [vmem:[#allocation4 + $0x6c] sm:$0xf]  ;;  %v5679_v42 = vld [vmem:[#allocation4 + $0x20] sm:$0xf]  ;;  %v5671_v18 = vld [vmem:[#allocation4 + $0x8] sm:$0xf] }
 0x192   :  { %v8639_v49 = vadd.f32 %v861_v56, %v860_v60  ;;  %v855_v34 = vmul.f32 0.5, %v8095_v33  ;;  %1343 = vmatpush.bf16.msra.mxu0 %v5776_v57  ;;  %v5744_v60 = vor.u32 %v7629_v31, %v5743_v59  ;;  %v5745_v56 = vld [vmem:[#allocation4 + $0xb0] sm:$0xf0]  ;;  %v5751_v33 = vld [vmem:[#allocation4 + $0xa8] sm:$0xf] }
 0x193   :  { %1383 = vmatpush.bf16.msra.mxu3 %v5772_v25  ;;  %v7623_v57 = vld [vmem:[#allocation4 + $0x84] sm:$0xf]  ;;  %v5721_v25 = vld [vmem:[#allocation4 + $0x78] sm:$0xf0]  ;;  %v5695_v31 = vld [vmem:[#allocation4 + $0x40] sm:$0xf] }
 0x194   :  { %8096 = vtanh.f32 %v8639_v49  ;;  %v858_v35 = vadd.f32 0.5, %v855_v34  ;;  %v7630_v34 = vld [vmem:[#allocation4 + $0xb4] sm:$0xf0]  ;;  %v5732_v46 = vor.u32 %v7623_v57, %v5729_v45  ;;  %v5724_v59 = vor.u32 %v7620_v63, %v5721_v25  ;;  %v7613_v57 = vld [vmem:[#allocation4 + $0x2c] sm:$0xf0] }
 0x195   :  { %v5680_v45 = vor.u32 %v7613_v57, %v5679_v42  ;;  %v5663_v61 = vld [vmem:[#allocation4] sm:$0xf] }
 0x196   :  { %1344 = vmatpush.bf16.msra.mxu0 %v5760_v7  ;;  %v7619_v7 = vld [vmem:[#allocation4 + $0x64] sm:$0xf] }
 0x197   :  { %v5716_v23 = vor.u32 %v7619_v7, %v5713_v15  ;;  %v7609_v7 = vld [vmem:[#allocation4 + $0xc] sm:$0xf0]  ;;  %v5665_v15 = vld [vmem:[#allocation4 + $0x10] sm:$0xf0] }
 0x198   :  { %v5664_v9 = vor.u32 %v7609_v7, %v5663_v61 }
 0x19a   :  { %v8097_v36 = vpop.eup %8096  ;;  %1345 = vmatpush.bf16.msra.mxu0 %v5744_v60  ;;  %v7615_v60 = vld [vmem:[#allocation4 + $0x44] sm:$0xf] }
 0x19b   :  { %v864_v38 = vmul.f32 %v8097_v36, %v858_v35  ;;  %v5748_v35 = vor.u32 %v7627_v53, %v5745_v56  ;;  %v5752_v36 = vor.u32 %v7630_v34, %v5751_v33  ;;  %v7617_v53 = vld [vmem:[#allocation4 + $0x4c] sm:$0xf0]  ;;  %v5697_v33 = vld [vmem:[#allocation4 + $0x50] sm:$0xf0]  ;;  %v5703_v34 = vld [vmem:[#allocation4 + $0x48] sm:$0xf] }
 0x19c   :  { %v5696_v56 = vor.u32 %v7617_v53, %v5695_v31 }
 0x19d   :  { %v865_v39 = vpack.c.bf16 %v864_v38, %v864_v38  ;;  %v7628_v38 = vld [vmem:[#allocation4 + $0xac] sm:$0xf]  ;;  %1358 = vmatpush.bf16.msrb.mxu1 %v5748_v35  ;;  %1371 = vmatpush.bf16.msra.mxu2 %v5752_v36  ;;  %v7618_v35 = vld [vmem:[#allocation4 + $0x54] sm:$0xf0]  ;;  %v5700_v36 = vor.u32 %v7615_v60, %v5697_v33 }
 0x19e   :  { %1346 = vmatpush.bf16.msra.mxu0 %v5728_v43  ;;  %v7611_v43 = vld [vmem:[#allocation4 + $0x24] sm:$0xf] }
 0x19f   :  { %867 = vst [vmem:[#allocation2 + $0x4] sm:$0xf] %v865_v39  ;;  %1075 = vmatmul.bf16.vlgmr.msrb.gmra.mxu0 %v865_v39  ;;  %1088 = vmatmul.bf16.vlgmr.msra.gmra.mxu1 %v865_v39 }
 0x1a0   :  { %1101 = vmatmul.bf16.vlgmr.msrb.gmra.mxu2 %v865_v39  ;;  %1114 = vmatmul.bf16.vlgmr.msrb.gmra.mxu3 %v865_v39  ;;  %v5753_v39 = vld [vmem:[#allocation4 + $0xb8] sm:$0xf0] }
 0x1a1   :  { %v5756_v40 = vor.u32 %v7628_v38, %v5753_v39  ;;  %1359 = vmatpush.bf16.msrb.mxu1 %v5732_v46  ;;  %1372 = vmatpush.bf16.msra.mxu2 %v5736_v48  ;;  %v5704_v38 = vor.u32 %v7618_v35, %v5703_v34  ;;  %v7616_v39 = vld [vmem:[#allocation4 + $0x4c] sm:$0xf]  ;;  %v7614_v46 = vld [vmem:[#allocation4 + $0x34] sm:$0xf0]  ;;  %v5684_v48 = vor.u32 %v7611_v43, %v5681_v44 }
 0x1a2   :  { %1347 = vmatpush.bf16.msra.mxu0 %v5712_v4  ;;  %v5688_v50 = vor.u32 %v7614_v46, %v5687_v47  ;;  %v7607_v4 = vld [vmem:[#allocation4 + $0x4] sm:$0xf] }
 0x1a3   :  { %1384 = vmatpush.bf16.msra.mxu3 %v5756_v40  ;;  %v5705_v40 = vld [vmem:[#allocation4 + $0x58] sm:$0xf0]  ;;  %v5668_v63 = vor.u32 %v7607_v4, %v5665_v15 }
 0x1a4   :  { %v5708_v41 = vor.u32 %v7616_v39, %v5705_v40 }
 0x1a5   :  { %1360 = vmatpush.bf16.msrb.mxu1 %v5716_v23  ;;  %1373 = vmatpush.bf16.msra.mxu2 %v5720_v24  ;;  %v7610_v23 = vld [vmem:[#allocation4 + $0x14] sm:$0xf0]  ;;  %v7608_v24 = vld [vmem:[#allocation4 + $0xc] sm:$0xf] }
 0x1a6   :  { %1348 = vmatpush.bf16.msra.mxu0 %v5696_v56  ;;  %v5672_v25 = vor.u32 %v7610_v23, %v5671_v18  ;;  %v7669_v18 = vld [vmem:[#allocation4 + $0xec] sm:$0xf0]  ;;  %v7667_v23 = vld [vmem:[#allocation4 + $0xe4] sm:$0xf] }
 0x1a7   :  { %1385 = vmatpush.bf16.msra.mxu3 %v5740_v10  ;;  %v5689_v10 = vld [vmem:[#allocation4 + $0x38] sm:$0xf0] }
 0x1a8   :  { %v5692_v2 = vor.u32 %v7612_v51, %v5689_v10 }
 0x1a9   :  { %1361 = vmatpush.bf16.msrb.mxu1 %v5700_v36  ;;  %1374 = vmatpush.bf16.msra.mxu2 %v5704_v38 }
 0x1aa   :  { %1349 = vmatpush.bf16.msra.mxu0 %v5680_v45 }
 0x1ab   :  { %1386 = vmatpush.bf16.msra.mxu3 %v5724_v59  ;;  %v5673_v59 = vld [vmem:[#allocation4 + $0x18] sm:$0xf0] }
 0x1ac   :  { %v5676_v31 = vor.u32 %v7608_v24, %v5673_v59  ;;  %v5905_v24 = vld [vmem:[#allocation4 + $0xf0] sm:$0xf0] }
 0x1ad   :  { %1362 = vmatpush.bf16.msrb.mxu1 %v5684_v48  ;;  %1375 = vmatpush.bf16.msra.mxu2 %v5688_v50  ;;  %v5908_v59 = vor.u32 %v7667_v23, %v5905_v24  ;;  %v5863_v23 = vld [vmem:[#allocation4 + $0x88] sm:$0xf] }
 0x1ae   :  { %1350 = vmatpush.bf16.msra.mxu0 %v5664_v9  ;;  %v5903_v9 = vld [vmem:[#allocation4 + $0xe0] sm:$0xf] }
 0x1af   :  { %1387 = vmatpush.bf16.msra.mxu3 %v5708_v41 }
 0x1b1   :  { %1363 = vmatpush.bf16.msrb.mxu1 %v5668_v63  ;;  %1376 = vmatpush.bf16.msra.mxu2 %v5672_v25  ;;  %v5911_v63 = vld [vmem:[#allocation4 + $0xe8] sm:$0xf]  ;;  %v7670_v25 = vld [vmem:[#allocation4 + $0xf4] sm:$0xf0] }
 0x1b3   :  { %1388 = vmatpush.bf16.msra.mxu3 %v5692_v2 }
 0x1b5   :  { %1632 = vmatpush.bf16.msra.mxu1 %v5908_v59  ;;  %v5865_v59 = vld [vmem:[#allocation4 + $0x98] sm:$0xf0] }
 0x1b7   :  { %1389 = vmatpush.bf16.msra.mxu3 %v5676_v31  ;;  %v5912_v31 = vor.u32 %v7670_v25, %v5911_v63  ;;  %v7656_v25 = vld [vmem:[#allocation4 + $0x8c] sm:$0xf] }
 0x1b9   :  { %1645 = vmatpush.bf16.msrb.mxu2 %v5912_v31  ;;  %v5868_v31 = vor.u32 %v7656_v25, %v5865_v59  ;;  %v7641_v59 = vld [vmem:[#allocation4 + $0xc] sm:$0xf0] }
 0x21c   :  { %v1076_v53 = vpop.f32.mrf.mxu0  ;;  %v1089_v60 = vpop.f32.mrf.mxu1 }
 0x21d   :  { %v1119_v56 = vadd.f32 %v1076_v53, %v8552_v62  ;;  %v1120_v33 = vadd.f32 %v1089_v60, %v8580_v16  ;;  %v7668_v53 = vld [vmem:[#allocation4 + $0xec] sm:$0xf]  ;;  %v5913_v60 = vld [vmem:[#allocation4 + $0xf8] sm:$0xf0] }
 0x21f   :  { %v1123_v34 = vmul.f32 0.5, %v1119_v56  ;;  %v1124_v35 = vmul.f32 0.5, %v1120_v33  ;;  %v5916_v56 = vor.u32 %v7668_v53, %v5913_v60  ;;  %v5887_v33 = vld [vmem:[#allocation4 + $0xc0] sm:$0xf]  ;;  %v7653_v60 = vld [vmem:[#allocation4 + $0x6c] sm:$0xf0] }
 0x220   :  { %v5839_v53 = vld [vmem:[#allocation4 + $0x60] sm:$0xf] }
 0x221   :  { %8098 = vtanh.f32 %v1123_v34  ;;  %v7665_v34 = vld [vmem:[#allocation4 + $0xcc] sm:$0xf0]  ;;  %1658 = vmatpush.bf16.msrb.mxu3 %v5916_v56  ;;  %v7651_v56 = vld [vmem:[#allocation4 + $0x64] sm:$0xf] }
 0x222   :  { %8100 = vtanh.f32 %v1124_v35  ;;  %v7663_v35 = vld [vmem:[#allocation4 + $0xc4] sm:$0xf] }
 0x223   :  { %v1102_v36 = vpop.f32.mrf.mxu2  ;;  %v1115_v38 = vpop.f32.mrf.mxu3 }
 0x224   :  { %v1121_v39 = vadd.f32 %v1102_v36, %v8561_v3  ;;  %v1122_v40 = vadd.f32 %v1115_v38, %v8566_v6  ;;  %v1078_v41 = vpop.f32.mrf.mxu0  ;;  %v1091_v42 = vpop.f32.mrf.mxu1  ;;  %v5888_v36 = vor.u32 %v7665_v34, %v5887_v33  ;;  %v5889_v38 = vld [vmem:[#allocation4 + $0xd0] sm:$0xf0]  ;;  %v5840_v33 = vor.u32 %v7653_v60, %v5839_v53 }
 0x225   :  { %v5892_v41 = vor.u32 %v7663_v35, %v5889_v38  ;;  %v5841_v34 = vld [vmem:[#allocation4 + $0x70] sm:$0xf0]  ;;  %v5847_v35 = vld [vmem:[#allocation4 + $0x68] sm:$0xf] }
 0x226   :  { %v1125_v57 = vmul.f32 0.5, %v1121_v39  ;;  %8102 = vtanh.f32 %v1122_v40  ;;  %v5895_v39 = vld [vmem:[#allocation4 + $0xc8] sm:$0xf]  ;;  %v7666_v40 = vld [vmem:[#allocation4 + $0xd4] sm:$0xf0]  ;;  %v5844_v38 = vor.u32 %v7651_v56, %v5841_v34 }
 0x227   :  { %v8099_v43 = vpop.eup %8098  ;;  %v5896_v42 = vor.u32 %v7666_v40, %v5895_v39  ;;  %1633 = vmatpush.bf16.msra.mxu1 %v5892_v41  ;;  %v7652_v40 = vld [vmem:[#allocation4 + $0x6c] sm:$0xf]  ;;  %v5849_v41 = vld [vmem:[#allocation4 + $0x78] sm:$0xf0]  ;;  %v5793_v53 = vld [vmem:[#allocation4 + $0x10] sm:$0xf0] }
 0x228   :  { %v8101_v45 = vpop.eup %8100  ;;  %v1129_v44 = vmul.f32 0.5, %v8099_v43  ;;  %8104 = vtanh.f32 %v1125_v57  ;;  %v7664_v57 = vld [vmem:[#allocation4 + $0xcc] sm:$0xf]  ;;  %v5897_v43 = vld [vmem:[#allocation4 + $0xd8] sm:$0xf0] }
 0x229   :  { %v1130_v62 = vmul.f32 0.5, %v8101_v45  ;;  %v5900_v45 = vor.u32 %v7664_v57, %v5897_v43  ;;  %1646 = vmatpush.bf16.msrb.mxu2 %v5896_v42  ;;  %v5852_v42 = vor.u32 %v7652_v40, %v5849_v41  ;;  %v5823_v57 = vld [vmem:[#allocation4 + $0x40] sm:$0xf]  ;;  %v7649_v43 = vld [vmem:[#allocation4 + $0x4c] sm:$0xf0]  ;;  %v183_v40 = vadd.f32 %v8563_v5, %v8532_v52 }
 0x22a   :  { %v1132_v16 = vadd.f32 0.5, %v1129_v44  ;;  %v5871_v44 = vld [vmem:[#allocation4 + $0xa0] sm:$0xf]  ;;  %v5799_v56 = vld [vmem:[#allocation4 + $0x8] sm:$0xf]  ;;  %v212_v41 = vadd.f32 %v8590_v21, %v8572_v11 }
 0x22b   :  { %v1133_v47 = vadd.f32 0.5, %v1130_v62  ;;  %v1104_v46 = vpop.f32.mrf.mxu2  ;;  %v1117_v48 = vpop.f32.mrf.mxu3  ;;  %v7661_v62 = vld [vmem:[#allocation4 + $0xac] sm:$0xf0]  ;;  %1659 = vmatpush.bf16.msrb.mxu3 %v5900_v45  ;;  %v7647_v45 = vld [vmem:[#allocation4 + $0x44] sm:$0xf] }
 0x22c   :  { %v8103_v50 = vpop.eup %8102  ;;  %v5873_v46 = vld [vmem:[#allocation4 + $0xb0] sm:$0xf0]  ;;  %v5879_v48 = vld [vmem:[#allocation4 + $0xa8] sm:$0xf]  ;;  %v7640_v34 = vld [vmem:[#allocation4 + $0xc] sm:$0xf] }
 0x22d   :  { %v1136_v51 = vmul.f32 %v1133_v47, %v8639_v49  ;;  %v1137_v10 = vmul.f32 %v8103_v50, %v1132_v16  ;;  %v5904_v49 = vor.u32 %v7669_v18, %v5903_v9  ;;  %v7659_v16 = vld [vmem:[#allocation4 + $0xa4] sm:$0xf]  ;;  %v5872_v47 = vor.u32 %v7661_v62, %v5871_v44  ;;  %v7662_v50 = vld [vmem:[#allocation4 + $0xb4] sm:$0xf0]  ;;  %v5857_v18 = vld [vmem:[#allocation4 + $0x90] sm:$0xf0] }
 0x22e   :  { %v8105_v3 = vpop.eup %8104  ;;  %v5824_v44 = vor.u32 %v7649_v43, %v5823_v57  ;;  %v5825_v62 = vld [vmem:[#allocation4 + $0x50] sm:$0xf0] }
 0x22f   :  { %v8647_v61 = vadd.f32 %v1137_v10, %v1136_v51  ;;  %v1131_v6 = vmul.f32 0.5, %v8105_v3  ;;  %1619 = vmatpush.bf16.msrb.mxu0 %v5904_v49  ;;  %v5876_v51 = vor.u32 %v7659_v16, %v5873_v46  ;;  %v5880_v10 = vor.u32 %v7662_v50, %v5879_v48  ;;  %v7660_v3 = vld [vmem:[#allocation4 + $0xac] sm:$0xf]  ;;  %v7658_v49 = vld [vmem:[#allocation4 + $0x94] sm:$0xf0] }
 0x230   :  { %v5864_v63 = vor.u32 %v7658_v49, %v5863_v23  ;;  %v5831_v16 = vld [vmem:[#allocation4 + $0x48] sm:$0xf]  ;;  %v5828_v46 = vor.u32 %v7647_v45, %v5825_v62  ;;  %v7648_v50 = vld [vmem:[#allocation4 + $0x4c] sm:$0xf] }
 0x231   :  { %8106 = vtanh.f32 %v8647_v61  ;;  %v1134_v2 = vadd.f32 0.5, %v1131_v6  ;;  %v5881_v6 = vld [vmem:[#allocation4 + $0xb8] sm:$0xf0]  ;;  %1634 = vmatpush.bf16.msra.mxu1 %v5876_v51  ;;  %1647 = vmatpush.bf16.msrb.mxu2 %v5880_v10  ;;  %v7644_v49 = vld [vmem:[#allocation4 + $0x2c] sm:$0xf] }
 0x232   :  { %v5833_v51 = vld [vmem:[#allocation4 + $0x58] sm:$0xf0] }
 0x233   :  { %1620 = vmatpush.bf16.msrb.mxu0 %v5888_v36  ;;  %v7654_v36 = vld [vmem:[#allocation4 + $0x74] sm:$0xf0]  ;;  %v5836_v10 = vor.u32 %v7648_v50, %v5833_v51 }
 0x234   :  { %v5848_v39 = vor.u32 %v7654_v36, %v5847_v35 }
 0x235   :  { %1648 = vmatpush.bf16.msrb.mxu2 %v5864_v63  ;;  %v5791_v63 = vld [vmem:[#allocation4] sm:$0xf] }
 0x236   :  { %v5792_v60 = vor.u32 %v7641_v59, %v5791_v63 }
 0x237   :  { %v8107_v7 = vpop.eup %8106  ;;  %1621 = vmatpush.bf16.msrb.mxu0 %v5872_v47  ;;  %v7650_v47 = vld [vmem:[#allocation4 + $0x54] sm:$0xf0] }
 0x238   :  { %v1140_v4 = vmul.f32 %v8107_v7, %v1134_v2  ;;  %v5884_v2 = vor.u32 %v7660_v3, %v5881_v6  ;;  %v5855_v7 = vld [vmem:[#allocation4 + $0x80] sm:$0xf]  ;;  %v5832_v48 = vor.u32 %v7650_v47, %v5831_v16  ;;  %v7645_v6 = vld [vmem:[#allocation4 + $0x2c] sm:$0xf0]  ;;  %v241_v16 = vadd.f32 %v8570_v8, %v8556_v0 }
 0x239   :  { %1649 = vmatpush.bf16.msrb.mxu2 %v5848_v39  ;;  %v5807_v3 = vld [vmem:[#allocation4 + $0x20] sm:$0xf]  ;;  %v270_v47 = vadd.f32 %v8574_v12, %v8558_v1 }
 0x23a   :  { %v1141_v15 = vpack.c.bf16 %v1140_v4, %v1140_v4  ;;  %v7657_v4 = vld [vmem:[#allocation4 + $0x8c] sm:$0xf0]  ;;  %1660 = vmatpush.bf16.msrb.mxu3 %v5884_v2  ;;  %v7643_v2 = vld [vmem:[#allocation4 + $0x24] sm:$0xf] }
 0x23b   :  { %v5856_v9 = vor.u32 %v7657_v4, %v5855_v7  ;;  %v5808_v7 = vor.u32 %v7645_v6, %v5807_v3  ;;  %v5809_v4 = vld [vmem:[#allocation4 + $0x30] sm:$0xf0] }
 0x23c   :  { %1143 = vst [vmem:[#allocation2 + $0x8] sm:$0xf] %v1141_v15  ;;  %1351 = vmatmul.bf16.vlgmr.msra.gmra.mxu0 %v1141_v15  ;;  %1364 = vmatmul.bf16.vlgmr.msrb.gmra.mxu1 %v1141_v15 }
 0x23d   :  { %1377 = vmatmul.bf16.vlgmr.msra.gmra.mxu2 %v1141_v15  ;;  %1390 = vmatmul.bf16.vlgmr.msra.gmra.mxu3 %v1141_v15  ;;  %v7655_v15 = vld [vmem:[#allocation4 + $0x84] sm:$0xf] }
 0x23e   :  { %v5860_v24 = vor.u32 %v7655_v15, %v5857_v18  ;;  %1622 = vmatpush.bf16.msrb.mxu0 %v5856_v9  ;;  %1661 = vmatpush.bf16.msrb.mxu3 %v5868_v31  ;;  %v5815_v15 = vld [vmem:[#allocation4 + $0x28] sm:$0xf]  ;;  %v7646_v9 = vld [vmem:[#allocation4 + $0x34] sm:$0xf0]  ;;  %v5812_v18 = vor.u32 %v7643_v2, %v5809_v4  ;;  %v7639_v31 = vld [vmem:[#allocation4 + $0x4] sm:$0xf] }
 0x23f   :  { %1650 = vmatpush.bf16.msrb.mxu2 %v5832_v48  ;;  %v5816_v23 = vor.u32 %v7646_v9, %v5815_v15  ;;  %v5796_v35 = vor.u32 %v7639_v31, %v5793_v53 }
 0x240   :  { %1635 = vmatpush.bf16.msra.mxu1 %v5860_v24  ;;  %v5817_v24 = vld [vmem:[#allocation4 + $0x38] sm:$0xf0] }
 0x241   :  { %v5820_v25 = vor.u32 %v7644_v49, %v5817_v24 }
 0x242   :  { %1623 = vmatpush.bf16.msrb.mxu0 %v5840_v33  ;;  %1662 = vmatpush.bf16.msrb.mxu3 %v5852_v42  ;;  %v7642_v33 = vld [vmem:[#allocation4 + $0x14] sm:$0xf0] }
 0x243   :  { %1651 = vmatpush.bf16.msrb.mxu2 %v5816_v23  ;;  %v5800_v36 = vor.u32 %v7642_v33, %v5799_v56  ;;  %v7701_v56 = vld [vmem:[#allocation4 + $0xec] sm:$0xf0]  ;;  %v7699_v33 = vld [vmem:[#allocation4 + $0xe4] sm:$0xf] }
 0x244   :  { %1636 = vmatpush.bf16.msra.mxu1 %v5844_v38  ;;  %v5801_v38 = vld [vmem:[#allocation4 + $0x18] sm:$0xf0] }
 0x245   :  { %v5804_v39 = vor.u32 %v7640_v34, %v5801_v38  ;;  %v6033_v34 = vld [vmem:[#allocation4 + $0xf0] sm:$0xf0] }
 0x246   :  { %1624 = vmatpush.bf16.msrb.mxu0 %v5824_v44  ;;  %1663 = vmatpush.bf16.msrb.mxu3 %v5836_v10  ;;  %v6036_v38 = vor.u32 %v7699_v33, %v6033_v34  ;;  %v7688_v33 = vld [vmem:[#allocation4 + $0x8c] sm:$0xf] }
 0x247   :  { %1652 = vmatpush.bf16.msrb.mxu2 %v5800_v36  ;;  %v7702_v36 = vld [vmem:[#allocation4 + $0xf4] sm:$0xf0] }
 0x248   :  { %1637 = vmatpush.bf16.msra.mxu1 %v5828_v46 }
 0x24a   :  { %1625 = vmatpush.bf16.msrb.mxu0 %v5808_v7  ;;  %1664 = vmatpush.bf16.msrb.mxu3 %v5820_v25 }
 0x24c   :  { %1638 = vmatpush.bf16.msra.mxu1 %v5812_v18 }
 0x24e   :  { %1626 = vmatpush.bf16.msrb.mxu0 %v5792_v60  ;;  %1665 = vmatpush.bf16.msrb.mxu3 %v5804_v39  ;;  %v6031_v60 = vld [vmem:[#allocation4 + $0xe0] sm:$0xf] }
 0x250   :  { %1639 = vmatpush.bf16.msra.mxu1 %v5796_v35  ;;  %v6039_v35 = vld [vmem:[#allocation4 + $0xe8] sm:$0xf] }
 0x251   :  { %v6040_v39 = vor.u32 %v7702_v36, %v6039_v35  ;;  %v5967_v35 = vld [vmem:[#allocation4 + $0x60] sm:$0xf]  ;;  %v7685_v36 = vld [vmem:[#allocation4 + $0x6c] sm:$0xf0] }
 0x253   :  { %1921 = vmatpush.bf16.msra.mxu2 %v6040_v39  ;;  %v5968_v39 = vor.u32 %v7685_v36, %v5967_v35  ;;  %v7672_v35 = vld [vmem:[#allocation4 + $0xc] sm:$0xf] }
 0x254   :  { %1908 = vmatpush.bf16.msrb.mxu1 %v6036_v38  ;;  %v7683_v38 = vld [vmem:[#allocation4 + $0x64] sm:$0xf] }
 0x2b9   :  { %v1352_v42 = vpop.f32.mrf.mxu0  ;;  %v1365_v57 = vpop.f32.mrf.mxu1 }
 0x2ba   :  { %v1395_v43 = vadd.f32 %v1352_v42, %v183_v40  ;;  %v1396_v45 = vadd.f32 %v1365_v57, %v212_v41  ;;  %v7700_v40 = vld [vmem:[#allocation4 + $0xec] sm:$0xf]  ;;  %v6041_v41 = vld [vmem:[#allocation4 + $0xf8] sm:$0xf0]  ;;  %v6015_v57 = vld [vmem:[#allocation4 + $0xc0] sm:$0xf] }
 0x2bb   :  { %v6044_v42 = vor.u32 %v7700_v40, %v6041_v41  ;;  %v5969_v40 = vld [vmem:[#allocation4 + $0x70] sm:$0xf0]  ;;  %v5975_v41 = vld [vmem:[#allocation4 + $0x68] sm:$0xf] }
 0x2bc   :  { %v1399_v44 = vmul.f32 0.5, %v1395_v43  ;;  %v1400_v62 = vmul.f32 0.5, %v1396_v45  ;;  %v7697_v43 = vld [vmem:[#allocation4 + $0xcc] sm:$0xf0]  ;;  %v7695_v45 = vld [vmem:[#allocation4 + $0xc4] sm:$0xf] }
 0x2bd   :  { %1934 = vmatpush.bf16.msra.mxu3 %v6044_v42  ;;  %v7686_v42 = vld [vmem:[#allocation4 + $0x74] sm:$0xf0] }
 0x2be   :  { %8108 = vtanh.f32 %v1399_v44  ;;  %v6016_v44 = vor.u32 %v7697_v43, %v6015_v57  ;;  %v5972_v57 = vor.u32 %v7683_v38, %v5969_v40  ;;  %v5976_v43 = vor.u32 %v7686_v42, %v5975_v41 }
 0x2bf   :  { %8110 = vtanh.f32 %v1400_v62  ;;  %v6017_v62 = vld [vmem:[#allocation4 + $0xd0] sm:$0xf0] }
 0x2c0   :  { %v1378_v46 = vpop.f32.mrf.mxu2  ;;  %v1391_v5 = vpop.f32.mrf.mxu3 }
 0x2c1   :  { %v1397_v48 = vadd.f32 %v1378_v46, %v241_v16  ;;  %v1398_v50 = vadd.f32 %v1391_v5, %v270_v47  ;;  %v1354_v21 = vpop.f32.mrf.mxu0  ;;  %v1367_v51 = vpop.f32.mrf.mxu1  ;;  %v6023_v16 = vld [vmem:[#allocation4 + $0xc8] sm:$0xf]  ;;  %v7698_v47 = vld [vmem:[#allocation4 + $0xd4] sm:$0xf0]  ;;  %v6020_v46 = vor.u32 %v7695_v45, %v6017_v62  ;;  %v7684_v45 = vld [vmem:[#allocation4 + $0x6c] sm:$0xf] }
 0x2c2   :  { %v6024_v5 = vor.u32 %v7698_v47, %v6023_v16  ;;  %v5999_v51 = vld [vmem:[#allocation4 + $0xa0] sm:$0xf]  ;;  %v7681_v47 = vld [vmem:[#allocation4 + $0x4c] sm:$0xf0] }
 0x2c3   :  { %v1401_v10 = vmul.f32 0.5, %v1397_v48  ;;  %8112 = vtanh.f32 %v1398_v50  ;;  %v7696_v48 = vld [vmem:[#allocation4 + $0xcc] sm:$0xf]  ;;  %v6025_v50 = vld [vmem:[#allocation4 + $0xd8] sm:$0xf0]  ;;  %1909 = vmatpush.bf16.msrb.mxu1 %v6020_v46 }
 0x2c4   :  { %v8109_v3 = vpop.eup %8108  ;;  %v6028_v21 = vor.u32 %v7696_v48, %v6025_v50  ;;  %1922 = vmatpush.bf16.msra.mxu2 %v6024_v5  ;;  %v5951_v16 = vld [vmem:[#allocation4 + $0x40] sm:$0xf]  ;;  %v7679_v46 = vld [vmem:[#allocation4 + $0x44] sm:$0xf]  ;;  %v5953_v48 = vld [vmem:[#allocation4 + $0x50] sm:$0xf0] }
 0x2c5   :  { %v8111_v6 = vpop.eup %8110  ;;  %v1405_v2 = vmul.f32 0.5, %v8109_v3  ;;  %8114 = vtanh.f32 %v1401_v10  ;;  %v7693_v10 = vld [vmem:[#allocation4 + $0xac] sm:$0xf0]  ;;  %v7691_v3 = vld [vmem:[#allocation4 + $0xa4] sm:$0xf]  ;;  %v5952_v5 = vor.u32 %v7681_v47, %v5951_v16 }
 0x2c6   :  { %v1406_v7 = vmul.f32 0.5, %v8111_v6  ;;  %1935 = vmatpush.bf16.msra.mxu3 %v6028_v21  ;;  %v6000_v6 = vor.u32 %v7693_v10, %v5999_v51  ;;  %v5959_v50 = vld [vmem:[#allocation4 + $0x48] sm:$0xf]  ;;  %v7682_v21 = vld [vmem:[#allocation4 + $0x54] sm:$0xf0]  ;;  %v5956_v51 = vor.u32 %v7679_v46, %v5953_v48 }
 0x2c7   :  { %v1408_v4 = vadd.f32 0.5, %v1405_v2  ;;  %v6001_v2 = vld [vmem:[#allocation4 + $0xb0] sm:$0xf0]  ;;  %v5960_v10 = vor.u32 %v7682_v21, %v5959_v50 }
 0x2c8   :  { %v1409_v15 = vadd.f32 0.5, %v1406_v7  ;;  %v1380_v8 = vpop.f32.mrf.mxu2  ;;  %v1393_v9 = vpop.f32.mrf.mxu3  ;;  %v6007_v7 = vld [vmem:[#allocation4 + $0xa8] sm:$0xf] }
 0x2c9   :  { %v8113_v18 = vpop.eup %8112  ;;  %v7692_v9 = vld [vmem:[#allocation4 + $0xac] sm:$0xf] }
 0x2ca   :  { %v1412_v12 = vmul.f32 %v1409_v15, %v8647_v61  ;;  %v1413_v23 = vmul.f32 %v8113_v18, %v1408_v4  ;;  %v6032_v61 = vor.u32 %v7701_v56, %v6031_v60  ;;  %v7694_v4 = vld [vmem:[#allocation4 + $0xb4] sm:$0xf0]  ;;  %v6004_v15 = vor.u32 %v7691_v3, %v6001_v2  ;;  %v6009_v18 = vld [vmem:[#allocation4 + $0xb8] sm:$0xf0]  ;;  %v7680_v3 = vld [vmem:[#allocation4 + $0x4c] sm:$0xf] }
 0x2cb   :  { %v8115_v49 = vpop.eup %8114  ;;  %v6008_v8 = vor.u32 %v7694_v4, %v6007_v7  ;;  %v5935_v7 = vld [vmem:[#allocation4 + $0x20] sm:$0xf]  ;;  %v7677_v4 = vld [vmem:[#allocation4 + $0x2c] sm:$0xf0] }
 0x2cc   :  { %v8659_v24 = vadd.f32 %v1413_v23, %v1412_v12  ;;  %v1407_v63 = vmul.f32 0.5, %v8115_v49  ;;  %1895 = vmatpush.bf16.msra.mxu0 %v6032_v61  ;;  %v6012_v12 = vor.u32 %v7692_v9, %v6009_v18  ;;  %1910 = vmatpush.bf16.msrb.mxu1 %v6004_v15  ;;  %v5983_v23 = vld [vmem:[#allocation4 + $0x80] sm:$0xf]  ;;  %v7689_v49 = vld [vmem:[#allocation4 + $0x8c] sm:$0xf0] }
 0x2cd   :  { %1923 = vmatpush.bf16.msra.mxu2 %v6008_v8  ;;  %v5993_v61 = vld [vmem:[#allocation4 + $0x98] sm:$0xf0]  ;;  %v7675_v15 = vld [vmem:[#allocation4 + $0x24] sm:$0xf]  ;;  %v5936_v8 = vor.u32 %v7677_v4, %v5935_v7  ;;  %v5937_v9 = vld [vmem:[#allocation4 + $0x30] sm:$0xf0] }
 0x2ce   :  { %8116 = vtanh.f32 %v8659_v24  ;;  %v1410_v25 = vadd.f32 0.5, %v1407_v63  ;;  %v7687_v63 = vld [vmem:[#allocation4 + $0x84] sm:$0xf]  ;;  %1936 = vmatpush.bf16.msra.mxu3 %v6012_v12  ;;  %v5996_v34 = vor.u32 %v7688_v33, %v5993_v61  ;;  %v5943_v18 = vld [vmem:[#allocation4 + $0x28] sm:$0xf] }
 0x2cf   :  { %v7678_v12 = vld [vmem:[#allocation4 + $0x34] sm:$0xf0]  ;;  %v5927_v61 = vld [vmem:[#allocation4 + $0x8] sm:$0xf] }
 0x2d0   :  { %1896 = vmatpush.bf16.msra.mxu0 %v6016_v44  ;;  %v5977_v44 = vld [vmem:[#allocation4 + $0x78] sm:$0xf0] }
 0x2d1   :  { %v5980_v62 = vor.u32 %v7684_v45, %v5977_v44 }
 0x2d2   :  { %1937 = vmatpush.bf16.msra.mxu3 %v5996_v34  ;;  %v7674_v34 = vld [vmem:[#allocation4 + $0x14] sm:$0xf0] }
 0x2d3   :  { %v5928_v38 = vor.u32 %v7674_v34, %v5927_v61  ;;  %v6169_v61 = vld [vmem:[#allocation4 + $0xf8] sm:$0xf0] }
 0x2d4   :  { %v8117_v59 = vpop.eup %8116  ;;  %1897 = vmatpush.bf16.msra.mxu0 %v6000_v6  ;;  %v5961_v6 = vld [vmem:[#allocation4 + $0x58] sm:$0xf0] }
 0x2d5   :  { %v1416_v31 = vmul.f32 %v8117_v59, %v1410_v25  ;;  %v5984_v25 = vor.u32 %v7689_v49, %v5983_v23  ;;  %v5985_v59 = vld [vmem:[#allocation4 + $0x90] sm:$0xf0]  ;;  %v5964_v2 = vor.u32 %v7680_v3, %v5961_v6  ;;  %v5940_v23 = vor.u32 %v7675_v15, %v5937_v9 }
 0x2d6   :  { %v5988_v60 = vor.u32 %v7687_v63, %v5985_v59  ;;  %1938 = vmatpush.bf16.msra.mxu3 %v5980_v62  ;;  %v5944_v49 = vor.u32 %v7678_v12, %v5943_v18  ;;  %v7676_v63 = vld [vmem:[#allocation4 + $0x2c] sm:$0xf]  ;;  %v5919_v59 = vld [vmem:[#allocation4] sm:$0xf] }
 0x2d7   :  { %v1417_v53 = vpack.c.bf16 %v1416_v31, %v1416_v31  ;;  %v5991_v31 = vld [vmem:[#allocation4 + $0x88] sm:$0xf] }
 0x2d8   :  { %1898 = vmatpush.bf16.msra.mxu0 %v5984_v25  ;;  %1911 = vmatpush.bf16.msrb.mxu1 %v5988_v60  ;;  %v5945_v25 = vld [vmem:[#allocation4 + $0x38] sm:$0xf0]  ;;  %v7671_v60 = vld [vmem:[#allocation4 + $0x4] sm:$0xf] }
 0x2d9   :  { %1419 = vst [vmem:[#allocation2 + $0xc] sm:$0xf] %v1417_v53  ;;  %1627 = vmatmul.bf16.vlgmr.msrb.gmra.mxu0 %v1417_v53  ;;  %1640 = vmatmul.bf16.vlgmr.msra.gmra.mxu1 %v1417_v53 }
 0x2da   :  { %1653 = vmatmul.bf16.vlgmr.msrb.gmra.mxu2 %v1417_v53  ;;  %1666 = vmatmul.bf16.vlgmr.msrb.gmra.mxu3 %v1417_v53  ;;  %v7690_v53 = vld [vmem:[#allocation4 + $0x94] sm:$0xf0] }
 0x2db   :  { %v5992_v56 = vor.u32 %v7690_v53, %v5991_v31  ;;  %1939 = vmatpush.bf16.msra.mxu3 %v5964_v2  ;;  %v5948_v31 = vor.u32 %v7676_v63, %v5945_v25  ;;  %v7673_v53 = vld [vmem:[#allocation4 + $0xc] sm:$0xf0]  ;;  %v7731_v25 = vld [vmem:[#allocation4 + $0xe4] sm:$0xf] }
 0x2dc   :  { %1899 = vmatpush.bf16.msra.mxu0 %v5968_v39  ;;  %1912 = vmatpush.bf16.msrb.mxu1 %v5972_v57  ;;  %v5920_v33 = vor.u32 %v7673_v53, %v5919_v59  ;;  %v5929_v39 = vld [vmem:[#allocation4 + $0x18] sm:$0xf0]  ;;  %v7733_v63 = vld [vmem:[#allocation4 + $0xec] sm:$0xf0]  ;;  %v6161_v59 = vld [vmem:[#allocation4 + $0xf0] sm:$0xf0] }
 0x2dd   :  { %1924 = vmatpush.bf16.msra.mxu2 %v5992_v56  ;;  %v5921_v56 = vld [vmem:[#allocation4 + $0x10] sm:$0xf0]  ;;  %v5932_v40 = vor.u32 %v7672_v35, %v5929_v39  ;;  %v7734_v53 = vld [vmem:[#allocation4 + $0xf4] sm:$0xf0]  ;;  %v6143_v35 = vld [vmem:[#allocation4 + $0xc0] sm:$0xf] }
 0x2de   :  { %v5924_v36 = vor.u32 %v7671_v60, %v5921_v56  ;;  %v6164_v60 = vor.u32 %v7731_v25, %v6161_v59  ;;  %v7717_v25 = vld [vmem:[#allocation4 + $0x6c] sm:$0xf0] }
 0x2df   :  { %1940 = vmatpush.bf16.msra.mxu3 %v5948_v31  ;;  %v6167_v31 = vld [vmem:[#allocation4 + $0xe8] sm:$0xf] }
 0x2e0   :  { %1900 = vmatpush.bf16.msra.mxu0 %v5952_v5  ;;  %1913 = vmatpush.bf16.msrb.mxu1 %v5956_v51  ;;  %v6168_v56 = vor.u32 %v7734_v53, %v6167_v31  ;;  %v6097_v31 = vld [vmem:[#allocation4 + $0x70] sm:$0xf0]  ;;  %v6103_v53 = vld [vmem:[#allocation4 + $0x68] sm:$0xf] }
 0x2e1   :  { %1925 = vmatpush.bf16.msra.mxu2 %v5976_v43 }
 0x2e3   :  { %1941 = vmatpush.bf16.msra.mxu3 %v5932_v40  ;;  %v6145_v40 = vld [vmem:[#allocation4 + $0xd0] sm:$0xf0] }
 0x2e4   :  { %1901 = vmatpush.bf16.msra.mxu0 %v5936_v8  ;;  %1914 = vmatpush.bf16.msrb.mxu1 %v5940_v23 }
 0x2e5   :  { %1926 = vmatpush.bf16.msra.mxu2 %v5960_v10 }
 0x2e8   :  { %1902 = vmatpush.bf16.msra.mxu0 %v5920_v33  ;;  %1915 = vmatpush.bf16.msrb.mxu1 %v5924_v36  ;;  %v7732_v33 = vld [vmem:[#allocation4 + $0xec] sm:$0xf]  ;;  %v7729_v36 = vld [vmem:[#allocation4 + $0xcc] sm:$0xf0] }
 0x2e9   :  { %1927 = vmatpush.bf16.msra.mxu2 %v5944_v49  ;;  %v6159_v49 = vld [vmem:[#allocation4 + $0xe0] sm:$0xf]  ;;  %v6172_v34 = vor.u32 %v7732_v33, %v6169_v61  ;;  %v6144_v39 = vor.u32 %v7729_v36, %v6143_v35  ;;  %v7716_v61 = vld [vmem:[#allocation4 + $0x6c] sm:$0xf] }
 0x2ea   :  { %v6079_v36 = vld [vmem:[#allocation4 + $0x40] sm:$0xf] }
 0x2eb   :  { %2210 = vmatpush.bf16.msrb.mxu3 %v6172_v34  ;;  %v6105_v34 = vld [vmem:[#allocation4 + $0x78] sm:$0xf0] }
 0x2ec   :  { %2184 = vmatpush.bf16.msra.mxu1 %v6164_v60  ;;  %v7718_v60 = vld [vmem:[#allocation4 + $0x74] sm:$0xf0]  ;;  %v6108_v35 = vor.u32 %v7716_v61, %v6105_v34  ;;  %v7763_v61 = vld [vmem:[#allocation4 + $0xe4] sm:$0xf] }
 0x2ed   :  { %1928 = vmatpush.bf16.msra.mxu2 %v5928_v38  ;;  %v7727_v38 = vld [vmem:[#allocation4 + $0xc4] sm:$0xf]  ;;  %v6104_v33 = vor.u32 %v7718_v60, %v6103_v53 }
 0x2f1   :  { %2197 = vmatpush.bf16.msrb.mxu2 %v6168_v56 }
 0x356   :  { %v1628_v41 = vpop.f32.mrf.mxu0  ;;  %v1641_v42 = vpop.f32.mrf.mxu1 }
 0x357   :  { %v1671_v57 = vadd.f32 %v1628_v41, %v8577_v14  ;;  %v1672_v43 = vadd.f32 %v1641_v42, %v8597_v37  ;;  %v6151_v41 = vld [vmem:[#allocation4 + $0xc8] sm:$0xf]  ;;  %v7730_v42 = vld [vmem:[#allocation4 + $0xd4] sm:$0xf0] }
 0x359   :  { %v1675_v45 = vmul.f32 0.5, %v1671_v57  ;;  %v1676_v44 = vmul.f32 0.5, %v1672_v43  ;;  %v6148_v57 = vor.u32 %v7727_v38, %v6145_v40  ;;  %v6152_v43 = vor.u32 %v7730_v42, %v6151_v41  ;;  %v7713_v38 = vld [vmem:[#allocation4 + $0x4c] sm:$0xf0]  ;;  %v6081_v41 = vld [vmem:[#allocation4 + $0x50] sm:$0xf0] }
 0x35a   :  { %v6080_v40 = vor.u32 %v7713_v38, %v6079_v36  ;;  %v6087_v42 = vld [vmem:[#allocation4 + $0x48] sm:$0xf]  ;;  %v7766_v38 = vld [vmem:[#allocation4 + $0xf4] sm:$0xf0] }
 0x35b   :  { %8118 = vtanh.f32 %v1675_v45  ;;  %v7728_v45 = vld [vmem:[#allocation4 + $0xcc] sm:$0xf]  ;;  %2185 = vmatpush.bf16.msra.mxu1 %v6148_v57  ;;  %2198 = vmatpush.bf16.msrb.mxu2 %v6152_v43  ;;  %v7714_v57 = vld [vmem:[#allocation4 + $0x54] sm:$0xf0]  ;;  %v6295_v36 = vld [vmem:[#allocation4 + $0xe8] sm:$0xf] }
 0x35c   :  { %8120 = vtanh.f32 %v1676_v44  ;;  %v6153_v44 = vld [vmem:[#allocation4 + $0xd8] sm:$0xf0] }
 0x35d   :  { %v1654_v62 = vpop.f32.mrf.mxu2  ;;  %v1667_v16 = vpop.f32.mrf.mxu3 }
 0x35e   :  { %v1673_v47 = vadd.f32 %v1654_v62, %v8583_v17  ;;  %v1674_v46 = vadd.f32 %v1667_v16, %v8588_v20  ;;  %v1630_v5 = vpop.f32.mrf.mxu0  ;;  %v1643_v48 = vpop.f32.mrf.mxu1  ;;  %v6156_v62 = vor.u32 %v7728_v45, %v6153_v44  ;;  %v6127_v16 = vld [vmem:[#allocation4 + $0xa0] sm:$0xf]  ;;  %v6088_v45 = vor.u32 %v7714_v57, %v6087_v42  ;;  %v7712_v44 = vld [vmem:[#allocation4 + $0x4c] sm:$0xf]  ;;  %v6297_v57 = vld [vmem:[#allocation4 + $0xf8] sm:$0xf0] }
 0x35f   :  { %v6129_v48 = vld [vmem:[#allocation4 + $0xb0] sm:$0xf0]  ;;  %v6296_v42 = vor.u32 %v7766_v38, %v6295_v36 }
 0x360   :  { %v1677_v50 = vmul.f32 0.5, %v1673_v47  ;;  %8122 = vtanh.f32 %v1674_v46  ;;  %v7725_v47 = vld [vmem:[#allocation4 + $0xac] sm:$0xf0]  ;;  %v7723_v46 = vld [vmem:[#allocation4 + $0xa4] sm:$0xf]  ;;  %2211 = vmatpush.bf16.msrb.mxu3 %v6156_v62 }
 0x361   :  { %v8119_v21 = vpop.eup %8118  ;;  %v6128_v5 = vor.u32 %v7725_v47, %v6127_v16  ;;  %v6089_v62 = vld [vmem:[#allocation4 + $0x58] sm:$0xf0]  ;;  %v6063_v47 = vld [vmem:[#allocation4 + $0x20] sm:$0xf] }
 0x362   :  { %v8121_v51 = vpop.eup %8120  ;;  %v1681_v10 = vmul.f32 0.5, %v8119_v21  ;;  %8124 = vtanh.f32 %v1677_v50  ;;  %v6135_v50 = vld [vmem:[#allocation4 + $0xa8] sm:$0xf]  ;;  %v7726_v21 = vld [vmem:[#allocation4 + $0xb4] sm:$0xf0]  ;;  %v6092_v16 = vor.u32 %v7712_v44, %v6089_v62  ;;  %v246_v62 = vadd.f32 %v8592_v22, %v8556_v0 }
 0x363   :  { %v1682_v14 = vmul.f32 0.5, %v8121_v51  ;;  %v6132_v51 = vor.u32 %v7723_v46, %v6129_v48  ;;  %v7709_v46 = vld [vmem:[#allocation4 + $0x2c] sm:$0xf0]  ;;  %v7759_v44 = vld [vmem:[#allocation4 + $0xc4] sm:$0xf] }
 0x364   :  { %v1684_v37 = vadd.f32 0.5, %v1681_v10  ;;  %v6136_v10 = vor.u32 %v7726_v21, %v6135_v50  ;;  %v6064_v48 = vor.u32 %v7709_v46, %v6063_v47  ;;  %v6065_v50 = vld [vmem:[#allocation4 + $0x30] sm:$0xf0]  ;;  %v6071_v21 = vld [vmem:[#allocation4 + $0x28] sm:$0xf] }
 0x365   :  { %v1685_v3 = vadd.f32 0.5, %v1682_v14  ;;  %v1656_v6 = vpop.f32.mrf.mxu2  ;;  %v1669_v2 = vpop.f32.mrf.mxu3  ;;  %v7724_v14 = vld [vmem:[#allocation4 + $0xac] sm:$0xf]  ;;  %2186 = vmatpush.bf16.msra.mxu1 %v6132_v51  ;;  %v7710_v51 = vld [vmem:[#allocation4 + $0x34] sm:$0xf0] }
 0x366   :  { %v8123_v7 = vpop.eup %8122  ;;  %2199 = vmatpush.bf16.msrb.mxu2 %v6136_v10  ;;  %v6111_v6 = vld [vmem:[#allocation4 + $0x80] sm:$0xf]  ;;  %v7721_v2 = vld [vmem:[#allocation4 + $0x8c] sm:$0xf0]  ;;  %v6273_v47 = vld [vmem:[#allocation4 + $0xd0] sm:$0xf0] }
 0x367   :  { %v1688_v4 = vmul.f32 %v1685_v3, %v8659_v24  ;;  %v1689_v15 = vmul.f32 %v8123_v7, %v1684_v37  ;;  %v6160_v24 = vor.u32 %v7733_v63, %v6159_v49  ;;  %v6137_v37 = vld [vmem:[#allocation4 + $0xb8] sm:$0xf0]  ;;  %v7719_v7 = vld [vmem:[#allocation4 + $0x84] sm:$0xf]  ;;  %v6095_v63 = vld [vmem:[#allocation4 + $0x60] sm:$0xf] }
 0x368   :  { %v8125_v17 = vpop.eup %8124  ;;  %v6140_v3 = vor.u32 %v7724_v14, %v6137_v37  ;;  %v6096_v59 = vor.u32 %v7717_v25, %v6095_v63  ;;  %v6072_v14 = vor.u32 %v7710_v51, %v6071_v21  ;;  %v7708_v37 = vld [vmem:[#allocation4 + $0x2c] sm:$0xf]  ;;  %v188_v25 = vadd.f32 %v8585_v19, %v8532_v52  ;;  %v6279_v46 = vld [vmem:[#allocation4 + $0xc8] sm:$0xf] }
 0x369   :  { %v8667_v8 = vadd.f32 %v1689_v15, %v1688_v4  ;;  %v1683_v20 = vmul.f32 0.5, %v8125_v17  ;;  %2171 = vmatpush.bf16.msrb.mxu0 %v6160_v24  ;;  %v6112_v4 = vor.u32 %v7721_v2, %v6111_v6  ;;  %v6113_v15 = vld [vmem:[#allocation4 + $0x90] sm:$0xf0]  ;;  %v6119_v17 = vld [vmem:[#allocation4 + $0x88] sm:$0xf] }
 0x36a   :  { %2212 = vmatpush.bf16.msrb.mxu3 %v6140_v3  ;;  %v7715_v24 = vld [vmem:[#allocation4 + $0x64] sm:$0xf]  ;;  %v6073_v3 = vld [vmem:[#allocation4 + $0x38] sm:$0xf0]  ;;  %v6047_v6 = vld [vmem:[#allocation4] sm:$0xf] }
 0x36b   :  { %8126 = vtanh.f32 %v8667_v8  ;;  %v1686_v9 = vadd.f32 0.5, %v1683_v20  ;;  %v7722_v20 = vld [vmem:[#allocation4 + $0x94] sm:$0xf0]  ;;  %v6100_v56 = vor.u32 %v7715_v24, %v6097_v31  ;;  %v6076_v2 = vor.u32 %v7708_v37, %v6073_v3  ;;  %v7764_v19 = vld [vmem:[#allocation4 + $0xec] sm:$0xf] }
 0x36c   :  { %v217_v24 = vadd.f32 %v8607_v29, %v8572_v11  ;;  %v6300_v29 = vor.u32 %v7764_v19, %v6297_v57  ;;  %v7760_v51 = vld [vmem:[#allocation4 + $0xcc] sm:$0xf] }
 0x36d   :  { %2172 = vmatpush.bf16.msrb.mxu0 %v6144_v39  ;;  %v7711_v39 = vld [vmem:[#allocation4 + $0x44] sm:$0xf] }
 0x36e   :  { %v6084_v43 = vor.u32 %v7711_v39, %v6081_v41 }
 0x371   :  { %v8127_v18 = vpop.eup %8126  ;;  %2173 = vmatpush.bf16.msrb.mxu0 %v6128_v5  ;;  %v7707_v5 = vld [vmem:[#allocation4 + $0x24] sm:$0xf] }
 0x372   :  { %v1692_v12 = vmul.f32 %v8127_v18, %v1686_v9  ;;  %v6116_v9 = vor.u32 %v7719_v7, %v6113_v15  ;;  %v6120_v18 = vor.u32 %v7722_v20, %v6119_v17  ;;  %v6068_v10 = vor.u32 %v7707_v5, %v6065_v50  ;;  %v7705_v7 = vld [vmem:[#allocation4 + $0xc] sm:$0xf0]  ;;  %v6049_v15 = vld [vmem:[#allocation4 + $0x10] sm:$0xf0]  ;;  %v6055_v20 = vld [vmem:[#allocation4 + $0x8] sm:$0xf] }
 0x373   :  { %v6048_v17 = vor.u32 %v7705_v7, %v6047_v6  ;;  %v7762_v5 = vld [vmem:[#allocation4 + $0xd4] sm:$0xf0]  ;;  %v6276_v50 = vor.u32 %v7759_v44, %v6273_v47  ;;  %v7757_v6 = vld [vmem:[#allocation4 + $0xac] sm:$0xf0]  ;;  %v6257_v7 = vld [vmem:[#allocation4 + $0xb0] sm:$0xf0] }
 0x374   :  { %v1693_v23 = vpack.c.bf16 %v1692_v12, %v1692_v12  ;;  %v7720_v12 = vld [vmem:[#allocation4 + $0x8c] sm:$0xf]  ;;  %2187 = vmatpush.bf16.msra.mxu1 %v6116_v9  ;;  %2200 = vmatpush.bf16.msrb.mxu2 %v6120_v18  ;;  %v7706_v9 = vld [vmem:[#allocation4 + $0x14] sm:$0xf0]  ;;  %v6280_v21 = vor.u32 %v7762_v5, %v6279_v46 }
 0x375   :  { %2174 = vmatpush.bf16.msrb.mxu0 %v6112_v4  ;;  %v7703_v4 = vld [vmem:[#allocation4 + $0x4] sm:$0xf]  ;;  %v7704_v18 = vld [vmem:[#allocation4 + $0xc] sm:$0xf] }
 0x376   :  { %1695 = vst [vmem:[#allocation2 + $0x10] sm:$0xf] %v1693_v23  ;;  %1903 = vmatmul.bf16.vlgmr.msra.gmra.mxu0 %v1693_v23  ;;  %1916 = vmatmul.bf16.vlgmr.msrb.gmra.mxu1 %v1693_v23 }
 0x377   :  { %1929 = vmatmul.bf16.vlgmr.msra.gmra.mxu2 %v1693_v23  ;;  %1942 = vmatmul.bf16.vlgmr.msra.gmra.mxu3 %v1693_v23  ;;  %v6121_v23 = vld [vmem:[#allocation4 + $0x98] sm:$0xf0] }
 0x378   :  { %v6124_v49 = vor.u32 %v7720_v12, %v6121_v23  ;;  %2188 = vmatpush.bf16.msra.mxu1 %v6100_v56  ;;  %2201 = vmatpush.bf16.msrb.mxu2 %v6104_v33  ;;  %v6052_v12 = vor.u32 %v7703_v4, %v6049_v15  ;;  %v6056_v23 = vor.u32 %v7706_v9, %v6055_v20  ;;  %v6287_v56 = vld [vmem:[#allocation4 + $0xe0] sm:$0xf]  ;;  %v7765_v33 = vld [vmem:[#allocation4 + $0xec] sm:$0xf0] }
 0x379   :  { %2175 = vmatpush.bf16.msrb.mxu0 %v6096_v59  ;;  %v6288_v34 = vor.u32 %v7765_v33, %v6287_v56  ;;  %v6247_v33 = vld [vmem:[#allocation4 + $0x88] sm:$0xf] }
 0x37a   :  { %2213 = vmatpush.bf16.msrb.mxu3 %v6124_v49  ;;  %v6057_v49 = vld [vmem:[#allocation4 + $0x18] sm:$0xf0] }
 0x37b   :  { %v6060_v63 = vor.u32 %v7704_v18, %v6057_v49  ;;  %v7758_v18 = vld [vmem:[#allocation4 + $0xb4] sm:$0xf0] }
 0x37c   :  { %2189 = vmatpush.bf16.msra.mxu1 %v6084_v43  ;;  %2202 = vmatpush.bf16.msrb.mxu2 %v6088_v45  ;;  %v6271_v43 = vld [vmem:[#allocation4 + $0xc0] sm:$0xf]  ;;  %v7761_v45 = vld [vmem:[#allocation4 + $0xcc] sm:$0xf0] }
 0x37d   :  { %2176 = vmatpush.bf16.msrb.mxu0 %v6080_v40 }
 0x37e   :  { %2214 = vmatpush.bf16.msrb.mxu3 %v6108_v35  ;;  %v6289_v35 = vld [vmem:[#allocation4 + $0xf0] sm:$0xf0] }
 0x37f   :  { %v6292_v41 = vor.u32 %v7763_v61, %v6289_v35  ;;  %v7754_v61 = vld [vmem:[#allocation4 + $0x94] sm:$0xf0] }
 0x380   :  { %2190 = vmatpush.bf16.msra.mxu1 %v6068_v10  ;;  %2203 = vmatpush.bf16.msrb.mxu2 %v6072_v14  ;;  %v6281_v10 = vld [vmem:[#allocation4 + $0xd8] sm:$0xf0]  ;;  %v6255_v14 = vld [vmem:[#allocation4 + $0xa0] sm:$0xf] }
 0x381   :  { %2177 = vmatpush.bf16.msrb.mxu0 %v6064_v48  ;;  %v275_v48 = vadd.f32 %v8594_v26, %v8558_v1  ;;  %v6284_v22 = vor.u32 %v7760_v51, %v6281_v10  ;;  %v6256_v9 = vor.u32 %v7757_v6, %v6255_v14  ;;  %v6263_v26 = vld [vmem:[#allocation4 + $0xa8] sm:$0xf]  ;;  %v7749_v10 = vld [vmem:[#allocation4 + $0x6c] sm:$0xf0]  ;;  %v7747_v14 = vld [vmem:[#allocation4 + $0x64] sm:$0xf] }
 0x382   :  { %2215 = vmatpush.bf16.msrb.mxu3 %v6092_v16  ;;  %v6272_v16 = vor.u32 %v7761_v45, %v6271_v43  ;;  %v6264_v49 = vor.u32 %v7758_v18, %v6263_v26  ;;  %v7750_v6 = vld [vmem:[#allocation4 + $0x74] sm:$0xf0]  ;;  %v7743_v26 = vld [vmem:[#allocation4 + $0x44] sm:$0xf] }
 0x384   :  { %2191 = vmatpush.bf16.msra.mxu1 %v6052_v12  ;;  %2204 = vmatpush.bf16.msrb.mxu2 %v6056_v23  ;;  %v7756_v12 = vld [vmem:[#allocation4 + $0xac] sm:$0xf] }
 0x385   :  { %2178 = vmatpush.bf16.msrb.mxu0 %v6048_v17 }
 0x386   :  { %2216 = vmatpush.bf16.msrb.mxu3 %v6076_v2  ;;  %v7755_v2 = vld [vmem:[#allocation4 + $0xa4] sm:$0xf] }
 0x387   :  { %v6260_v23 = vor.u32 %v7755_v2, %v6257_v7 }
 0x388   :  { %2460 = vmatpush.bf16.msrb.mxu1 %v6292_v41  ;;  %2473 = vmatpush.bf16.msra.mxu2 %v6296_v42  ;;  %v6248_v42 = vor.u32 %v7754_v61, %v6247_v33  ;;  %v6193_v61 = vld [vmem:[#allocation4 + $0x30] sm:$0xf0] }
 0x389   :  { %2447 = vmatpush.bf16.msra.mxu0 %v6288_v34  ;;  %v7752_v34 = vld [vmem:[#allocation4 + $0x8c] sm:$0xf] }
 0x38a   :  { %2217 = vmatpush.bf16.msrb.mxu3 %v6060_v63  ;;  %v6265_v63 = vld [vmem:[#allocation4 + $0xb8] sm:$0xf0] }
 0x38c   :  { %2461 = vmatpush.bf16.msrb.mxu1 %v6276_v50  ;;  %2474 = vmatpush.bf16.msra.mxu2 %v6280_v21 }
 0x38d   :  { %2448 = vmatpush.bf16.msra.mxu0 %v6272_v16 }
 0x38e   :  { %2486 = vmatpush.bf16.msra.mxu3 %v6300_v29 }
 0x390   :  { %2462 = vmatpush.bf16.msrb.mxu1 %v6260_v23  ;;  %2475 = vmatpush.bf16.msra.mxu2 %v6264_v49  ;;  %v6215_v23 = vld [vmem:[#allocation4 + $0x48] sm:$0xf]  ;;  %v7746_v49 = vld [vmem:[#allocation4 + $0x54] sm:$0xf0] }
 0x391   :  { %2449 = vmatpush.bf16.msra.mxu0 %v6256_v9  ;;  %v7745_v9 = vld [vmem:[#allocation4 + $0x4c] sm:$0xf0] }
 0x392   :  { %2487 = vmatpush.bf16.msra.mxu3 %v6284_v22  ;;  %v6231_v22 = vld [vmem:[#allocation4 + $0x68] sm:$0xf] }
 0x393   :  { %v6232_v7 = vor.u32 %v7750_v6, %v6231_v22  ;;  %v7800_v22 = vld [vmem:[#allocation7 + $0xec] sm:$0xf] }
 0x394   :  { %2476 = vmatpush.bf16.msra.mxu2 %v6248_v42  ;;  %v6175_v42 = vld [vmem:[#allocation4] sm:$0xf] }
 0x398   :  { %2477 = vmatpush.bf16.msra.mxu2 %v6232_v7  ;;  %v6415_v7 = vld [vmem:[#allocation7 + $0xc0] sm:$0xf] }
 0x3f3   :  { %v1904_v59 = vpop.f32.mrf.mxu0  ;;  %v1917_v31 = vpop.f32.mrf.mxu1 }
 0x3f4   :  { %v1947_v53 = vadd.f32 %v1904_v59, %v188_v25  ;;  %v1948_v60 = vadd.f32 %v1917_v31, %v217_v24  ;;  %v6239_v25 = vld [vmem:[#allocation4 + $0x80] sm:$0xf]  ;;  %v7753_v24 = vld [vmem:[#allocation4 + $0x8c] sm:$0xf0]  ;;  %v6268_v31 = vor.u32 %v7756_v12, %v6265_v63  ;;  %v6209_v12 = vld [vmem:[#allocation4 + $0x50] sm:$0xf0] }
 0x3f5   :  { %v6240_v38 = vor.u32 %v7753_v24, %v6239_v25  ;;  %v6212_v63 = vor.u32 %v7743_v26, %v6209_v12  ;;  %v6216_v25 = vor.u32 %v7746_v49, %v6215_v23  ;;  %v7744_v24 = vld [vmem:[#allocation4 + $0x4c] sm:$0xf]  ;;  %v6423_v26 = vld [vmem:[#allocation7 + $0xc8] sm:$0xf]  ;;  %v7798_v12 = vld [vmem:[#allocation7 + $0xd4] sm:$0xf0] }
 0x3f6   :  { %v1951_v39 = vmul.f32 0.5, %v1947_v53  ;;  %v1952_v40 = vmul.f32 0.5, %v1948_v60  ;;  %v7751_v53 = vld [vmem:[#allocation4 + $0x84] sm:$0xf]  ;;  %v6241_v60 = vld [vmem:[#allocation4 + $0x90] sm:$0xf0]  ;;  %2488 = vmatpush.bf16.msra.mxu3 %v6268_v31 }
 0x3f7   :  { %v6244_v41 = vor.u32 %v7751_v53, %v6241_v60  ;;  %2450 = vmatpush.bf16.msra.mxu0 %v6240_v38  ;;  %2478 = vmatpush.bf16.msra.mxu2 %v6216_v25  ;;  %v6191_v53 = vld [vmem:[#allocation4 + $0x20] sm:$0xf]  ;;  %v7741_v60 = vld [vmem:[#allocation4 + $0x2c] sm:$0xf0]  ;;  %v7796_v23 = vld [vmem:[#allocation7 + $0xcc] sm:$0xf] }
 0x3f8   :  { %8128 = vtanh.f32 %v1951_v39  ;;  %v6249_v39 = vld [vmem:[#allocation4 + $0x98] sm:$0xf0]  ;;  %v6192_v33 = vor.u32 %v7741_v60, %v6191_v53  ;;  %v6401_v53 = vld [vmem:[#allocation7 + $0xb0] sm:$0xf0]  ;;  %v6407_v60 = vld [vmem:[#allocation7 + $0xa8] sm:$0xf] }
 0x3f9   :  { %8130 = vtanh.f32 %v1952_v40  ;;  %v6252_v57 = vor.u32 %v7752_v34, %v6249_v39  ;;  %2463 = vmatpush.bf16.msrb.mxu1 %v6244_v41  ;;  %v6199_v34 = vld [vmem:[#allocation4 + $0x28] sm:$0xf]  ;;  %v7740_v39 = vld [vmem:[#allocation4 + $0x2c] sm:$0xf]  ;;  %v6425_v49 = vld [vmem:[#allocation7 + $0xd8] sm:$0xf0] }
 0x3fa   :  { %v1930_v37 = vpop.f32.mrf.mxu2  ;;  %v1943_v3 = vpop.f32.mrf.mxu3  ;;  %v6428_v25 = vor.u32 %v7796_v23, %v6425_v49  ;;  %v6359_v49 = vld [vmem:[#allocation7 + $0x48] sm:$0xf] }
 0x3fb   :  { %v1949_v4 = vadd.f32 %v1930_v37, %v246_v62  ;;  %v1950_v15 = vadd.f32 %v1943_v3, %v275_v48  ;;  %v1906_v17 = vpop.f32.mrf.mxu0  ;;  %v1919_v20 = vpop.f32.mrf.mxu1  ;;  %2489 = vmatpush.bf16.msra.mxu3 %v6252_v57  ;;  %v6225_v3 = vld [vmem:[#allocation4 + $0x70] sm:$0xf0]  ;;  %v7735_v57 = vld [vmem:[#allocation4 + $0x4] sm:$0xf] }
 0x3fc   :  { %v6228_v2 = vor.u32 %v7747_v14, %v6225_v3  ;;  %v6207_v20 = vld [vmem:[#allocation4 + $0x40] sm:$0xf]  ;;  %v7802_v3 = vld [vmem:[#allocation7 + $0xf4] sm:$0xf0] }
 0x3fd   :  { %v1953_v59 = vmul.f32 0.5, %v1949_v4  ;;  %8132 = vtanh.f32 %v1950_v15  ;;  %v7748_v4 = vld [vmem:[#allocation4 + $0x6c] sm:$0xf]  ;;  %v6233_v15 = vld [vmem:[#allocation4 + $0x78] sm:$0xf0]  ;;  %v6208_v18 = vor.u32 %v7745_v9, %v6207_v20 }
 0x3fe   :  { %v8129_v56 = vpop.eup %8128  ;;  %v6236_v17 = vor.u32 %v7748_v4, %v6233_v15  ;;  %2464 = vmatpush.bf16.msrb.mxu1 %v6228_v2  ;;  %v6441_v2 = vld [vmem:[#allocation7 + $0xf8] sm:$0xf0]  ;;  %v7797_v4 = vld [vmem:[#allocation7 + $0xcc] sm:$0xf0]  ;;  %v7795_v20 = vld [vmem:[#allocation7 + $0xc4] sm:$0xf] }
 0x3ff   :  { %v8131_v35 = vpop.eup %8130  ;;  %v1957_v36 = vmul.f32 0.5, %v8129_v56  ;;  %8134 = vtanh.f32 %v1953_v59  ;;  %v6217_v59 = vld [vmem:[#allocation4 + $0x58] sm:$0xf0]  ;;  %v7739_v56 = vld [vmem:[#allocation4 + $0x24] sm:$0xf]  ;;  %v6444_v15 = vor.u32 %v7800_v22, %v6441_v2 }
 0x400   :  { %v1958_v40 = vmul.f32 0.5, %v8131_v35  ;;  %2490 = vmatpush.bf16.msra.mxu3 %v6236_v17  ;;  %v6220_v31 = vor.u32 %v7744_v24, %v6217_v59  ;;  %v7742_v35 = vld [vmem:[#allocation4 + $0x34] sm:$0xf0]  ;;  %v6416_v17 = vor.u32 %v7797_v4, %v6415_v7  ;;  %v6417_v9 = vld [vmem:[#allocation7 + $0xd0] sm:$0xf0] }
 0x401   :  { %v1960_v19 = vadd.f32 0.5, %v1957_v36  ;;  %v6196_v36 = vor.u32 %v7739_v56, %v6193_v61  ;;  %v6200_v38 = vor.u32 %v7742_v35, %v6199_v34  ;;  %v6399_v24 = vld [vmem:[#allocation7 + $0xa0] sm:$0xf]  ;;  %v7793_v59 = vld [vmem:[#allocation7 + $0xac] sm:$0xf0] }
 0x402   :  { %v1961_v29 = vadd.f32 0.5, %v1958_v40  ;;  %v1932_v43 = vpop.f32.mrf.mxu2  ;;  %v1945_v45 = vpop.f32.mrf.mxu3  ;;  %2465 = vmatpush.bf16.msrb.mxu1 %v6212_v63  ;;  %v6201_v40 = vld [vmem:[#allocation4 + $0x38] sm:$0xf0]  ;;  %v6424_v63 = vor.u32 %v7798_v12, %v6423_v26  ;;  %v7794_v56 = vld [vmem:[#allocation7 + $0xb4] sm:$0xf0] }
 0x403   :  { %v8133_v44 = vpop.eup %8132  ;;  %v6204_v41 = vor.u32 %v7740_v39, %v6201_v40  ;;  %2479 = vmatpush.bf16.msra.mxu2 %v6200_v38  ;;  %v6177_v43 = vld [vmem:[#allocation4 + $0x10] sm:$0xf0]  ;;  %v6183_v45 = vld [vmem:[#allocation4 + $0x8] sm:$0xf]  ;;  %v7792_v34 = vld [vmem:[#allocation7 + $0xac] sm:$0xf]  ;;  %v6408_v38 = vor.u32 %v7794_v56, %v6407_v60 }
 0x404   :  { %v1964_v62 = vmul.f32 %v1961_v29, %v8667_v8  ;;  %v1965_v16 = vmul.f32 %v8133_v44, %v1960_v19  ;;  %v6223_v8 = vld [vmem:[#allocation4 + $0x60] sm:$0xf]  ;;  %2491 = vmatpush.bf16.msra.mxu3 %v6220_v31  ;;  %v7737_v19 = vld [vmem:[#allocation4 + $0xc] sm:$0xf0]  ;;  %v7738_v44 = vld [vmem:[#allocation4 + $0x14] sm:$0xf0] }
 0x405   :  { %v8135_v47 = vpop.eup %8134  ;;  %v6224_v37 = vor.u32 %v7749_v10, %v6223_v8  ;;  %v6176_v29 = vor.u32 %v7737_v19, %v6175_v42  ;;  %v6433_v8 = vld [vmem:[#allocation7 + $0xf0] sm:$0xf0]  ;;  %v7791_v31 = vld [vmem:[#allocation7 + $0xa4] sm:$0xf]  ;;  %v6409_v35 = vld [vmem:[#allocation7 + $0xb8] sm:$0xf0] }
 0x406   :  { %v8679_v46 = vadd.f32 %v1965_v16, %v1964_v62  ;;  %v1959_v5 = vmul.f32 0.5, %v8135_v47  ;;  %2466 = vmatpush.bf16.msrb.mxu1 %v6196_v36  ;;  %v6180_v62 = vor.u32 %v7735_v57, %v6177_v43  ;;  %v6184_v16 = vor.u32 %v7738_v44, %v6183_v45  ;;  %v7736_v47 = vld [vmem:[#allocation4 + $0xc] sm:$0xf]  ;;  %v6383_v36 = vld [vmem:[#allocation7 + $0x80] sm:$0xf] }
 0x407   :  { %2451 = vmatpush.bf16.msra.mxu0 %v6224_v37  ;;  %v6439_v37 = vld [vmem:[#allocation7 + $0xe8] sm:$0xf]  ;;  %v6404_v61 = vor.u32 %v7791_v31, %v6401_v53  ;;  %v7789_v39 = vld [vmem:[#allocation7 + $0x8c] sm:$0xf0]  ;;  %v7787_v40 = vld [vmem:[#allocation7 + $0x84] sm:$0xf]  ;;  %v6412_v42 = vor.u32 %v7792_v34, %v6409_v35 }
 0x408   :  { %8136 = vtanh.f32 %v8679_v46  ;;  %v1962_v48 = vadd.f32 0.5, %v1959_v5  ;;  %2492 = vmatpush.bf16.msra.mxu3 %v6204_v41  ;;  %v6185_v5 = vld [vmem:[#allocation4 + $0x18] sm:$0xf0]  ;;  %2480 = vmatpush.bf16.msra.mxu2 %v6184_v16  ;;  %v6440_v6 = vor.u32 %v7802_v3, %v6439_v37  ;;  %v6385_v41 = vld [vmem:[#allocation7 + $0x90] sm:$0xf0]  ;;  %v6384_v45 = vor.u32 %v7789_v39, %v6383_v36 }
 0x409   :  { %v6391_v19 = vld [vmem:[#allocation7 + $0x88] sm:$0xf]  ;;  %v7790_v57 = vld [vmem:[#allocation7 + $0x94] sm:$0xf0]  ;;  %v6393_v43 = vld [vmem:[#allocation7 + $0x98] sm:$0xf0]  ;;  %v6388_v44 = vor.u32 %v7787_v40, %v6385_v41 }
 0x40a   :  { %2467 = vmatpush.bf16.msrb.mxu1 %v6180_v62  ;;  %v6392_v62 = vor.u32 %v7790_v57, %v6391_v19  ;;  %v7784_v2 = vld [vmem:[#allocation7 + $0x6c] sm:$0xf]  ;;  %v6377_v7 = vld [vmem:[#allocation7 + $0x78] sm:$0xf0]  ;;  %v6351_v4 = vld [vmem:[#allocation7 + $0x40] sm:$0xf] }
 0x40b   :  { %2452 = vmatpush.bf16.msra.mxu0 %v6208_v18  ;;  %v6420_v18 = vor.u32 %v7795_v20, %v6417_v9  ;;  %v7779_v20 = vld [vmem:[#allocation7 + $0x44] sm:$0xf]  ;;  %v6353_v9 = vld [vmem:[#allocation7 + $0x50] sm:$0xf0]  ;;  %v7777_v31 = vld [vmem:[#allocation7 + $0x2c] sm:$0xf0] }
 0x40c   :  { %v6356_v23 = vor.u32 %v7779_v20, %v6353_v9  ;;  %v7775_v53 = vld [vmem:[#allocation7 + $0x24] sm:$0xf]  ;;  %v6337_v60 = vld [vmem:[#allocation7 + $0x30] sm:$0xf0]  ;;  %v6343_v56 = vld [vmem:[#allocation7 + $0x28] sm:$0xf] }
 0x40d   :  { %v6345_v39 = vld [vmem:[#allocation7 + $0x38] sm:$0xf0]  ;;  %v6319_v40 = vld [vmem:[#allocation7] sm:$0xf] }
 0x40e   :  { %v8137_v50 = vpop.eup %8136 }
 0x40f   :  { %v1968_v21 = vmul.f32 %v8137_v50, %v1962_v48  ;;  %2453 = vmatpush.bf16.msra.mxu0 %v6192_v33  ;;  %v6431_v48 = vld [vmem:[#allocation7 + $0xe0] sm:$0xf]  ;;  %v6188_v50 = vor.u32 %v7736_v47, %v6185_v5  ;;  %v6400_v33 = vor.u32 %v7793_v59, %v6399_v24  ;;  %v7785_v5 = vld [vmem:[#allocation7 + $0x6c] sm:$0xf0] }
 0x410   :  { %v6367_v47 = vld [vmem:[#allocation7 + $0x60] sm:$0xf] }
 0x411   :  { %v1969_v51 = vpack.c.bf16 %v1968_v21, %v1968_v21  ;;  %v7801_v21 = vld [vmem:[#allocation7 + $0xec] sm:$0xf0]  ;;  %2493 = vmatpush.bf16.msra.mxu3 %v6188_v50  ;;  %v6335_v24 = vld [vmem:[#allocation7 + $0x20] sm:$0xf] }
 0x412   :  { %v6432_v10 = vor.u32 %v7801_v21, %v6431_v48  ;;  %v7783_v48 = vld [vmem:[#allocation7 + $0x64] sm:$0xf]  ;;  %v6336_v36 = vor.u32 %v7777_v31, %v6335_v24  ;;  %v7832_v24 = vld [vmem:[#allocation9 + $0xec] sm:$0xf] }
 0x413   :  { %1971 = vst [vmem:[#allocation2 + $0x14] sm:$0xf] %v1969_v51  ;;  %2179 = vmatmul.bf16.vlgmr.msrb.gmra.mxu0 %v1969_v51  ;;  %2192 = vmatmul.bf16.vlgmr.msra.gmra.mxu1 %v1969_v51 }
 0x414   :  { %2205 = vmatmul.bf16.vlgmr.msrb.gmra.mxu2 %v1969_v51  ;;  %2218 = vmatmul.bf16.vlgmr.msrb.gmra.mxu3 %v1969_v51  ;;  %v7799_v51 = vld [vmem:[#allocation7 + $0xe4] sm:$0xf] }
 0x415   :  { %2454 = vmatpush.bf16.msra.mxu0 %v6176_v29  ;;  %v6436_v14 = vor.u32 %v7799_v51, %v6433_v8  ;;  %2818 = vmatpush.bf16.msrb.mxu2 %v6440_v6  ;;  %v7788_v29 = vld [vmem:[#allocation7 + $0x8c] sm:$0xf]  ;;  %v6368_v51 = vor.u32 %v7785_v5, %v6367_v47  ;;  %v6369_v8 = vld [vmem:[#allocation7 + $0x70] sm:$0xf0]  ;;  %v7774_v47 = vld [vmem:[#allocation7 + $0x14] sm:$0xf0] }
 0x416   :  { %2847 = vmatpush.bf16.msrb.mxu3 %v6444_v15  ;;  %v6396_v16 = vor.u32 %v7788_v29, %v6393_v43  ;;  %v6372_v22 = vor.u32 %v7783_v48, %v6369_v8  ;;  %v6380_v15 = vor.u32 %v7784_v2, %v6377_v7  ;;  %v7773_v43 = vld [vmem:[#allocation7 + $0xc] sm:$0xf0]  ;;  %v7772_v48 = vld [vmem:[#allocation7 + $0xc] sm:$0xf] }
 0x417   :  { %2789 = vmatpush.bf16.msra.mxu1 %v6436_v14  ;;  %v7786_v14 = vld [vmem:[#allocation7 + $0x74] sm:$0xf0] }
 0x419   :  { %2760 = vmatpush.bf16.msrb.mxu0 %v6432_v10  ;;  %2819 = vmatpush.bf16.msrb.mxu2 %v6424_v63  ;;  %v6375_v10 = vld [vmem:[#allocation7 + $0x68] sm:$0xf]  ;;  %v7780_v63 = vld [vmem:[#allocation7 + $0x4c] sm:$0xf] }
 0x41a   :  { %2848 = vmatpush.bf16.msrb.mxu3 %v6428_v25  ;;  %v6376_v6 = vor.u32 %v7786_v14, %v6375_v10  ;;  %v6361_v25 = vld [vmem:[#allocation7 + $0x58] sm:$0xf0] }
 0x41b   :  { %2790 = vmatpush.bf16.msra.mxu1 %v6420_v18  ;;  %v6364_v59 = vor.u32 %v7780_v63, %v6361_v25  ;;  %v6563_v25 = vld [vmem:[#allocation9 + $0xf0] sm:$0xf0] }
 0x41d   :  { %2761 = vmatpush.bf16.msrb.mxu0 %v6416_v17  ;;  %2820 = vmatpush.bf16.msrb.mxu2 %v6408_v38  ;;  %v7781_v17 = vld [vmem:[#allocation7 + $0x4c] sm:$0xf0]  ;;  %v6340_v38 = vor.u32 %v7775_v53, %v6337_v60  ;;  %v6569_v60 = vld [vmem:[#allocation9 + $0xe8] sm:$0xf] }
 0x41e   :  { %2849 = vmatpush.bf16.msrb.mxu3 %v6412_v42  ;;  %v6352_v12 = vor.u32 %v7781_v17, %v6351_v4 }
 0x41f   :  { %2791 = vmatpush.bf16.msra.mxu1 %v6404_v61  ;;  %v7776_v61 = vld [vmem:[#allocation7 + $0x2c] sm:$0xf] }
 0x421   :  { %2762 = vmatpush.bf16.msrb.mxu0 %v6400_v33  ;;  %2821 = vmatpush.bf16.msrb.mxu2 %v6392_v62  ;;  %v7778_v33 = vld [vmem:[#allocation7 + $0x34] sm:$0xf0]  ;;  %v6348_v62 = vor.u32 %v7776_v61, %v6345_v39  ;;  %v7768_v61 = vld [vmem:[#allocation2 + $0x8] sm:$0xff] }
 0x422   :  { %2850 = vmatpush.bf16.msrb.mxu3 %v6396_v16  ;;  %v6344_v29 = vor.u32 %v7778_v33, %v6343_v56  ;;  %v6327_v16 = vld [vmem:[#allocation7 + $0x8] sm:$0xf]  ;;  %v7834_v56 = vld [vmem:[#allocation9 + $0xf4] sm:$0xf0] }
 0x423   :  { %2792 = vmatpush.bf16.msra.mxu1 %v6388_v44  ;;  %v6321_v44 = vld [vmem:[#allocation7 + $0x10] sm:$0xf0]  ;;  %v6328_v10 = vor.u32 %v7774_v47, %v6327_v16  ;;  %v6570_v33 = vor.u32 %v7834_v56, %v6569_v60  ;;  %v6529_v16 = vld [vmem:[#allocation9 + $0xa0] sm:$0xf]  ;;  %v7825_v47 = vld [vmem:[#allocation9 + $0xac] sm:$0xf0] }
 0x425   :  { %2763 = vmatpush.bf16.msrb.mxu0 %v6384_v45  ;;  %2822 = vmatpush.bf16.msrb.mxu2 %v6376_v6  ;;  %v7771_v45 = vld [vmem:[#allocation7 + $0x4] sm:$0xf] }
 0x426   :  { %2851 = vmatpush.bf16.msrb.mxu3 %v6380_v15 }
 0x427   :  { %2793 = vmatpush.bf16.msra.mxu1 %v6372_v22 }
 0x429   :  { %2764 = vmatpush.bf16.msrb.mxu0 %v6368_v51 }
 0x42a   :  { %2852 = vmatpush.bf16.msrb.mxu3 %v6364_v59  ;;  %v6571_v59 = vld [vmem:[#allocation9 + $0xf8] sm:$0xf0] }
 0x42b   :  { %2794 = vmatpush.bf16.msra.mxu1 %v6356_v23  ;;  %v6574_v53 = vor.u32 %v7832_v24, %v6571_v59  ;;  %v7816_v59 = vld [vmem:[#allocation9 + $0x6c] sm:$0xf] }
 0x42d   :  { %2765 = vmatpush.bf16.msrb.mxu0 %v6352_v12 }
 0x42e   :  { %2853 = vmatpush.bf16.msrb.mxu3 %v6348_v62  ;;  %v222_v62 = vadd.f32 %v8618_v32, %v8572_v11  ;;  %v7819_v11 = vld [vmem:[#allocation9 + $0x84] sm:$0xf]  ;;  %v6515_v32 = vld [vmem:[#allocation9 + $0x90] sm:$0xf0] }
 0x42f   :  { %2795 = vmatpush.bf16.msra.mxu1 %v6340_v38  ;;  %v7827_v38 = vld [vmem:[#allocation9 + $0xc4] sm:$0xf] }
 0x431   :  { %2766 = vmatpush.bf16.msrb.mxu0 %v6336_v36  ;;  %v7829_v36 = vld [vmem:[#allocation9 + $0xcc] sm:$0xf0] }
 0x490   :  { %v2180_v50 = vpop.f32.mrf.mxu0  ;;  %v2193_v21 = vpop.f32.mrf.mxu1 }
 0x491   :  { %v2223_v37 = vadd.f32 %v2180_v50, %v8537_v55  ;;  %v2224_v3 = vadd.f32 %v2193_v21, %v8614_v30  ;;  %v7782_v55 = vld [vmem:[#allocation7 + $0x54] sm:$0xf0]  ;;  %v6329_v50 = vld [vmem:[#allocation7 + $0x18] sm:$0xf0] }
 0x492   :  { %v6360_v30 = vor.u32 %v7782_v55, %v6359_v49  ;;  %v7767_v49 = vld [vmem:[#allocation2] sm:$0xff]  ;;  %v7833_v55 = vld [vmem:[#allocation9 + $0xec] sm:$0xf0] }
 0x493   :  { %v2227_v26 = vmul.f32 0.5, %v2223_v37  ;;  %v2228_v18 = vmul.f32 0.5, %v2224_v3  ;;  %v6332_v37 = vor.u32 %v7772_v48, %v6329_v50 }
 0x494   :  { %2823 = vmatpush.bf16.msrb.mxu2 %v6360_v30  ;;  %v7831_v30 = vld [vmem:[#allocation9 + $0xe4] sm:$0xf] }
 0x495   :  { %8138 = vtanh.f32 %v2227_v26  ;;  %2854 = vmatpush.bf16.msrb.mxu3 %v6332_v37  ;;  %v6566_v31 = vor.u32 %v7831_v30, %v6563_v25  ;;  %v6499_v30 = vld [vmem:[#allocation9 + $0x70] sm:$0xf0]  ;;  %v280_v25 = vadd.f32 %v8611_v54, %v8558_v1  ;;  %v7811_v54 = vld [vmem:[#allocation9 + $0x44] sm:$0xf] }
 0x496   :  { %8140 = vtanh.f32 %v2228_v18 }
 0x497   :  { %v2206_v34 = vpop.f32.mrf.mxu2  ;;  %v2219_v35 = vpop.f32.mrf.mxu3 }
 0x498   :  { %v2225_v41 = vadd.f32 %v2206_v34, %v8602_v13  ;;  %v2226_v42 = vadd.f32 %v2219_v35, %v8605_v28  ;;  %v2182_v19 = vpop.f32.mrf.mxu0  ;;  %v2195_v57 = vpop.f32.mrf.mxu1  ;;  %v6320_v13 = vor.u32 %v7773_v43, %v6319_v40  ;;  %v6324_v28 = vor.u32 %v7771_v45, %v6321_v44  ;;  %2824 = vmatpush.bf16.msrb.mxu2 %v6344_v29  ;;  %v7769_v34 = vld [vmem:[#allocation2 + $0x10] sm:$0xff]  ;;  %v6545_v35 = vld [vmem:[#allocation9 + $0xc0] sm:$0xf]  ;;  %v6553_v29 = vld [vmem:[#allocation9 + $0xc8] sm:$0xf] }
 0x499   :  { %v6546_v39 = vor.u32 %v7829_v36, %v6545_v35  ;;  %v6547_v40 = vld [vmem:[#allocation9 + $0xd0] sm:$0xf0]  ;;  %v7830_v43 = vld [vmem:[#allocation9 + $0xd4] sm:$0xf0]  ;;  %v193_v44 = vadd.f32 %v8545_v58, %v8532_v52  ;;  %v7821_v58 = vld [vmem:[#allocation9 + $0x8c] sm:$0xf0] }
 0x49a   :  { %v2229_v5 = vmul.f32 0.5, %v2225_v41  ;;  %8142 = vtanh.f32 %v2226_v42  ;;  %2767 = vmatpush.bf16.msrb.mxu0 %v6320_v13  ;;  %2796 = vmatpush.bf16.msra.mxu1 %v6324_v28  ;;  %v7828_v41 = vld [vmem:[#allocation9 + $0xcc] sm:$0xf]  ;;  %v6555_v42 = vld [vmem:[#allocation9 + $0xd8] sm:$0xf0]  ;;  %v6550_v19 = vor.u32 %v7827_v38, %v6547_v40  ;;  %v6554_v45 = vor.u32 %v7830_v43, %v6553_v29 }
 0x49b   :  { %v8139_v21 = vpop.eup %8138  ;;  %v6558_v57 = vor.u32 %v7828_v41, %v6555_v42  ;;  %v6531_v13 = vld [vmem:[#allocation9 + $0xb0] sm:$0xf0]  ;;  %v7824_v28 = vld [vmem:[#allocation9 + $0xac] sm:$0xf]  ;;  %v6481_v35 = vld [vmem:[#allocation9 + $0x40] sm:$0xf] }
 0x49c   :  { %v8141_v51 = vpop.eup %8140  ;;  %v2233_v8 = vmul.f32 0.5, %v8139_v21  ;;  %8144 = vtanh.f32 %v2229_v5  ;;  %2825 = vmatpush.bf16.msrb.mxu2 %v6328_v10  ;;  %v7823_v5 = vld [vmem:[#allocation9 + $0xa4] sm:$0xf]  ;;  %v6530_v21 = vor.u32 %v7825_v47, %v6529_v16  ;;  %v7813_v36 = vld [vmem:[#allocation9 + $0x4c] sm:$0xf0] }
 0x49d   :  { %v2234_v14 = vmul.f32 0.5, %v8141_v51  ;;  %v6539_v51 = vld [vmem:[#allocation9 + $0xb8] sm:$0xf0]  ;;  %v6483_v40 = vld [vmem:[#allocation9 + $0x50] sm:$0xf0]  ;;  %v6482_v43 = vor.u32 %v7813_v36, %v6481_v35 }
 0x49e   :  { %v2236_v3 = vadd.f32 0.5, %v2233_v8  ;;  %v6542_v37 = vor.u32 %v7824_v28, %v6539_v51  ;;  %v7812_v41 = vld [vmem:[#allocation9 + $0x4c] sm:$0xf]  ;;  %v6491_v42 = vld [vmem:[#allocation9 + $0x58] sm:$0xf0] }
 0x49f   :  { %v2237_v22 = vadd.f32 0.5, %v2234_v14  ;;  %v2208_v6 = vpop.f32.mrf.mxu2  ;;  %v2221_v2 = vpop.f32.mrf.mxu3  ;;  %v6534_v14 = vor.u32 %v7823_v5, %v6531_v13  ;;  %v6494_v16 = vor.u32 %v7812_v41, %v6491_v42  ;;  %v7809_v47 = vld [vmem:[#allocation9 + $0x2c] sm:$0xf0]  ;;  %v7807_v5 = vld [vmem:[#allocation9 + $0x24] sm:$0xf] }
 0x4a0   :  { %v8143_v7 = vpop.eup %8142  ;;  %v6513_v6 = vld [vmem:[#allocation9 + $0x80] sm:$0xf]  ;;  %v7808_v28 = vld [vmem:[#allocation9 + $0x2c] sm:$0xf]  ;;  %v6475_v51 = vld [vmem:[#allocation9 + $0x38] sm:$0xf0] }
 0x4a1   :  { %v2240_v4 = vmul.f32 %v2237_v22, %v8679_v46  ;;  %v2241_v15 = vmul.f32 %v8143_v7, %v2236_v3  ;;  %v6561_v46 = vld [vmem:[#allocation9 + $0xe0] sm:$0xf]  ;;  %v6537_v3 = vld [vmem:[#allocation9 + $0xa8] sm:$0xf]  ;;  %v7826_v22 = vld [vmem:[#allocation9 + $0xb4] sm:$0xf0] }
 0x4a2   :  { %v8145_v17 = vpop.eup %8144  ;;  %v6562_v63 = vor.u32 %v7833_v55, %v6561_v46  ;;  %v6538_v52 = vor.u32 %v7826_v22, %v6537_v3  ;;  %v7817_v46 = vld [vmem:[#allocation9 + $0x6c] sm:$0xf0]  ;;  %v7815_v55 = vld [vmem:[#allocation9 + $0x64] sm:$0xf] }
 0x4a3   :  { %v8687_v20 = vadd.f32 %v2241_v15, %v2240_v4  ;;  %v2235_v9 = vmul.f32 0.5, %v8145_v17  ;;  %v6514_v4 = vor.u32 %v7821_v58, %v6513_v6  ;;  %v6518_v15 = vor.u32 %v7819_v11, %v6515_v32  ;;  %v7820_v17 = vld [vmem:[#allocation9 + $0x8c] sm:$0xf]  ;;  %v6473_v11 = vld [vmem:[#allocation9 + $0x28] sm:$0xf] }
 0x4a4   :  { %v7810_v32 = vld [vmem:[#allocation9 + $0x34] sm:$0xf0] }
 0x4a5   :  { %8146 = vtanh.f32 %v8687_v20  ;;  %v2238_v26 = vadd.f32 0.5, %v2235_v9  ;;  %v6523_v9 = vld [vmem:[#allocation9 + $0x98] sm:$0xf0] }
 0x4ab   :  { %v8147_v18 = vpop.eup %8146 }
 0x4ac   :  { %v2244_v12 = vmul.f32 %v8147_v18, %v2238_v26  ;;  %v6526_v26 = vor.u32 %v7820_v17, %v6523_v9  ;;  %v6521_v18 = vld [vmem:[#allocation9 + $0x88] sm:$0xf]  ;;  %v7803_v17 = vld [vmem:[#allocation9 + $0x4] sm:$0xf]  ;;  %v6474_v9 = vor.u32 %v7810_v32, %v6473_v11 }
 0x4ae   :  { %v2245_v23 = vpack.c.bf16 %v2244_v12, %v2244_v12  ;;  %v7822_v12 = vld [vmem:[#allocation9 + $0x94] sm:$0xf0] }
 0x4b0   :  { %2247 = vst [vmem:[#allocation2 + $0x18] sm:$0xf] %v2245_v23  ;;  %2455 = vmatmul.bf16.vlgmr.msra.gmra.mxu0 %v2245_v23  ;;  %2468 = vmatmul.bf16.vlgmr.msrb.gmra.mxu1 %v2245_v23 }
 0x4b1   :  { %2481 = vmatmul.bf16.vlgmr.msra.gmra.mxu2 %v2245_v23  ;;  %2494 = vmatmul.bf16.vlgmr.msra.gmra.mxu3 %v2245_v23  ;;  %v6497_v23 = vld [vmem:[#allocation9 + $0x60] sm:$0xf] }
 0x4b2   :  { %3109 = vmatpush.bf16.msra.mxu0 %v6562_v63  ;;  %3122 = vmatpush.bf16.msrb.mxu1 %v6566_v31  ;;  %v251_v63 = vadd.f32 %v8609_v27, %v8556_v0  ;;  %v6498_v24 = vor.u32 %v7817_v46, %v6497_v23  ;;  %v6507_v31 = vld [vmem:[#allocation9 + $0x78] sm:$0xf0] }
 0x4b3   :  { %3148 = vmatpush.bf16.msra.mxu3 %v6574_v53  ;;  %3135 = vmatpush.bf16.msra.mxu2 %v6570_v33  ;;  %v6505_v53 = vld [vmem:[#allocation9 + $0x68] sm:$0xf]  ;;  %v6502_v33 = vor.u32 %v7815_v55, %v6499_v30  ;;  %v6459_v23 = vld [vmem:[#allocation9 + $0x18] sm:$0xf0] }
 0x4b6   :  { %3110 = vmatpush.bf16.msra.mxu0 %v6546_v39  ;;  %3123 = vmatpush.bf16.msrb.mxu1 %v6550_v19  ;;  %v6489_v19 = vld [vmem:[#allocation9 + $0x48] sm:$0xf] }
 0x4b7   :  { %3149 = vmatpush.bf16.msra.mxu3 %v6558_v57  ;;  %3136 = vmatpush.bf16.msra.mxu2 %v6554_v45  ;;  %v7814_v57 = vld [vmem:[#allocation9 + $0x54] sm:$0xf0]  ;;  %v6465_v45 = vld [vmem:[#allocation9 + $0x20] sm:$0xf] }
 0x4b8   :  { %v6490_v13 = vor.u32 %v7814_v57, %v6489_v19 }
 0x4ba   :  { %3111 = vmatpush.bf16.msra.mxu0 %v6530_v21  ;;  %3124 = vmatpush.bf16.msrb.mxu1 %v6534_v14  ;;  %v6466_v14 = vor.u32 %v7809_v47, %v6465_v45  ;;  %v7863_v47 = vld [vmem:[#allocation9 + $0xe4] sm:$0xf] }
 0x4bb   :  { %3150 = vmatpush.bf16.msra.mxu3 %v6542_v37  ;;  %3137 = vmatpush.bf16.msra.mxu2 %v6538_v52  ;;  %v6478_v52 = vor.u32 %v7808_v28, %v6475_v51  ;;  %v7864_v51 = vld [vmem:[#allocation9 + $0xec] sm:$0xf] }
 0x4be   :  { %3112 = vmatpush.bf16.msra.mxu0 %v6514_v4  ;;  %3125 = vmatpush.bf16.msrb.mxu1 %v6518_v15  ;;  %v6449_v4 = vld [vmem:[#allocation9] sm:$0xf]  ;;  %v7805_v15 = vld [vmem:[#allocation9 + $0xc] sm:$0xf0] }
 0x4bf   :  { %3151 = vmatpush.bf16.msra.mxu3 %v6526_v26  ;;  %v6450_v26 = vor.u32 %v7805_v15, %v6449_v4 }
 0x4c0   :  { %2768 = vmatmul.bf16.vlgmr.msrb.gmra.mxu0 %v7767_v49  ;;  %2797 = vmatmul.bf16.vlgmr.msra.gmra.mxu1 %v7767_v49 }
 0x4c1   :  { %2826 = vmatmul.bf16.vlgmr.msrb.gmra.mxu2 %v7767_v49  ;;  %2855 = vmatmul.bf16.vlgmr.msrb.gmra.mxu3 %v7767_v49  ;;  %v6522_v49 = vor.u32 %v7822_v12, %v6521_v18  ;;  %v6451_v18 = vld [vmem:[#allocation9 + $0x10] sm:$0xf0]  ;;  %v7804_v12 = vld [vmem:[#allocation9 + $0xc] sm:$0xf] }
 0x4c2   :  { %3113 = vmatpush.bf16.msra.mxu0 %v6498_v24  ;;  %3126 = vmatpush.bf16.msrb.mxu1 %v6502_v33  ;;  %v6454_v55 = vor.u32 %v7803_v17, %v6451_v18  ;;  %v6462_v30 = vor.u32 %v7804_v12, %v6459_v23  ;;  %v6445_v33 = vld [vmem:[%s8905_s1 + $0x8] sm:$0xff]  ;;  %v7855_v18 = vld [vmem:[#allocation9 + $0xa4] sm:$0xf]  ;;  %v6659_v23 = vld [vmem:[#allocation9 + $0xb0] sm:$0xf0]  ;;  %s8376_s1 = smov [#allocation11]  }
 0x4c3   :  { %3138 = vmatpush.bf16.msra.mxu2 %v6522_v49  ;;  %s5199_s14 = sshll.u32 %s8376_s1, 4  ;;  %s5200_s14 = int_to_ptr.vmem [resolvable:$true] %s5199_s14 }
 0x4c6   :  { %3114 = vmatpush.bf16.msra.mxu0 %v6482_v43 }
 0x4ca   :  { %3115 = vmatpush.bf16.msra.mxu0 %v6466_v14  ;;  %v6673_v14 = vld [vmem:[#allocation9 + $0xc0] sm:$0xf] }
 0x4ce   :  { %3116 = vmatpush.bf16.msra.mxu0 %v6450_v26  ;;  %v7857_v26 = vld [vmem:[#allocation9 + $0xac] sm:$0xf0] }
 0x4d0   :  { %2773 = vmatmul.bf16.gmra.mxu0 %v7768_v61  ;;  %2802 = vmatmul.bf16.gmra.mxu1 %v7768_v61 }
 0x4d1   :  { %2831 = vmatmul.bf16.gmra.mxu2 %v7768_v61  ;;  %2860 = vmatmul.bf16.gmra.mxu3 %v7768_v61  ;;  %v6510_v61 = vor.u32 %v7816_v59, %v6507_v31 }
 0x4d3   :  { %3152 = vmatpush.bf16.msra.mxu3 %v6510_v61  ;;  %v2912_v61 = vpack.c.bf16 %v6445_v33, %v6445_v33  ;;  %v6643_v33 = vld [vmem:[#allocation9 + $0x90] sm:$0xf0] }
 0x4d7   :  { %3153 = vmatpush.bf16.msra.mxu3 %v6494_v16  ;;  %v7865_v16 = vld [vmem:[#allocation9 + $0xec] sm:$0xf0] }
 0x4db   :  { %3154 = vmatpush.bf16.msra.mxu3 %v6478_v52  ;;  %v6681_v52 = vld [vmem:[#allocation9 + $0xc8] sm:$0xf] }
 0x4df   :  { %3155 = vmatpush.bf16.msra.mxu3 %v6462_v30 }
 0x4e0   :  { %2778 = vmatmul.bf16.gmra.mxu0 %v7769_v34  ;;  %2807 = vmatmul.bf16.gmra.mxu1 %v7769_v34 }
 0x4e1   :  { %2836 = vmatmul.bf16.gmra.mxu2 %v7769_v34  ;;  %2865 = vmatmul.bf16.gmra.mxu3 %v7769_v34  ;;  %v7818_v34 = vld [vmem:[#allocation9 + $0x74] sm:$0xf0] }
 0x4e2   :  { %v6506_v1 = vor.u32 %v7818_v34, %v6505_v53 }
 0x4e4   :  { %3139 = vmatpush.bf16.msra.mxu2 %v6506_v1 }
 0x4e8   :  { %3140 = vmatpush.bf16.msra.mxu2 %v6490_v13 }
 0x4ec   :  { %3141 = vmatpush.bf16.msra.mxu2 %v6474_v9  ;;  %v6657_v9 = vld [vmem:[#allocation9 + $0xa0] sm:$0xf] }
 0x4ed   :  { %v6658_v12 = vor.u32 %v7857_v26, %v6657_v9  ;;  %v7843_v9 = vld [vmem:[#allocation9 + $0x44] sm:$0xf] }
 0x52d   :  { %v2456_v48 = vpop.f32.mrf.mxu0  ;;  %v2469_v50 = vpop.f32.mrf.mxu1 }
 0x52e   :  { %v2499_v8 = vadd.f32 %v2456_v48, %v193_v44  ;;  %v2500_v10 = vadd.f32 %v2469_v50, %v222_v62  ;;  %v6486_v62 = vor.u32 %v7811_v54, %v6483_v40  ;;  %v6467_v48 = vld [vmem:[#allocation9 + $0x30] sm:$0xf0] }
 0x52f   :  { %v6470_v6 = vor.u32 %v7807_v5, %v6467_v48  ;;  %v6691_v48 = vld [vmem:[#allocation9 + $0xf0] sm:$0xf0] }
 0x530   :  { %v2503_v2 = vmul.f32 0.5, %v2499_v8  ;;  %v2504_v7 = vmul.f32 0.5, %v2500_v10  ;;  %3127 = vmatpush.bf16.msrb.mxu1 %v6486_v62  ;;  %v6689_v62 = vld [vmem:[#allocation9 + $0xe0] sm:$0xf]  ;;  %v6694_v13 = vor.u32 %v7863_v47, %v6691_v48  ;;  %v6651_v48 = vld [vmem:[#allocation9 + $0x98] sm:$0xf0] }
 0x531   :  { %v6690_v5 = vor.u32 %v7865_v16, %v6689_v62  ;;  %v7854_v62 = vld [vmem:[#allocation9 + $0x94] sm:$0xf0] }
 0x532   :  { %8148 = vtanh.f32 %v2503_v2 }
 0x533   :  { %8150 = vtanh.f32 %v2504_v7  ;;  %3381 = vmatpush.bf16.msrb.mxu0 %v6690_v5  ;;  %v7852_v5 = vld [vmem:[#allocation9 + $0x8c] sm:$0xf] }
 0x534   :  { %v2482_v60 = vpop.f32.mrf.mxu2  ;;  %v2495_v56 = vpop.f32.mrf.mxu3  ;;  %3128 = vmatpush.bf16.msrb.mxu1 %v6470_v6  ;;  %v6675_v6 = vld [vmem:[#allocation9 + $0xd0] sm:$0xf0] }
 0x535   :  { %v2501_v38 = vadd.f32 %v2482_v60, %v251_v63  ;;  %v2502_v0 = vadd.f32 %v2495_v56, %v280_v25  ;;  %v2458_v27 = vpop.f32.mrf.mxu0  ;;  %v2471_v39 = vpop.f32.mrf.mxu1  ;;  %v6457_v63 = vld [vmem:[#allocation9 + $0x8] sm:$0xf]  ;;  %v7806_v25 = vld [vmem:[#allocation9 + $0x14] sm:$0xf0] }
 0x537   :  { %v2505_v29 = vmul.f32 0.5, %v2501_v38  ;;  %8152 = vtanh.f32 %v2502_v0 }
 0x538   :  { %v8149_v44 = vpop.eup %8148  ;;  %3129 = vmatpush.bf16.msrb.mxu1 %v6454_v55 }
 0x539   :  { %v8151_v50 = vpop.eup %8150  ;;  %v2509_v21 = vmul.f32 0.5, %v8149_v44  ;;  %8154 = vtanh.f32 %v2505_v29 }
 0x53a   :  { %v2510_v8 = vmul.f32 0.5, %v8151_v50  ;;  %v6697_v50 = vld [vmem:[#allocation9 + $0xe8] sm:$0xf] }
 0x53b   :  { %v2512_v10 = vadd.f32 0.5, %v2509_v21  ;;  %v7866_v21 = vld [vmem:[#allocation9 + $0xf4] sm:$0xf0] }
 0x53c   :  { %v2513_v37 = vadd.f32 0.5, %v2510_v8  ;;  %v2484_v3 = vpop.f32.mrf.mxu2  ;;  %v2497_v22 = vpop.f32.mrf.mxu3  ;;  %v6698_v28 = vor.u32 %v7866_v21, %v6697_v50  ;;  %v6699_v8 = vld [vmem:[#allocation9 + $0xf8] sm:$0xf0]  ;;  %3394 = vmatpush.bf16.msra.mxu1 %v6694_v13  ;;  %v6654_v50 = vor.u32 %v7852_v5, %v6651_v48  ;;  %v6625_v21 = vld [vmem:[#allocation9 + $0x60] sm:$0xf] }
 0x53d   :  { %v8153_v58 = vpop.eup %8152  ;;  %v8702_v34 = vpop.f32.mrf.mxu0  ;;  %v7859_v3 = vld [vmem:[#allocation9 + $0xc4] sm:$0xf]  ;;  %v7849_v13 = vld [vmem:[#allocation9 + $0x6c] sm:$0xf0]  ;;  %v7840_v48 = vld [vmem:[#allocation9 + $0x2c] sm:$0xf] }
 0x53e   :  { %v2516_v2 = vmul.f32 %v2513_v37, %v8687_v20  ;;  %v2517_v7 = vmul.f32 %v8153_v58, %v2512_v10  ;;  %v6458_v20 = vor.u32 %v7806_v25, %v6457_v63  ;;  %v8704_v35 = vpop.f32.mrf.mxu1  ;;  %v6702_v10 = vor.u32 %v7864_v51, %v6699_v8  ;;  %v7861_v37 = vld [vmem:[#allocation9 + $0xcc] sm:$0xf0]  ;;  %v7862_v58 = vld [vmem:[#allocation9 + $0xd4] sm:$0xf0] }
 0x53f   :  { %v8155_v49 = vpop.eup %8154  ;;  %v6674_v22 = vor.u32 %v7861_v37, %v6673_v14  ;;  %v6678_v11 = vor.u32 %v7859_v3, %v6675_v6  ;;  %v6682_v32 = vor.u32 %v7862_v58, %v6681_v52  ;;  %v6662_v63 = vor.u32 %v7855_v18, %v6659_v23  ;;  %v6627_v14 = vld [vmem:[#allocation9 + $0x70] sm:$0xf0]  ;;  %v6633_v37 = vld [vmem:[#allocation9 + $0x68] sm:$0xf]  ;;  %v7850_v52 = vld [vmem:[#allocation9 + $0x74] sm:$0xf0] }
 0x540   :  { %v2518_v46 = vadd.f32 %v2517_v7, %v2516_v2  ;;  %v2511_v24 = vmul.f32 0.5, %v8155_v49  ;;  %3142 = vmatpush.bf16.msra.mxu2 %v6458_v20  ;;  %3420 = vmatpush.bf16.msrb.mxu3 %v6702_v10  ;;  %v7860_v2 = vld [vmem:[#allocation9 + $0xcc] sm:$0xf]  ;;  %v6683_v7 = vld [vmem:[#allocation9 + $0xd8] sm:$0xf0]  ;;  %v6626_v8 = vor.u32 %v7849_v13, %v6625_v21 }
 0x541   :  { %3382 = vmatpush.bf16.msrb.mxu0 %v6674_v22  ;;  %v6686_v17 = vor.u32 %v7860_v2, %v6683_v7  ;;  %3395 = vmatpush.bf16.msra.mxu1 %v6678_v11  ;;  %v6665_v49 = vld [vmem:[#allocation9 + $0xa8] sm:$0xf]  ;;  %v7856_v20 = vld [vmem:[#allocation9 + $0xac] sm:$0xf]  ;;  %v7847_v10 = vld [vmem:[#allocation9 + $0x64] sm:$0xf] }
 0x542   :  { %8156 = vtanh.f32 %v2518_v46  ;;  %2525 = vst [vmem:[#allocation11] sm:$0xff] %v2518_v46  ;;  %v2514_v59 = vadd.f32 0.5, %v2511_v24  ;;  %v7858_v46 = vld [vmem:[#allocation9 + $0xb4] sm:$0xf0]  ;;  %v6667_v24 = vld [vmem:[#allocation9 + $0xb8] sm:$0xf0]  ;;  %v6630_v6 = vor.u32 %v7847_v10, %v6627_v14 }
 0x543   :  { %v6666_v25 = vor.u32 %v7858_v46, %v6665_v49  ;;  %v7848_v58 = vld [vmem:[#allocation9 + $0x6c] sm:$0xf]  ;;  %v6635_v11 = vld [vmem:[#allocation9 + $0x78] sm:$0xf0]  ;;  %v6609_v7 = vld [vmem:[#allocation9 + $0x40] sm:$0xf] }
 0x544   :  { %v8706_v36 = vpop.f32.mrf.mxu2  ;;  %v8708_v38 = vpop.f32.mrf.mxu3  ;;  %3407 = vmatpush.bf16.msrb.mxu2 %v6698_v28  ;;  %3421 = vmatpush.bf16.msrb.mxu3 %v6686_v17  ;;  %v6638_v2 = vor.u32 %v7848_v58, %v6635_v11  ;;  %v7845_v17 = vld [vmem:[#allocation9 + $0x4c] sm:$0xf0]  ;;  %v6611_v18 = vld [vmem:[#allocation9 + $0x50] sm:$0xf0]  ;;  %v7846_v23 = vld [vmem:[#allocation9 + $0x54] sm:$0xf0] }
 0x545   :  { %v8710_v0 = vpop.f32.mrf.mxu0  ;;  %3383 = vmatpush.bf16.msrb.mxu0 %v6658_v12  ;;  %3396 = vmatpush.bf16.msra.mxu1 %v6662_v63  ;;  %v6610_v26 = vor.u32 %v7845_v17, %v6609_v7  ;;  %v6617_v12 = vld [vmem:[#allocation9 + $0x48] sm:$0xf]  ;;  %v6614_v49 = vor.u32 %v7843_v9, %v6611_v18  ;;  %v7844_v63 = vld [vmem:[#allocation9 + $0x4c] sm:$0xf]  ;;  %v6577_v21 = vld [vmem:[#allocation9] sm:$0xf] }
 0x546   :  { %v8712_v27 = vpop.f32.mrf.mxu1  ;;  %v6618_v46 = vor.u32 %v7846_v23, %v6617_v12  ;;  %v7837_v14 = vld [vmem:[#allocation9 + $0xc] sm:$0xf0]  ;;  %v6585_v58 = vld [vmem:[#allocation9 + $0x8] sm:$0xf]  ;;  %v7838_v11 = vld [vmem:[#allocation9 + $0x14] sm:$0xf0] }
 0x547   :  { %v6587_v7 = vld [vmem:[#allocation9 + $0x18] sm:$0xf0] }
 0x548   :  { %v8157_v31 = vpop.eup %8156  ;;  %3408 = vmatpush.bf16.msrb.mxu2 %v6682_v32  ;;  %v6634_v32 = vor.u32 %v7850_v52, %v6633_v37  ;;  %v7835_v37 = vld [vmem:[#allocation9 + $0x4] sm:$0xf]  ;;  %v6578_v52 = vor.u32 %v7837_v14, %v6577_v21 }
 0x549   :  { %v2520_v53 = vmul.f32 %v8157_v31, %v2514_v59  ;;  %v6670_v59 = vor.u32 %v7856_v20, %v6667_v24  ;;  %v6641_v31 = vld [vmem:[#allocation9 + $0x80] sm:$0xf] }
 0x54a   :  { %v6593_v24 = vld [vmem:[#allocation9 + $0x20] sm:$0xf] }
 0x54b   :  { %v2521_v60 = vpack.c.bf16 %v2520_v53, %v2520_v53  ;;  %2524 = vst [vmem:[#allocation10] sm:$0xff] %v2520_v53  ;;  %v7853_v53 = vld [vmem:[#allocation9 + $0x8c] sm:$0xf0]  ;;  %3422 = vmatpush.bf16.msrb.mxu3 %v6670_v59 }
 0x54c   :  { %v8714_v39 = vpop.f32.mrf.mxu2  ;;  %v8716_v1 = vpop.f32.mrf.mxu3  ;;  %3409 = vmatpush.bf16.msrb.mxu2 %v6666_v25  ;;  %v6619_v25 = vld [vmem:[#allocation9 + $0x58] sm:$0xf0]  ;;  %v7841_v59 = vld [vmem:[#allocation9 + $0x2c] sm:$0xf0] }
 0x54d   :  { %2523 = vst [vmem:[#allocation2 + $0x1c] sm:$0xf] %v2521_v60  ;;  %v8718_v54 = vpop.f32.mrf.mxu0  ;;  %v7851_v60 = vld [vmem:[#allocation9 + $0x84] sm:$0xf]  ;;  %v6622_v20 = vor.u32 %v7844_v63, %v6619_v25 }
 0x54e   :  { %v8720_v40 = vpop.f32.mrf.mxu1  ;;  %v6646_v16 = vor.u32 %v7851_v60, %v6643_v33  ;;  %v6594_v60 = vor.u32 %v7841_v59, %v6593_v24  ;;  %v6601_v33 = vld [vmem:[#allocation9 + $0x28] sm:$0xf] }
 0x54f   :  { %3423 = vmatpush.bf16.msrb.mxu3 %v6654_v50  ;;  %v6603_v50 = vld [vmem:[#allocation9 + $0x38] sm:$0xf0] }
 0x550   :  { %3397 = vmatpush.bf16.msra.mxu1 %v6646_v16  ;;  %v6606_v10 = vor.u32 %v7840_v48, %v6603_v50 }
 0x553   :  { %3424 = vmatpush.bf16.msrb.mxu3 %v6638_v2 }
 0x554   :  { %v7770_v56 = vld [vmem:[#allocation2 + $0x18] sm:$0xff]  ;;  %v8722_v41 = vpop.f32.mrf.mxu2  ;;  %v8724_v42 = vpop.f32.mrf.mxu3  ;;  %3398 = vmatpush.bf16.msra.mxu1 %v6630_v6  ;;  %v6579_v6 = vld [vmem:[#allocation9 + $0x10] sm:$0xf0] }
 0x555   :  { %2783 = vmatmul.bf16.gmra.mxu0 %v7770_v56  ;;  %2812 = vmatmul.bf16.gmra.mxu1 %v7770_v56  ;;  %v8726_v19 = vpop.f32.mrf.mxu0  ;;  %v6582_v2 = vor.u32 %v7835_v37, %v6579_v6 }
 0x556   :  { %2841 = vmatmul.bf16.gmra.mxu2 %v7770_v56  ;;  %2870 = vmatmul.bf16.gmra.mxu3 %v7770_v56  ;;  %v8728_v57 = vpop.f32.mrf.mxu1  ;;  %v6642_v56 = vor.u32 %v7853_v53, %v6641_v31  ;;  %v7839_v31 = vld [vmem:[#allocation9 + $0x24] sm:$0xf]  ;;  %v2566_v53 = vld [vmem:[%s8912_s8] sm:$0xf] }
 0x557   :  { %3425 = vmatpush.bf16.msrb.mxu3 %v6622_v20  ;;  %v8765_v17 = vperm.slane %v2566_v53, 0  ;;  %v8767_v9 = vperm.slane %v2566_v53, 1  ;;  %v8777_v59 = vperm.slane %v2566_v53, 2 }
 0x558   :  { %3384 = vmatpush.bf16.msrb.mxu0 %v6642_v56  ;;  %3399 = vmatpush.bf16.msra.mxu1 %v6614_v49  ;;  %v6595_v56 = vld [vmem:[#allocation9 + $0x30] sm:$0xf0] }
 0x559   :  { %v2770_v12 = vadd.f32 %v8702_v34, %v8765_v17  ;;  %v2799_v23 = vadd.f32 %v8704_v35, %v8767_v9  ;;  %v2828_v34 = vadd.f32 %v8706_v36, %v8777_v59  ;;  %v6446_v36 = vld [vmem:[%s8906_s2 + $0x8] sm:$0xff]  ;;  %s5201_s2 = sshll.u32 %s8917_s13, 4  ;;  %s5202_s2 = int_to_ptr.hbm [resolvable:$true] %s5201_s2 }
 0x55b   :  { %3426 = vmatpush.bf16.msrb.mxu3 %v6606_v10 }
 0x55c   :  { %v8730_v29 = vpop.f32.mrf.mxu2  ;;  %v8732_v43 = vpop.f32.mrf.mxu3  ;;  %3385 = vmatpush.bf16.msrb.mxu0 %v6626_v8 }
 0x55d   :  { %v8734_v45 = vpop.f32.mrf.mxu0 }
 0x55e   :  { %v8736_v44 = vpop.f32.mrf.mxu1 }
 0x560   :  { %3386 = vmatpush.bf16.msrb.mxu0 %v6610_v26  ;;  %v6586_v26 = vor.u32 %v7838_v11, %v6585_v58 }
 0x564   :  { %v8738_v4 = vpop.f32.mrf.mxu2  ;;  %v8740_v15 = vpop.f32.mrf.mxu3  ;;  %3387 = vmatpush.bf16.msrb.mxu0 %v6594_v60 }
 0x565   :  { %3117 = vmatmul.bf16.vlgmr.msra.gmra.mxu0 %v2912_v61  ;;  %3130 = vmatmul.bf16.vlgmr.msrb.gmra.mxu1 %v2912_v61  ;;  %v8742_v55 = vpop.f32.mrf.mxu0 }
 0x566   :  { %3143 = vmatmul.bf16.vlgmr.msra.gmra.mxu2 %v2912_v61  ;;  %3156 = vmatmul.bf16.vlgmr.msra.gmra.mxu3 %v2912_v61  ;;  %v8744_v30 = vpop.f32.mrf.mxu1  ;;  %v6649_v61 = vld [vmem:[#allocation9 + $0x88] sm:$0xf] }
 0x567   :  { %v6650_v47 = vor.u32 %v7854_v62, %v6649_v61  ;;  %v7842_v61 = vld [vmem:[#allocation9 + $0x34] sm:$0xf0] }
 0x568   :  { %v6602_v5 = vor.u32 %v7842_v61, %v6601_v33  ;;  %3388 = vmatpush.bf16.msrb.mxu0 %v6578_v52 }
 0x569   :  { %3410 = vmatpush.bf16.msrb.mxu2 %v6650_v47  ;;  %v6598_v47 = vor.u32 %v7839_v31, %v6595_v56  ;;  %v8779_v31 = vperm.slane %v2566_v53, 3 }
 0x56b   :  { %3400 = vmatpush.bf16.msra.mxu1 %v6598_v47  ;;  %v2857_v35 = vadd.f32 %v8708_v38, %v8779_v31 }
 0x56c   :  { %v8746_v28 = vpop.f32.mrf.mxu2  ;;  %v8748_v51 = vpop.f32.mrf.mxu3 }
 0x56d   :  { %3411 = vmatpush.bf16.msrb.mxu2 %v6634_v32  ;;  %v7836_v32 = vld [vmem:[#allocation9 + $0xc] sm:$0xf] }
 0x56e   :  { %v6590_v18 = vor.u32 %v7836_v32, %v6587_v7 }
 0x56f   :  { %3401 = vmatpush.bf16.msra.mxu1 %v6582_v2 }
 0x570   :  { %3427 = vmatpush.bf16.msrb.mxu3 %v6590_v18 }
 0x571   :  { %3412 = vmatpush.bf16.msrb.mxu2 %v6618_v46 }
 0x575   :  { %3413 = vmatpush.bf16.msrb.mxu2 %v6602_v5 }
 0x579   :  { %3414 = vmatpush.bf16.msrb.mxu2 %v6586_v26 }
 0x5d2   :  { %v8750_v3 = vpop.f32.mrf.mxu0  ;;  %v8752_v22 = vpop.f32.mrf.mxu1 }
 0x5d9   :  { %v8757_v62 = vpop.f32.mrf.mxu2  ;;  %v8759_v16 = vpop.f32.mrf.mxu3 }
 0x5da   :  { %v8761_v13 = vpop.f32.mrf.mxu0  ;;  %v8763_v8 = vpop.f32.mrf.mxu1 }
 0x5e1   :  { %v8773_v49 = vpop.f32.mrf.mxu2  ;;  %v8775_v46 = vpop.f32.mrf.mxu3 }
 0x5e2   :  { %v3118_v63 = vpop.f32.mrf.mxu0  ;;  %v3131_v25 = vpop.f32.mrf.mxu1 }
 0x5e3   :  { %v3161_v20 = vadd.f32 %v3118_v63, %v2770_v12  ;;  %v3162_v24 = vadd.f32 %v3131_v25, %v2799_v23 }
 0x5e5   :  { %v3165_v60 = vmul.f32 0.5, %v3161_v20  ;;  %v3166_v56 = vmul.f32 0.5, %v3162_v24  ;;  %v6817_v20 = vld [vmem:[#allocation9 + $0xe0] sm:$0xf]  ;;  %v7897_v24 = vld [vmem:[#allocation9 + $0xec] sm:$0xf0] }
 0x5e7   :  { %8158 = vtanh.f32 %v3165_v60  ;;  %v7895_v60 = vld [vmem:[#allocation9 + $0xe4] sm:$0xf] }
 0x5e8   :  { %8160 = vtanh.f32 %v3166_v56  ;;  %v6818_v56 = vor.u32 %v7897_v24, %v6817_v20 }
 0x5e9   :  { %v3144_v33 = vpop.f32.mrf.mxu2  ;;  %v3157_v61 = vpop.f32.mrf.mxu3 }
 0x5ea   :  { %v3163_v47 = vadd.f32 %v3144_v33, %v2828_v34  ;;  %v3164_v5 = vadd.f32 %v3157_v61, %v2857_v35  ;;  %v3120_v48 = vpop.f32.mrf.mxu0  ;;  %v3133_v50 = vpop.f32.mrf.mxu1  ;;  %v6819_v34 = vld [vmem:[#allocation9 + $0xf0] sm:$0xf0]  ;;  %v6825_v35 = vld [vmem:[#allocation9 + $0xe8] sm:$0xf]  ;;  %v7898_v33 = vld [vmem:[#allocation9 + $0xf4] sm:$0xf0]  ;;  %3653 = vmatpush.bf16.msra.mxu0 %v6818_v56 }
 0x5eb   :  { %v6822_v61 = vor.u32 %v7895_v60, %v6819_v34  ;;  %v6827_v48 = vld [vmem:[#allocation9 + $0xf8] sm:$0xf0]  ;;  %v7888_v60 = vld [vmem:[#allocation9 + $0xac] sm:$0xf] }
 0x5ec   :  { %v3167_v21 = vmul.f32 0.5, %v3163_v47  ;;  %8162 = vtanh.f32 %v3164_v5  ;;  %v6826_v47 = vor.u32 %v7898_v33, %v6825_v35  ;;  %v7896_v5 = vld [vmem:[#allocation9 + $0xec] sm:$0xf]  ;;  %v6795_v56 = vld [vmem:[#allocation9 + $0xb8] sm:$0xf0] }
 0x5ed   :  { %v8159_v53 = vpop.eup %8158  ;;  %v6830_v50 = vor.u32 %v7896_v5, %v6827_v48  ;;  %3666 = vmatpush.bf16.msrb.mxu1 %v6822_v61  ;;  %v6798_v34 = vor.u32 %v7888_v60, %v6795_v56  ;;  %v6769_v35 = vld [vmem:[#allocation9 + $0x80] sm:$0xf]  ;;  %v7885_v33 = vld [vmem:[#allocation9 + $0x8c] sm:$0xf0]  ;;  %v7883_v61 = vld [vmem:[#allocation9 + $0x84] sm:$0xf] }
 0x5ee   :  { %v8161_v10 = vpop.eup %8160  ;;  %v3171_v14 = vmul.f32 0.5, %v8159_v53  ;;  %8164 = vtanh.f32 %v3167_v21  ;;  %3679 = vmatpush.bf16.msra.mxu2 %v6826_v47  ;;  %v6801_v21 = vld [vmem:[#allocation9 + $0xc0] sm:$0xf]  ;;  %v7893_v53 = vld [vmem:[#allocation9 + $0xcc] sm:$0xf0]  ;;  %v6770_v47 = vor.u32 %v7885_v33, %v6769_v35 }
 0x5ef   :  { %v3172_v37 = vmul.f32 0.5, %v8161_v10  ;;  %v7891_v10 = vld [vmem:[#allocation9 + $0xc4] sm:$0xf]  ;;  %3692 = vmatpush.bf16.msra.mxu3 %v6830_v50  ;;  %v6771_v5 = vld [vmem:[#allocation9 + $0x90] sm:$0xf0] }
 0x5f0   :  { %v3174_v6 = vadd.f32 0.5, %v3171_v14  ;;  %v6802_v14 = vor.u32 %v7893_v53, %v6801_v21  ;;  %v6777_v48 = vld [vmem:[#allocation9 + $0x88] sm:$0xf]  ;;  %v7886_v50 = vld [vmem:[#allocation9 + $0x94] sm:$0xf0]  ;;  %v6774_v21 = vor.u32 %v7883_v61, %v6771_v5 }
 0x5f1   :  { %v3175_v38 = vadd.f32 0.5, %v3172_v37  ;;  %v3146_v52 = vpop.f32.mrf.mxu2  ;;  %v3159_v58 = vpop.f32.mrf.mxu3  ;;  %v6803_v37 = vld [vmem:[#allocation9 + $0xd0] sm:$0xf0]  ;;  %v6778_v53 = vor.u32 %v7886_v50, %v6777_v48  ;;  %v6745_v56 = vld [vmem:[#allocation9 + $0x48] sm:$0xf] }
 0x5f2   :  { %v8163_v11 = vpop.eup %8162  ;;  %v7892_v58 = vld [vmem:[#allocation9 + $0xcc] sm:$0xf]  ;;  %3654 = vmatpush.bf16.msra.mxu0 %v6802_v14  ;;  %v6779_v14 = vld [vmem:[#allocation9 + $0x98] sm:$0xf0]  ;;  %v6739_v60 = vld [vmem:[#allocation9 + $0x50] sm:$0xf0] }
 0x5f3   :  { %v3178_v32 = vmul.f32 %v6446_v36, %v3175_v38  ;;  %v3179_v2 = vmul.f32 %v8163_v11, %v3174_v6  ;;  %v6809_v6 = vld [vmem:[#allocation9 + $0xc8] sm:$0xf]  ;;  %v7894_v36 = vld [vmem:[#allocation9 + $0xd4] sm:$0xf0]  ;;  %v6806_v38 = vor.u32 %v7891_v10, %v6803_v37  ;;  %v6811_v11 = vld [vmem:[#allocation9 + $0xd8] sm:$0xf0] }
 0x5f4   :  { %v8165_v7 = vpop.eup %8164  ;;  %v6810_v52 = vor.u32 %v7894_v36, %v6809_v6  ;;  %v7884_v10 = vld [vmem:[#allocation9 + $0x8c] sm:$0xf]  ;;  %v6753_v6 = vld [vmem:[#allocation9 + $0x60] sm:$0xf]  ;;  %v7881_v36 = vld [vmem:[#allocation9 + $0x6c] sm:$0xf0] }
 0x5f5   :  { %v8788_v26 = vadd.f32 %v3179_v2, %v3178_v32  ;;  %v3173_v18 = vmul.f32 0.5, %v8165_v7  ;;  %v6814_v32 = vor.u32 %v7892_v58, %v6811_v11  ;;  %3667 = vmatpush.bf16.msrb.mxu1 %v6806_v38  ;;  %v6785_v2 = vld [vmem:[#allocation9 + $0xa0] sm:$0xf]  ;;  %v7889_v7 = vld [vmem:[#allocation9 + $0xac] sm:$0xf0]  ;;  %v6782_v37 = vor.u32 %v7884_v10, %v6779_v14 }
 0x5f6   :  { %3680 = vmatpush.bf16.msra.mxu2 %v6810_v52  ;;  %v7879_v38 = vld [vmem:[#allocation9 + $0x64] sm:$0xf]  ;;  %v6754_v52 = vor.u32 %v7881_v36, %v6753_v6  ;;  %v6755_v58 = vld [vmem:[#allocation9 + $0x70] sm:$0xf0]  ;;  %v6761_v11 = vld [vmem:[#allocation9 + $0x68] sm:$0xf] }
 0x5f7   :  { %8166 = vtanh.f32 %v8788_v26  ;;  %v3176_v12 = vadd.f32 0.5, %v3173_v18  ;;  %v7887_v18 = vld [vmem:[#allocation9 + $0xa4] sm:$0xf]  ;;  %3693 = vmatpush.bf16.msra.mxu3 %v6814_v32  ;;  %v7882_v32 = vld [vmem:[#allocation9 + $0x74] sm:$0xf0] }
 0x5f8   :  { %v7876_v61 = vld [vmem:[#allocation9 + $0x4c] sm:$0xf]  ;;  %v6721_v48 = vld [vmem:[#allocation9 + $0x20] sm:$0xf]  ;;  %v7873_v50 = vld [vmem:[#allocation9 + $0x2c] sm:$0xf0] }
 0x5f9   :  { %v6723_v10 = vld [vmem:[#allocation9 + $0x30] sm:$0xf0]  ;;  %v6729_v14 = vld [vmem:[#allocation9 + $0x28] sm:$0xf] }
 0x5fb   :  { %3694 = vmatpush.bf16.msra.mxu3 %v6798_v34  ;;  %v7878_v34 = vld [vmem:[#allocation9 + $0x54] sm:$0xf0] }
 0x5fc   :  { %v6746_v33 = vor.u32 %v7878_v34, %v6745_v56  ;;  %v2772_v56 = vadd.f32 %v8710_v0, %v8765_v17  ;;  %v2801_v34 = vadd.f32 %v8712_v27, %v8767_v9 }
 0x5fd   :  { %v8167_v23 = vpop.eup %8166 }
 0x5fe   :  { %v3182_v63 = vmul.f32 %v8167_v23, %v3176_v12  ;;  %v6786_v12 = vor.u32 %v7889_v7, %v6785_v2  ;;  %v6787_v23 = vld [vmem:[#allocation9 + $0xb0] sm:$0xf0]  ;;  %v6758_v2 = vor.u32 %v7879_v38, %v6755_v58  ;;  %v6762_v7 = vor.u32 %v7882_v32, %v6761_v11  ;;  %v7872_v38 = vld [vmem:[#allocation9 + $0x2c] sm:$0xf]  ;;  %v6705_v58 = vld [vmem:[#allocation9] sm:$0xf] }
 0x5ff   :  { %v6790_v20 = vor.u32 %v7887_v18, %v6787_v23  ;;  %3695 = vmatpush.bf16.msra.mxu3 %v6782_v37  ;;  %v7880_v18 = vld [vmem:[#allocation9 + $0x6c] sm:$0xf]  ;;  %v7874_v37 = vld [vmem:[#allocation9 + $0x34] sm:$0xf0]  ;;  %v7869_v32 = vld [vmem:[#allocation9 + $0xc] sm:$0xf0] }
 0x600   :  { %v3183_v25 = vpack.c.bf16 %v3182_v63, %v3182_v63  ;;  %v6793_v63 = vld [vmem:[#allocation9 + $0xa8] sm:$0xf]  ;;  %3655 = vmatpush.bf16.msra.mxu0 %v6786_v12  ;;  %v6763_v12 = vld [vmem:[#allocation9 + $0x78] sm:$0xf0]  ;;  %v6730_v36 = vor.u32 %v7874_v37, %v6729_v14 }
 0x601   :  { %3668 = vmatpush.bf16.msrb.mxu1 %v6790_v20  ;;  %v6766_v23 = vor.u32 %v7880_v18, %v6763_v12  ;;  %v7875_v20 = vld [vmem:[#allocation9 + $0x44] sm:$0xf]  ;;  %v6706_v18 = vor.u32 %v7869_v32, %v6705_v58  ;;  %v6713_v12 = vld [vmem:[#allocation9 + $0x8] sm:$0xf] }
 0x602   :  { %3184 = vst [vmem:[#allocation2] sm:$0xf] %v3183_v25  ;;  %3389 = vmatmul.bf16.vlgmr.msrb.gmra.mxu0 %v3183_v25  ;;  %3402 = vmatmul.bf16.vlgmr.msra.gmra.mxu1 %v3183_v25  ;;  %v6742_v35 = vor.u32 %v7875_v20, %v6739_v60 }
 0x603   :  { %3415 = vmatmul.bf16.vlgmr.msrb.gmra.mxu2 %v3183_v25  ;;  %3428 = vmatmul.bf16.vlgmr.msrb.gmra.mxu3 %v3183_v25  ;;  %v7890_v25 = vld [vmem:[#allocation9 + $0xb4] sm:$0xf0] }
 0x604   :  { %v6794_v24 = vor.u32 %v7890_v25, %v6793_v63  ;;  %3656 = vmatpush.bf16.msra.mxu0 %v6770_v47  ;;  %v6737_v63 = vld [vmem:[#allocation9 + $0x40] sm:$0xf]  ;;  %v7877_v25 = vld [vmem:[#allocation9 + $0x4c] sm:$0xf0]  ;;  %3696 = vmatpush.bf16.msra.mxu3 %v6766_v23  ;;  %v6747_v47 = vld [vmem:[#allocation9 + $0x58] sm:$0xf0] }
 0x605   :  { %3669 = vmatpush.bf16.msrb.mxu1 %v6774_v21  ;;  %v6750_v5 = vor.u32 %v7876_v61, %v6747_v47  ;;  %v7871_v21 = vld [vmem:[#allocation9 + $0x24] sm:$0xf]  ;;  %v7870_v23 = vld [vmem:[#allocation9 + $0x14] sm:$0xf0] }
 0x606   :  { %3681 = vmatpush.bf16.msra.mxu2 %v6794_v24  ;;  %v6738_v24 = vor.u32 %v7877_v25, %v6737_v63  ;;  %v6726_v6 = vor.u32 %v7871_v21, %v6723_v10  ;;  %v7868_v63 = vld [vmem:[#allocation9 + $0xc] sm:$0xf]  ;;  %v6714_v20 = vor.u32 %v7870_v23, %v6713_v12  ;;  %v2859_v21 = vadd.f32 %v8716_v1, %v8779_v31 }
 0x608   :  { %3657 = vmatpush.bf16.msra.mxu0 %v6754_v52  ;;  %3697 = vmatpush.bf16.msra.mxu3 %v6750_v5  ;;  %v6731_v52 = vld [vmem:[#allocation9 + $0x38] sm:$0xf0] }
 0x609   :  { %3670 = vmatpush.bf16.msrb.mxu1 %v6758_v2  ;;  %v6734_v11 = vor.u32 %v7872_v38, %v6731_v52  ;;  %v7867_v2 = vld [vmem:[#allocation9 + $0x4] sm:$0xf] }
 0x60a   :  { %3682 = vmatpush.bf16.msra.mxu2 %v6778_v53  ;;  %v6722_v53 = vor.u32 %v7873_v50, %v6721_v48  ;;  %v2830_v50 = vadd.f32 %v8714_v39, %v8777_v59 }
 0x60c   :  { %3658 = vmatpush.bf16.msra.mxu0 %v6738_v24  ;;  %v6715_v24 = vld [vmem:[#allocation9 + $0x18] sm:$0xf0]  ;;  %3698 = vmatpush.bf16.msra.mxu3 %v6734_v11 }
 0x60d   :  { %3671 = vmatpush.bf16.msrb.mxu1 %v6742_v35  ;;  %v6718_v60 = vor.u32 %v7868_v63, %v6715_v24 }
 0x60e   :  { %3683 = vmatpush.bf16.msra.mxu2 %v6762_v7  ;;  %v6707_v7 = vld [vmem:[#allocation9 + $0x10] sm:$0xf0] }
 0x60f   :  { %v6710_v25 = vor.u32 %v7867_v2, %v6707_v7 }
 0x610   :  { %3659 = vmatpush.bf16.msra.mxu0 %v6722_v53  ;;  %3699 = vmatpush.bf16.msra.mxu3 %v6718_v60 }
 0x611   :  { %3672 = vmatpush.bf16.msrb.mxu1 %v6726_v6 }
 0x612   :  { %3684 = vmatpush.bf16.msra.mxu2 %v6746_v33 }
 0x614   :  { %3660 = vmatpush.bf16.msra.mxu0 %v6706_v18 }
 0x615   :  { %3673 = vmatpush.bf16.msrb.mxu1 %v6710_v25 }
 0x616   :  { %3685 = vmatpush.bf16.msra.mxu2 %v6730_v36 }
 0x61a   :  { %3686 = vmatpush.bf16.msra.mxu2 %v6714_v20 }
 0x67f   :  { %v3390_v35 = vpop.f32.mrf.mxu0  ;;  %v3403_v33 = vpop.f32.mrf.mxu1 }
 0x680   :  { %v3433_v61 = vadd.f32 %v3390_v35, %v2772_v56  ;;  %v3434_v47 = vadd.f32 %v3403_v33, %v2801_v34  ;;  %v6945_v56 = vld [vmem:[#allocation9 + $0xe0] sm:$0xf]  ;;  %v7929_v34 = vld [vmem:[#allocation9 + $0xec] sm:$0xf0]  ;;  %v7927_v35 = vld [vmem:[#allocation9 + $0xe4] sm:$0xf] }
 0x681   :  { %v6947_v33 = vld [vmem:[#allocation9 + $0xf0] sm:$0xf0] }
 0x682   :  { %v3437_v5 = vmul.f32 0.5, %v3433_v61  ;;  %v3438_v48 = vmul.f32 0.5, %v3434_v47  ;;  %v6953_v61 = vld [vmem:[#allocation9 + $0xe8] sm:$0xf]  ;;  %v7930_v47 = vld [vmem:[#allocation9 + $0xf4] sm:$0xf0] }
 0x684   :  { %8168 = vtanh.f32 %v3437_v5  ;;  %v6950_v5 = vor.u32 %v7927_v35, %v6947_v33  ;;  %v7917_v35 = vld [vmem:[#allocation9 + $0x8c] sm:$0xf0] }
 0x685   :  { %8170 = vtanh.f32 %v3438_v48  ;;  %v6954_v48 = vor.u32 %v7930_v47, %v6953_v61  ;;  %v6899_v61 = vld [vmem:[#allocation9 + $0x90] sm:$0xf0]  ;;  %v6905_v47 = vld [vmem:[#allocation9 + $0x88] sm:$0xf] }
 0x686   :  { %v3416_v53 = vpop.f32.mrf.mxu2  ;;  %v3429_v0 = vpop.f32.mrf.mxu3  ;;  %3938 = vmatpush.bf16.msra.mxu1 %v6950_v5  ;;  %v7918_v5 = vld [vmem:[#allocation9 + $0x94] sm:$0xf0] }
 0x687   :  { %v3435_v10 = vadd.f32 %v3416_v53, %v2830_v50  ;;  %v3436_v14 = vadd.f32 %v3429_v0, %v2859_v21  ;;  %v3392_v27 = vpop.f32.mrf.mxu0  ;;  %v3405_v37 = vpop.f32.mrf.mxu1  ;;  %v7928_v50 = vld [vmem:[#allocation9 + $0xec] sm:$0xf]  ;;  %v6955_v21 = vld [vmem:[#allocation9 + $0xf8] sm:$0xf0]  ;;  %3951 = vmatpush.bf16.msrb.mxu2 %v6954_v48  ;;  %v6929_v0 = vld [vmem:[#allocation9 + $0xc0] sm:$0xf] }
 0x688   :  { %v6958_v53 = vor.u32 %v7928_v50, %v6955_v21  ;;  %v6931_v37 = vld [vmem:[#allocation9 + $0xd0] sm:$0xf0]  ;;  %v6906_v50 = vor.u32 %v7918_v5, %v6905_v47  ;;  %v7916_v21 = vld [vmem:[#allocation9 + $0x8c] sm:$0xf]  ;;  %v6857_v5 = vld [vmem:[#allocation9 + $0x28] sm:$0xf] }
 0x689   :  { %v3439_v6 = vmul.f32 0.5, %v3435_v10  ;;  %8172 = vtanh.f32 %v3436_v14  ;;  %v7925_v10 = vld [vmem:[#allocation9 + $0xcc] sm:$0xf0]  ;;  %v7923_v14 = vld [vmem:[#allocation9 + $0xc4] sm:$0xf] }
 0x68a   :  { %v8169_v36 = vpop.eup %8168  ;;  %3964 = vmatpush.bf16.msrb.mxu3 %v6958_v53  ;;  %v6930_v27 = vor.u32 %v7925_v10, %v6929_v0  ;;  %v6907_v53 = vld [vmem:[#allocation9 + $0x98] sm:$0xf0]  ;;  %v6881_v10 = vld [vmem:[#allocation9 + $0x60] sm:$0xf]  ;;  %v6851_v47 = vld [vmem:[#allocation9 + $0x30] sm:$0xf0] }
 0x68b   :  { %v8171_v38 = vpop.eup %8170  ;;  %v3443_v52 = vmul.f32 0.5, %v8169_v36  ;;  %8174 = vtanh.f32 %v3439_v6  ;;  %v6937_v6 = vld [vmem:[#allocation9 + $0xc8] sm:$0xf]  ;;  %v7926_v36 = vld [vmem:[#allocation9 + $0xd4] sm:$0xf0]  ;;  %v6910_v0 = vor.u32 %v7916_v21, %v6907_v53 }
 0x68c   :  { %v3444_v58 = vmul.f32 0.5, %v8171_v38  ;;  %v6934_v38 = vor.u32 %v7923_v14, %v6931_v37  ;;  %v7913_v14 = vld [vmem:[#allocation9 + $0x6c] sm:$0xf0]  ;;  %v7904_v53 = vld [vmem:[#allocation9 + $0x2c] sm:$0xf] }
 0x68d   :  { %v3446_v11 = vadd.f32 0.5, %v3443_v52  ;;  %v6938_v52 = vor.u32 %v7926_v36, %v6937_v6  ;;  %v6882_v37 = vor.u32 %v7913_v14, %v6881_v10  ;;  %v6883_v6 = vld [vmem:[#allocation9 + $0x70] sm:$0xf0]  ;;  %v6889_v36 = vld [vmem:[#allocation9 + $0x68] sm:$0xf] }
 0x68e   :  { %v3447_v32 = vadd.f32 0.5, %v3444_v58  ;;  %v3418_v39 = vpop.f32.mrf.mxu2  ;;  %v3431_v2 = vpop.f32.mrf.mxu3  ;;  %v7924_v58 = vld [vmem:[#allocation9 + $0xcc] sm:$0xf]  ;;  %3939 = vmatpush.bf16.msra.mxu1 %v6934_v38  ;;  %v7914_v38 = vld [vmem:[#allocation9 + $0x74] sm:$0xf0] }
 0x68f   :  { %v8173_v7 = vpop.eup %8172  ;;  %3952 = vmatpush.bf16.msrb.mxu2 %v6938_v52  ;;  %v6913_v39 = vld [vmem:[#allocation9 + $0xa0] sm:$0xf]  ;;  %v7921_v2 = vld [vmem:[#allocation9 + $0xac] sm:$0xf0] }
 0x690   :  { %v3450_v1 = vmul.f32 %v3447_v32, %v8788_v26  ;;  %v3451_v18 = vmul.f32 %v8173_v7, %v3446_v11  ;;  %v6946_v26 = vor.u32 %v7929_v34, %v6945_v56  ;;  %v6939_v11 = vld [vmem:[#allocation9 + $0xd8] sm:$0xf0]  ;;  %v7919_v7 = vld [vmem:[#allocation9 + $0xa4] sm:$0xf]  ;;  %v6897_v34 = vld [vmem:[#allocation9 + $0x80] sm:$0xf] }
 0x691   :  { %v8175_v12 = vpop.eup %8174  ;;  %v6942_v32 = vor.u32 %v7924_v58, %v6939_v11  ;;  %v6898_v33 = vor.u32 %v7917_v35, %v6897_v34  ;;  %v6890_v58 = vor.u32 %v7914_v38, %v6889_v36  ;;  %v7912_v11 = vld [vmem:[#allocation9 + $0x6c] sm:$0xf]  ;;  %v6849_v35 = vld [vmem:[#allocation9 + $0x20] sm:$0xf]  ;;  %v6841_v38 = vld [vmem:[#allocation9 + $0x8] sm:$0xf] }
 0x692   :  { %v8800_v23 = vadd.f32 %v3451_v18, %v3450_v1  ;;  %v3445_v63 = vmul.f32 0.5, %v8175_v12  ;;  %3925 = vmatpush.bf16.msrb.mxu0 %v6946_v26  ;;  %v6914_v1 = vor.u32 %v7921_v2, %v6913_v39  ;;  %v6915_v18 = vld [vmem:[#allocation9 + $0xb0] sm:$0xf0]  ;;  %v6921_v12 = vld [vmem:[#allocation9 + $0xa8] sm:$0xf] }
 0x693   :  { %3965 = vmatpush.bf16.msrb.mxu3 %v6942_v32  ;;  %v7915_v26 = vld [vmem:[#allocation9 + $0x84] sm:$0xf]  ;;  %v6891_v32 = vld [vmem:[#allocation9 + $0x78] sm:$0xf0]  ;;  %v6865_v2 = vld [vmem:[#allocation9 + $0x40] sm:$0xf] }
 0x694   :  { %8176 = vtanh.f32 %v8800_v23  ;;  %v3448_v25 = vadd.f32 0.5, %v3445_v63  ;;  %v7922_v63 = vld [vmem:[#allocation9 + $0xb4] sm:$0xf0]  ;;  %v6902_v48 = vor.u32 %v7915_v26, %v6899_v61  ;;  %v6894_v39 = vor.u32 %v7912_v11, %v6891_v32  ;;  %v7905_v26 = vld [vmem:[#allocation9 + $0x2c] sm:$0xf0] }
 0x695   :  { %v6850_v61 = vor.u32 %v7905_v26, %v6849_v35  ;;  %v6833_v10 = vld [vmem:[#allocation9] sm:$0xf] }
 0x696   :  { %3926 = vmatpush.bf16.msrb.mxu0 %v6930_v27  ;;  %v7911_v27 = vld [vmem:[#allocation9 + $0x64] sm:$0xf] }
 0x697   :  { %v6886_v52 = vor.u32 %v7911_v27, %v6883_v6  ;;  %v7901_v27 = vld [vmem:[#allocation9 + $0xc] sm:$0xf0]  ;;  %v6835_v6 = vld [vmem:[#allocation9 + $0x10] sm:$0xf0] }
 0x698   :  { %v6834_v36 = vor.u32 %v7901_v27, %v6833_v10 }
 0x69a   :  { %v8177_v20 = vpop.eup %8176  ;;  %3927 = vmatpush.bf16.msrb.mxu0 %v6914_v1  ;;  %v7907_v1 = vld [vmem:[#allocation9 + $0x44] sm:$0xf] }
 0x69b   :  { %v3454_v24 = vmul.f32 %v8177_v20, %v3448_v25  ;;  %v6918_v25 = vor.u32 %v7919_v7, %v6915_v18  ;;  %v6922_v20 = vor.u32 %v7922_v63, %v6921_v12  ;;  %v7909_v7 = vld [vmem:[#allocation9 + $0x4c] sm:$0xf0]  ;;  %v6867_v12 = vld [vmem:[#allocation9 + $0x50] sm:$0xf0]  ;;  %v6873_v63 = vld [vmem:[#allocation9 + $0x48] sm:$0xf] }
 0x69c   :  { %v6866_v18 = vor.u32 %v7909_v7, %v6865_v2  ;;  %v2775_v7 = vadd.f32 %v8718_v54, %v8765_v17 }
 0x69d   :  { %v3455_v60 = vpack.c.bf16 %v3454_v24, %v3454_v24  ;;  %v7920_v24 = vld [vmem:[#allocation9 + $0xac] sm:$0xf]  ;;  %3940 = vmatpush.bf16.msra.mxu1 %v6918_v25  ;;  %3953 = vmatpush.bf16.msrb.mxu2 %v6922_v20  ;;  %v7910_v25 = vld [vmem:[#allocation9 + $0x54] sm:$0xf0]  ;;  %v6870_v20 = vor.u32 %v7907_v1, %v6867_v12  ;;  %v2804_v1 = vadd.f32 %v8720_v40, %v8767_v9 }
 0x69e   :  { %3928 = vmatpush.bf16.msrb.mxu0 %v6898_v33  ;;  %v7903_v33 = vld [vmem:[#allocation9 + $0x24] sm:$0xf] }
 0x69f   :  { %3456 = vst [vmem:[#allocation2 + $0x4] sm:$0xf] %v3455_v60  ;;  %3661 = vmatmul.bf16.vlgmr.msra.gmra.mxu0 %v3455_v60  ;;  %3674 = vmatmul.bf16.vlgmr.msrb.gmra.mxu1 %v3455_v60 }
 0x6a0   :  { %3687 = vmatmul.bf16.vlgmr.msra.gmra.mxu2 %v3455_v60  ;;  %3700 = vmatmul.bf16.vlgmr.msra.gmra.mxu3 %v3455_v60  ;;  %v6923_v60 = vld [vmem:[#allocation9 + $0xb8] sm:$0xf0] }
 0x6a1   :  { %v6926_v56 = vor.u32 %v7920_v24, %v6923_v60  ;;  %3941 = vmatpush.bf16.msra.mxu1 %v6902_v48  ;;  %3954 = vmatpush.bf16.msrb.mxu2 %v6906_v50  ;;  %v6874_v24 = vor.u32 %v7910_v25, %v6873_v63  ;;  %v7908_v60 = vld [vmem:[#allocation9 + $0x4c] sm:$0xf]  ;;  %v7906_v48 = vld [vmem:[#allocation9 + $0x34] sm:$0xf0]  ;;  %v6854_v50 = vor.u32 %v7903_v33, %v6851_v47 }
 0x6a2   :  { %3929 = vmatpush.bf16.msrb.mxu0 %v6882_v37  ;;  %v6858_v21 = vor.u32 %v7906_v48, %v6857_v5  ;;  %v7899_v37 = vld [vmem:[#allocation9 + $0x4] sm:$0xf] }
 0x6a3   :  { %3966 = vmatpush.bf16.msrb.mxu3 %v6926_v56  ;;  %v6875_v56 = vld [vmem:[#allocation9 + $0x58] sm:$0xf0]  ;;  %v6838_v11 = vor.u32 %v7899_v37, %v6835_v6 }
 0x6a4   :  { %v6878_v34 = vor.u32 %v7908_v60, %v6875_v56  ;;  %v2833_v60 = vadd.f32 %v8722_v41, %v8777_v59  ;;  %v2862_v56 = vadd.f32 %v8724_v42, %v8779_v31 }
 0x6a5   :  { %3942 = vmatpush.bf16.msra.mxu1 %v6886_v52  ;;  %3955 = vmatpush.bf16.msrb.mxu2 %v6890_v58  ;;  %v7902_v52 = vld [vmem:[#allocation9 + $0x14] sm:$0xf0]  ;;  %v7900_v58 = vld [vmem:[#allocation9 + $0xc] sm:$0xf] }
 0x6a6   :  { %3930 = vmatpush.bf16.msrb.mxu0 %v6866_v18  ;;  %v6842_v32 = vor.u32 %v7902_v52, %v6841_v38 }
 0x6a7   :  { %3967 = vmatpush.bf16.msrb.mxu3 %v6910_v0  ;;  %v6859_v0 = vld [vmem:[#allocation9 + $0x38] sm:$0xf0] }
 0x6a8   :  { %v6862_v14 = vor.u32 %v7904_v53, %v6859_v0 }
 0x6a9   :  { %3943 = vmatpush.bf16.msra.mxu1 %v6870_v20  ;;  %3956 = vmatpush.bf16.msrb.mxu2 %v6874_v24 }
 0x6aa   :  { %3931 = vmatpush.bf16.msrb.mxu0 %v6850_v61 }
 0x6ab   :  { %3968 = vmatpush.bf16.msrb.mxu3 %v6894_v39  ;;  %v6843_v39 = vld [vmem:[#allocation9 + $0x18] sm:$0xf0] }
 0x6ac   :  { %v6846_v2 = vor.u32 %v7900_v58, %v6843_v39  ;;  %v7959_v39 = vld [vmem:[#allocation9 + $0xe4] sm:$0xf] }
 0x6ad   :  { %3944 = vmatpush.bf16.msra.mxu1 %v6854_v50  ;;  %3957 = vmatpush.bf16.msrb.mxu2 %v6858_v21 }
 0x6ae   :  { %3932 = vmatpush.bf16.msrb.mxu0 %v6834_v36 }
 0x6af   :  { %3969 = vmatpush.bf16.msrb.mxu3 %v6878_v34 }
 0x6b1   :  { %3945 = vmatpush.bf16.msra.mxu1 %v6838_v11  ;;  %3958 = vmatpush.bf16.msrb.mxu2 %v6842_v32  ;;  %v7073_v11 = vld [vmem:[#allocation9 + $0xe0] sm:$0xf]  ;;  %v7961_v32 = vld [vmem:[#allocation9 + $0xec] sm:$0xf0] }
 0x6b3   :  { %3970 = vmatpush.bf16.msrb.mxu3 %v6862_v14 }
 0x6b7   :  { %3971 = vmatpush.bf16.msrb.mxu3 %v6846_v2  ;;  %v7075_v2 = vld [vmem:[#allocation9 + $0xf0] sm:$0xf0] }
 0x71c   :  { %v3662_v18 = vpop.f32.mrf.mxu0  ;;  %v3675_v12 = vpop.f32.mrf.mxu1 }
 0x71d   :  { %v3705_v63 = vadd.f32 %v3662_v18, %v2775_v7  ;;  %v3706_v25 = vadd.f32 %v3675_v12, %v2804_v1  ;;  %v7081_v7 = vld [vmem:[#allocation9 + $0xe8] sm:$0xf]  ;;  %v7962_v1 = vld [vmem:[#allocation9 + $0xf4] sm:$0xf0]  ;;  %v7078_v18 = vor.u32 %v7959_v39, %v7075_v2 }
 0x71e   :  { %v7082_v12 = vor.u32 %v7962_v1, %v7081_v7  ;;  %v7033_v39 = vld [vmem:[#allocation9 + $0x88] sm:$0xf]  ;;  %v7948_v1 = vld [vmem:[#allocation9 + $0x8c] sm:$0xf] }
 0x71f   :  { %v3709_v20 = vmul.f32 0.5, %v3705_v63  ;;  %v3710_v24 = vmul.f32 0.5, %v3706_v25  ;;  %v7960_v63 = vld [vmem:[#allocation9 + $0xec] sm:$0xf]  ;;  %v7083_v25 = vld [vmem:[#allocation9 + $0xf8] sm:$0xf0]  ;;  %4210 = vmatpush.bf16.msrb.mxu1 %v7078_v18 }
 0x720   :  { %4223 = vmatpush.bf16.msra.mxu2 %v7082_v12  ;;  %v7035_v18 = vld [vmem:[#allocation9 + $0x98] sm:$0xf0] }
 0x721   :  { %8178 = vtanh.f32 %v3709_v20  ;;  %v7086_v20 = vor.u32 %v7960_v63, %v7083_v25  ;;  %v7038_v12 = vor.u32 %v7948_v1, %v7035_v18  ;;  %v7009_v63 = vld [vmem:[#allocation9 + $0x60] sm:$0xf]  ;;  %v7945_v25 = vld [vmem:[#allocation9 + $0x6c] sm:$0xf0] }
 0x722   :  { %8180 = vtanh.f32 %v3710_v24  ;;  %v7057_v24 = vld [vmem:[#allocation9 + $0xc0] sm:$0xf]  ;;  %v7933_v18 = vld [vmem:[#allocation9 + $0xc] sm:$0xf0] }
 0x723   :  { %v3688_v34 = vpop.f32.mrf.mxu2  ;;  %v3701_v54 = vpop.f32.mrf.mxu3  ;;  %4236 = vmatpush.bf16.msra.mxu3 %v7086_v20  ;;  %v7943_v20 = vld [vmem:[#allocation9 + $0x64] sm:$0xf] }
 0x724   :  { %v3707_v35 = vadd.f32 %v3688_v34, %v2833_v60  ;;  %v3708_v26 = vadd.f32 %v3701_v54, %v2862_v56  ;;  %v3664_v40 = vpop.f32.mrf.mxu0  ;;  %v3677_v33 = vpop.f32.mrf.mxu1  ;;  %v7957_v60 = vld [vmem:[#allocation9 + $0xcc] sm:$0xf0]  ;;  %v7955_v56 = vld [vmem:[#allocation9 + $0xc4] sm:$0xf]  ;;  %v7059_v54 = vld [vmem:[#allocation9 + $0xd0] sm:$0xf0] }
 0x725   :  { %v7058_v34 = vor.u32 %v7957_v60, %v7057_v24  ;;  %v7062_v40 = vor.u32 %v7955_v56, %v7059_v54  ;;  %v7010_v24 = vor.u32 %v7945_v25, %v7009_v63  ;;  %v7011_v60 = vld [vmem:[#allocation9 + $0x70] sm:$0xf0]  ;;  %v7017_v56 = vld [vmem:[#allocation9 + $0x68] sm:$0xf] }
 0x726   :  { %v3711_v61 = vmul.f32 0.5, %v3707_v35  ;;  %8182 = vtanh.f32 %v3708_v26  ;;  %v7065_v35 = vld [vmem:[#allocation9 + $0xc8] sm:$0xf]  ;;  %v7958_v26 = vld [vmem:[#allocation9 + $0xd4] sm:$0xf0]  ;;  %v7014_v54 = vor.u32 %v7943_v20, %v7011_v60 }
 0x727   :  { %v8179_v47 = vpop.eup %8178  ;;  %v7066_v33 = vor.u32 %v7958_v26, %v7065_v35  ;;  %4211 = vmatpush.bf16.msrb.mxu1 %v7062_v40  ;;  %v7944_v26 = vld [vmem:[#allocation9 + $0x6c] sm:$0xf]  ;;  %v7019_v40 = vld [vmem:[#allocation9 + $0x78] sm:$0xf0]  ;;  %v6963_v63 = vld [vmem:[#allocation9 + $0x10] sm:$0xf0] }
 0x728   :  { %v8181_v5 = vpop.eup %8180  ;;  %v3715_v48 = vmul.f32 0.5, %v8179_v47  ;;  %8184 = vtanh.f32 %v3711_v61  ;;  %v7956_v61 = vld [vmem:[#allocation9 + $0xcc] sm:$0xf]  ;;  %v7067_v47 = vld [vmem:[#allocation9 + $0xd8] sm:$0xf0] }
 0x729   :  { %v3716_v50 = vmul.f32 0.5, %v8181_v5  ;;  %v7070_v5 = vor.u32 %v7956_v61, %v7067_v47  ;;  %4224 = vmatpush.bf16.msra.mxu2 %v7066_v33  ;;  %v7022_v33 = vor.u32 %v7944_v26, %v7019_v40  ;;  %v6993_v61 = vld [vmem:[#allocation9 + $0x40] sm:$0xf]  ;;  %v7941_v47 = vld [vmem:[#allocation9 + $0x4c] sm:$0xf0]  ;;  %v2777_v26 = vadd.f32 %v8726_v19, %v8765_v17 }
 0x72a   :  { %v3718_v21 = vadd.f32 0.5, %v3715_v48  ;;  %v7041_v48 = vld [vmem:[#allocation9 + $0xa0] sm:$0xf]  ;;  %v6969_v20 = vld [vmem:[#allocation9 + $0x8] sm:$0xf]  ;;  %v2806_v40 = vadd.f32 %v8728_v57, %v8767_v9 }
 0x72b   :  { %v3719_v53 = vadd.f32 0.5, %v3716_v50  ;;  %v3690_v41 = vpop.f32.mrf.mxu2  ;;  %v3703_v0 = vpop.f32.mrf.mxu3  ;;  %v7953_v50 = vld [vmem:[#allocation9 + $0xac] sm:$0xf0]  ;;  %4237 = vmatpush.bf16.msra.mxu3 %v7070_v5  ;;  %v7939_v5 = vld [vmem:[#allocation9 + $0x44] sm:$0xf] }
 0x72c   :  { %v8183_v10 = vpop.eup %8182  ;;  %v7043_v41 = vld [vmem:[#allocation9 + $0xb0] sm:$0xf0]  ;;  %v7049_v0 = vld [vmem:[#allocation9 + $0xa8] sm:$0xf]  ;;  %v7932_v60 = vld [vmem:[#allocation9 + $0xc] sm:$0xf] }
 0x72d   :  { %v3722_v42 = vmul.f32 %v3719_v53, %v8800_v23  ;;  %v3723_v14 = vmul.f32 %v8183_v10, %v3718_v21  ;;  %v7074_v23 = vor.u32 %v7961_v32, %v7073_v11  ;;  %v7951_v21 = vld [vmem:[#allocation9 + $0xa4] sm:$0xf]  ;;  %v7042_v53 = vor.u32 %v7953_v50, %v7041_v48  ;;  %v7954_v10 = vld [vmem:[#allocation9 + $0xb4] sm:$0xf0]  ;;  %v7027_v32 = vld [vmem:[#allocation9 + $0x90] sm:$0xf0] }
 0x72e   :  { %v8185_v27 = vpop.eup %8184  ;;  %v6994_v48 = vor.u32 %v7941_v47, %v6993_v61  ;;  %v6995_v50 = vld [vmem:[#allocation9 + $0x50] sm:$0xf0] }
 0x72f   :  { %v8812_v37 = vadd.f32 %v3723_v14, %v3722_v42  ;;  %v3717_v6 = vmul.f32 0.5, %v8185_v27  ;;  %4197 = vmatpush.bf16.msra.mxu0 %v7074_v23  ;;  %v7046_v42 = vor.u32 %v7951_v21, %v7043_v41  ;;  %v7050_v14 = vor.u32 %v7954_v10, %v7049_v0  ;;  %v7952_v27 = vld [vmem:[#allocation9 + $0xac] sm:$0xf]  ;;  %v7950_v23 = vld [vmem:[#allocation9 + $0x94] sm:$0xf0] }
 0x730   :  { %v7034_v7 = vor.u32 %v7950_v23, %v7033_v39  ;;  %v7001_v21 = vld [vmem:[#allocation9 + $0x48] sm:$0xf]  ;;  %v6998_v41 = vor.u32 %v7939_v5, %v6995_v50  ;;  %v7940_v10 = vld [vmem:[#allocation9 + $0x4c] sm:$0xf] }
 0x731   :  { %8186 = vtanh.f32 %v8812_v37  ;;  %v3720_v36 = vadd.f32 0.5, %v3717_v6  ;;  %v7051_v6 = vld [vmem:[#allocation9 + $0xb8] sm:$0xf0]  ;;  %4212 = vmatpush.bf16.msrb.mxu1 %v7046_v42  ;;  %4225 = vmatpush.bf16.msra.mxu2 %v7050_v14  ;;  %v7936_v23 = vld [vmem:[#allocation9 + $0x2c] sm:$0xf] }
 0x732   :  { %v7003_v42 = vld [vmem:[#allocation9 + $0x58] sm:$0xf0] }
 0x733   :  { %4198 = vmatpush.bf16.msra.mxu0 %v7058_v34  ;;  %v7946_v34 = vld [vmem:[#allocation9 + $0x74] sm:$0xf0]  ;;  %v7006_v14 = vor.u32 %v7940_v10, %v7003_v42 }
 0x734   :  { %v7018_v35 = vor.u32 %v7946_v34, %v7017_v56 }
 0x735   :  { %4226 = vmatpush.bf16.msra.mxu2 %v7034_v7  ;;  %v6961_v7 = vld [vmem:[#allocation9] sm:$0xf] }
 0x736   :  { %v6962_v25 = vor.u32 %v7933_v18, %v6961_v7 }
 0x737   :  { %v8187_v38 = vpop.eup %8186  ;;  %4199 = vmatpush.bf16.msra.mxu0 %v7042_v53  ;;  %v7942_v53 = vld [vmem:[#allocation9 + $0x54] sm:$0xf0] }
 0x738   :  { %v3726_v52 = vmul.f32 %v8187_v38, %v3720_v36  ;;  %v7054_v36 = vor.u32 %v7952_v27, %v7051_v6  ;;  %v7025_v38 = vld [vmem:[#allocation9 + $0x80] sm:$0xf]  ;;  %v7002_v0 = vor.u32 %v7942_v53, %v7001_v21  ;;  %v7937_v6 = vld [vmem:[#allocation9 + $0x2c] sm:$0xf0]  ;;  %v2835_v21 = vadd.f32 %v8730_v29, %v8777_v59 }
 0x739   :  { %4227 = vmatpush.bf16.msra.mxu2 %v7018_v35  ;;  %v6977_v27 = vld [vmem:[#allocation9 + $0x20] sm:$0xf]  ;;  %v2864_v53 = vadd.f32 %v8732_v43, %v8779_v31 }
 0x73a   :  { %v3727_v58 = vpack.c.bf16 %v3726_v52, %v3726_v52  ;;  %v7949_v52 = vld [vmem:[#allocation9 + $0x8c] sm:$0xf0]  ;;  %4238 = vmatpush.bf16.msra.mxu3 %v7054_v36  ;;  %v7935_v36 = vld [vmem:[#allocation9 + $0x24] sm:$0xf] }
 0x73b   :  { %v7026_v11 = vor.u32 %v7949_v52, %v7025_v38  ;;  %v6978_v38 = vor.u32 %v7937_v6, %v6977_v27  ;;  %v6979_v52 = vld [vmem:[#allocation9 + $0x30] sm:$0xf0] }
 0x73c   :  { %3728 = vst [vmem:[#allocation2 + $0x8] sm:$0xf] %v3727_v58  ;;  %3933 = vmatmul.bf16.vlgmr.msrb.gmra.mxu0 %v3727_v58  ;;  %3946 = vmatmul.bf16.vlgmr.msra.gmra.mxu1 %v3727_v58 }
 0x73d   :  { %3959 = vmatmul.bf16.vlgmr.msrb.gmra.mxu2 %v3727_v58  ;;  %3972 = vmatmul.bf16.vlgmr.msrb.gmra.mxu3 %v3727_v58  ;;  %v7947_v58 = vld [vmem:[#allocation9 + $0x84] sm:$0xf] }
 0x73e   :  { %v7030_v2 = vor.u32 %v7947_v58, %v7027_v32  ;;  %4200 = vmatpush.bf16.msra.mxu0 %v7026_v11  ;;  %4239 = vmatpush.bf16.msra.mxu3 %v7038_v12  ;;  %v6985_v58 = vld [vmem:[#allocation9 + $0x28] sm:$0xf]  ;;  %v7938_v11 = vld [vmem:[#allocation9 + $0x34] sm:$0xf0]  ;;  %v6982_v32 = vor.u32 %v7935_v36, %v6979_v52  ;;  %v7931_v12 = vld [vmem:[#allocation9 + $0x4] sm:$0xf] }
 0x73f   :  { %4228 = vmatpush.bf16.msra.mxu2 %v7002_v0  ;;  %v6986_v39 = vor.u32 %v7938_v11, %v6985_v58  ;;  %v6966_v56 = vor.u32 %v7931_v12, %v6963_v63 }
 0x740   :  { %4213 = vmatpush.bf16.msrb.mxu1 %v7030_v2  ;;  %v6987_v2 = vld [vmem:[#allocation9 + $0x38] sm:$0xf0] }
 0x741   :  { %v6990_v1 = vor.u32 %v7936_v23, %v6987_v2 }
 0x742   :  { %4201 = vmatpush.bf16.msra.mxu0 %v7010_v24  ;;  %4240 = vmatpush.bf16.msra.mxu3 %v7022_v33  ;;  %v7934_v24 = vld [vmem:[#allocation9 + $0x14] sm:$0xf0] }
 0x743   :  { %4229 = vmatpush.bf16.msra.mxu2 %v6986_v39  ;;  %v6970_v34 = vor.u32 %v7934_v24, %v6969_v20  ;;  %v7993_v20 = vld [vmem:[#allocation9 + $0xec] sm:$0xf0]  ;;  %v7991_v24 = vld [vmem:[#allocation9 + $0xe4] sm:$0xf] }
 0x744   :  { %4214 = vmatpush.bf16.msrb.mxu1 %v7014_v54  ;;  %v6971_v54 = vld [vmem:[#allocation9 + $0x18] sm:$0xf0] }
 0x745   :  { %v6974_v35 = vor.u32 %v7932_v60, %v6971_v54  ;;  %v7203_v60 = vld [vmem:[#allocation9 + $0xf0] sm:$0xf0] }
 0x746   :  { %4202 = vmatpush.bf16.msra.mxu0 %v6994_v48  ;;  %4241 = vmatpush.bf16.msra.mxu3 %v7006_v14  ;;  %v7206_v54 = vor.u32 %v7991_v24, %v7203_v60  ;;  %v7980_v24 = vld [vmem:[#allocation9 + $0x8c] sm:$0xf] }
 0x747   :  { %4230 = vmatpush.bf16.msra.mxu2 %v6970_v34  ;;  %v7994_v34 = vld [vmem:[#allocation9 + $0xf4] sm:$0xf0] }
 0x748   :  { %4215 = vmatpush.bf16.msrb.mxu1 %v6998_v41 }
 0x74a   :  { %4203 = vmatpush.bf16.msra.mxu0 %v6978_v38  ;;  %4242 = vmatpush.bf16.msra.mxu3 %v6990_v1 }
 0x74c   :  { %4216 = vmatpush.bf16.msrb.mxu1 %v6982_v32 }
 0x74e   :  { %4204 = vmatpush.bf16.msra.mxu0 %v6962_v25  ;;  %4243 = vmatpush.bf16.msra.mxu3 %v6974_v35  ;;  %v7201_v25 = vld [vmem:[#allocation9 + $0xe0] sm:$0xf] }
 0x750   :  { %4217 = vmatpush.bf16.msrb.mxu1 %v6966_v56  ;;  %v7209_v56 = vld [vmem:[#allocation9 + $0xe8] sm:$0xf] }
 0x751   :  { %v7210_v35 = vor.u32 %v7994_v34, %v7209_v56  ;;  %v7137_v56 = vld [vmem:[#allocation9 + $0x60] sm:$0xf]  ;;  %v7977_v34 = vld [vmem:[#allocation9 + $0x6c] sm:$0xf0] }
 0x753   :  { %4495 = vmatpush.bf16.msrb.mxu2 %v7210_v35  ;;  %v7138_v35 = vor.u32 %v7977_v34, %v7137_v56  ;;  %v7964_v56 = vld [vmem:[#allocation9 + $0xc] sm:$0xf] }
 0x754   :  { %4482 = vmatpush.bf16.msra.mxu1 %v7206_v54  ;;  %v7975_v54 = vld [vmem:[#allocation9 + $0x64] sm:$0xf] }
 0x7b9   :  { %v3934_v33 = vpop.f32.mrf.mxu0  ;;  %v3947_v61 = vpop.f32.mrf.mxu1 }
 0x7ba   :  { %v3977_v47 = vadd.f32 %v3934_v33, %v2777_v26  ;;  %v3978_v5 = vadd.f32 %v3947_v61, %v2806_v40  ;;  %v7992_v26 = vld [vmem:[#allocation9 + $0xec] sm:$0xf]  ;;  %v7211_v40 = vld [vmem:[#allocation9 + $0xf8] sm:$0xf0]  ;;  %v7185_v61 = vld [vmem:[#allocation9 + $0xc0] sm:$0xf] }
 0x7bb   :  { %v7214_v33 = vor.u32 %v7992_v26, %v7211_v40  ;;  %v7139_v26 = vld [vmem:[#allocation9 + $0x70] sm:$0xf0]  ;;  %v7145_v40 = vld [vmem:[#allocation9 + $0x68] sm:$0xf] }
 0x7bc   :  { %v3981_v48 = vmul.f32 0.5, %v3977_v47  ;;  %v3982_v50 = vmul.f32 0.5, %v3978_v5  ;;  %v7989_v47 = vld [vmem:[#allocation9 + $0xcc] sm:$0xf0]  ;;  %v7987_v5 = vld [vmem:[#allocation9 + $0xc4] sm:$0xf] }
 0x7bd   :  { %4508 = vmatpush.bf16.msrb.mxu3 %v7214_v33  ;;  %v7978_v33 = vld [vmem:[#allocation9 + $0x74] sm:$0xf0] }
 0x7be   :  { %8188 = vtanh.f32 %v3981_v48  ;;  %v7186_v48 = vor.u32 %v7989_v47, %v7185_v61  ;;  %v7142_v61 = vor.u32 %v7975_v54, %v7139_v26  ;;  %v7146_v47 = vor.u32 %v7978_v33, %v7145_v40 }
 0x7bf   :  { %8190 = vtanh.f32 %v3982_v50  ;;  %v7187_v50 = vld [vmem:[#allocation9 + $0xd0] sm:$0xf0]  ;;  %v2780_v40 = vadd.f32 %v8734_v45, %v8765_v17  ;;  %v2809_v33 = vadd.f32 %v8736_v44, %v8767_v9 }
 0x7c0   :  { %v3960_v41 = vpop.f32.mrf.mxu2  ;;  %v3973_v19 = vpop.f32.mrf.mxu3 }
 0x7c1   :  { %v3979_v0 = vadd.f32 %v3960_v41, %v2835_v21  ;;  %v3980_v10 = vadd.f32 %v3973_v19, %v2864_v53  ;;  %v3936_v57 = vpop.f32.mrf.mxu0  ;;  %v3949_v42 = vpop.f32.mrf.mxu1  ;;  %v7193_v21 = vld [vmem:[#allocation9 + $0xc8] sm:$0xf]  ;;  %v7990_v53 = vld [vmem:[#allocation9 + $0xd4] sm:$0xf0]  ;;  %v7190_v41 = vor.u32 %v7987_v5, %v7187_v50  ;;  %v7976_v5 = vld [vmem:[#allocation9 + $0x6c] sm:$0xf] }
 0x7c2   :  { %v7194_v19 = vor.u32 %v7990_v53, %v7193_v21  ;;  %v7169_v42 = vld [vmem:[#allocation9 + $0xa0] sm:$0xf]  ;;  %v7973_v53 = vld [vmem:[#allocation9 + $0x4c] sm:$0xf0] }
 0x7c3   :  { %v3983_v14 = vmul.f32 0.5, %v3979_v0  ;;  %8192 = vtanh.f32 %v3980_v10  ;;  %v7988_v0 = vld [vmem:[#allocation9 + $0xcc] sm:$0xf]  ;;  %v7195_v10 = vld [vmem:[#allocation9 + $0xd8] sm:$0xf0]  ;;  %4483 = vmatpush.bf16.msra.mxu1 %v7190_v41 }
 0x7c4   :  { %v8189_v27 = vpop.eup %8188  ;;  %v7198_v57 = vor.u32 %v7988_v0, %v7195_v10  ;;  %4496 = vmatpush.bf16.msrb.mxu2 %v7194_v19  ;;  %v7121_v21 = vld [vmem:[#allocation9 + $0x40] sm:$0xf]  ;;  %v7971_v41 = vld [vmem:[#allocation9 + $0x44] sm:$0xf]  ;;  %v7123_v0 = vld [vmem:[#allocation9 + $0x50] sm:$0xf0] }
 0x7c5   :  { %v8191_v6 = vpop.eup %8190  ;;  %v3987_v36 = vmul.f32 0.5, %v8189_v27  ;;  %8194 = vtanh.f32 %v3983_v14  ;;  %v7985_v14 = vld [vmem:[#allocation9 + $0xac] sm:$0xf0]  ;;  %v7983_v27 = vld [vmem:[#allocation9 + $0xa4] sm:$0xf]  ;;  %v7122_v19 = vor.u32 %v7973_v53, %v7121_v21  ;;  %v2838_v53 = vadd.f32 %v8738_v4, %v8777_v59 }
 0x7c6   :  { %v3988_v38 = vmul.f32 0.5, %v8191_v6  ;;  %4509 = vmatpush.bf16.msrb.mxu3 %v7198_v57  ;;  %v7170_v6 = vor.u32 %v7985_v14, %v7169_v42  ;;  %v7129_v10 = vld [vmem:[#allocation9 + $0x48] sm:$0xf]  ;;  %v7974_v57 = vld [vmem:[#allocation9 + $0x54] sm:$0xf0]  ;;  %v7126_v42 = vor.u32 %v7971_v41, %v7123_v0  ;;  %v2867_v41 = vadd.f32 %v8740_v15, %v8779_v31 }
 0x7c7   :  { %v3990_v52 = vadd.f32 0.5, %v3987_v36  ;;  %v7171_v36 = vld [vmem:[#allocation9 + $0xb0] sm:$0xf0]  ;;  %v7130_v14 = vor.u32 %v7974_v57, %v7129_v10 }
 0x7c8   :  { %v3991_v58 = vadd.f32 0.5, %v3988_v38  ;;  %v3962_v29 = vpop.f32.mrf.mxu2  ;;  %v3975_v11 = vpop.f32.mrf.mxu3  ;;  %v7177_v38 = vld [vmem:[#allocation9 + $0xa8] sm:$0xf] }
 0x7c9   :  { %v8193_v32 = vpop.eup %8192  ;;  %v7984_v11 = vld [vmem:[#allocation9 + $0xac] sm:$0xf] }
 0x7ca   :  { %v3994_v43 = vmul.f32 %v3991_v58, %v8812_v37  ;;  %v3995_v39 = vmul.f32 %v8193_v32, %v3990_v52  ;;  %v7202_v37 = vor.u32 %v7993_v20, %v7201_v25  ;;  %v7986_v52 = vld [vmem:[#allocation9 + $0xb4] sm:$0xf0]  ;;  %v7174_v58 = vor.u32 %v7983_v27, %v7171_v36  ;;  %v7179_v32 = vld [vmem:[#allocation9 + $0xb8] sm:$0xf0]  ;;  %v7972_v27 = vld [vmem:[#allocation9 + $0x4c] sm:$0xf] }
 0x7cb   :  { %v8195_v23 = vpop.eup %8194  ;;  %v7178_v29 = vor.u32 %v7986_v52, %v7177_v38  ;;  %v7105_v38 = vld [vmem:[#allocation9 + $0x20] sm:$0xf]  ;;  %v7969_v52 = vld [vmem:[#allocation9 + $0x2c] sm:$0xf0] }
 0x7cc   :  { %v8824_v2 = vadd.f32 %v3995_v39, %v3994_v43  ;;  %v3989_v7 = vmul.f32 0.5, %v8195_v23  ;;  %4469 = vmatpush.bf16.msrb.mxu0 %v7202_v37  ;;  %v7182_v43 = vor.u32 %v7984_v11, %v7179_v32  ;;  %4484 = vmatpush.bf16.msra.mxu1 %v7174_v58  ;;  %v7153_v39 = vld [vmem:[#allocation9 + $0x80] sm:$0xf]  ;;  %v7981_v23 = vld [vmem:[#allocation9 + $0x8c] sm:$0xf0] }
 0x7cd   :  { %4497 = vmatpush.bf16.msrb.mxu2 %v7178_v29  ;;  %v7163_v37 = vld [vmem:[#allocation9 + $0x98] sm:$0xf0]  ;;  %v7967_v58 = vld [vmem:[#allocation9 + $0x24] sm:$0xf]  ;;  %v7106_v29 = vor.u32 %v7969_v52, %v7105_v38  ;;  %v7107_v11 = vld [vmem:[#allocation9 + $0x30] sm:$0xf0] }
 0x7ce   :  { %8196 = vtanh.f32 %v8824_v2  ;;  %v3992_v1 = vadd.f32 0.5, %v3989_v7  ;;  %v7979_v7 = vld [vmem:[#allocation9 + $0x84] sm:$0xf]  ;;  %4510 = vmatpush.bf16.msrb.mxu3 %v7182_v43  ;;  %v7166_v60 = vor.u32 %v7980_v24, %v7163_v37  ;;  %v7113_v32 = vld [vmem:[#allocation9 + $0x28] sm:$0xf] }
 0x7cf   :  { %v7970_v43 = vld [vmem:[#allocation9 + $0x34] sm:$0xf0]  ;;  %v7097_v37 = vld [vmem:[#allocation9 + $0x8] sm:$0xf] }
 0x7d0   :  { %4470 = vmatpush.bf16.msrb.mxu0 %v7186_v48  ;;  %v7147_v48 = vld [vmem:[#allocation9 + $0x78] sm:$0xf0] }
 0x7d1   :  { %v7150_v50 = vor.u32 %v7976_v5, %v7147_v48 }
 0x7d2   :  { %4511 = vmatpush.bf16.msrb.mxu3 %v7166_v60  ;;  %v7966_v60 = vld [vmem:[#allocation9 + $0x14] sm:$0xf0] }
 0x7d3   :  { %v7098_v54 = vor.u32 %v7966_v60, %v7097_v37  ;;  %v8026_v37 = vld [vmem:[#allocation9 + $0xf4] sm:$0xf0] }
 0x7d4   :  { %v8197_v18 = vpop.eup %8196  ;;  %4471 = vmatpush.bf16.msrb.mxu0 %v7170_v6  ;;  %v7131_v6 = vld [vmem:[#allocation9 + $0x58] sm:$0xf0] }
 0x7d5   :  { %v3998_v12 = vmul.f32 %v8197_v18, %v3992_v1  ;;  %v7154_v1 = vor.u32 %v7981_v23, %v7153_v39  ;;  %v7155_v18 = vld [vmem:[#allocation9 + $0x90] sm:$0xf0]  ;;  %v7134_v36 = vor.u32 %v7972_v27, %v7131_v6  ;;  %v7110_v39 = vor.u32 %v7967_v58, %v7107_v11 }
 0x7d6   :  { %v7158_v25 = vor.u32 %v7979_v7, %v7155_v18  ;;  %4512 = vmatpush.bf16.msrb.mxu3 %v7150_v50  ;;  %v7114_v23 = vor.u32 %v7970_v43, %v7113_v32  ;;  %v7968_v7 = vld [vmem:[#allocation9 + $0x2c] sm:$0xf]  ;;  %v7089_v18 = vld [vmem:[#allocation9] sm:$0xf] }
 0x7d7   :  { %v3999_v63 = vpack.c.bf16 %v3998_v12, %v3998_v12  ;;  %v7161_v12 = vld [vmem:[#allocation9 + $0x88] sm:$0xf] }
 0x7d8   :  { %4472 = vmatpush.bf16.msrb.mxu0 %v7154_v1  ;;  %4485 = vmatpush.bf16.msra.mxu1 %v7158_v25  ;;  %v7115_v1 = vld [vmem:[#allocation9 + $0x38] sm:$0xf0]  ;;  %v7963_v25 = vld [vmem:[#allocation9 + $0x4] sm:$0xf] }
 0x7d9   :  { %4000 = vst [vmem:[#allocation2 + $0xc] sm:$0xf] %v3999_v63  ;;  %4205 = vmatmul.bf16.vlgmr.msra.gmra.mxu0 %v3999_v63  ;;  %4218 = vmatmul.bf16.vlgmr.msrb.gmra.mxu1 %v3999_v63 }
 0x7da   :  { %4231 = vmatmul.bf16.vlgmr.msra.gmra.mxu2 %v3999_v63  ;;  %4244 = vmatmul.bf16.vlgmr.msra.gmra.mxu3 %v3999_v63  ;;  %v7982_v63 = vld [vmem:[#allocation9 + $0x94] sm:$0xf0] }
 0x7db   :  { %v7162_v20 = vor.u32 %v7982_v63, %v7161_v12  ;;  %4513 = vmatpush.bf16.msrb.mxu3 %v7134_v36  ;;  %v7118_v12 = vor.u32 %v7968_v7, %v7115_v1  ;;  %v7965_v63 = vld [vmem:[#allocation9 + $0xc] sm:$0xf0] }
 0x7dc   :  { %4473 = vmatpush.bf16.msrb.mxu0 %v7138_v35  ;;  %4486 = vmatpush.bf16.msra.mxu1 %v7142_v61  ;;  %v7090_v24 = vor.u32 %v7965_v63, %v7089_v18  ;;  %v7099_v35 = vld [vmem:[#allocation9 + $0x18] sm:$0xf0]  ;;  %v8025_v63 = vld [vmem:[#allocation9 + $0xec] sm:$0xf0] }
 0x7dd   :  { %4498 = vmatpush.bf16.msrb.mxu2 %v7162_v20  ;;  %v7091_v20 = vld [vmem:[#allocation9 + $0x10] sm:$0xf0]  ;;  %v7102_v26 = vor.u32 %v7964_v56, %v7099_v35 }
 0x7de   :  { %v7094_v34 = vor.u32 %v7963_v25, %v7091_v20  ;;  %v8023_v25 = vld [vmem:[#allocation9 + $0xe4] sm:$0xf]  ;;  %v7331_v20 = vld [vmem:[#allocation9 + $0xf0] sm:$0xf0] }
 0x7df   :  { %4514 = vmatpush.bf16.msrb.mxu3 %v7118_v12  ;;  %v7329_v12 = vld [vmem:[#allocation9 + $0xe0] sm:$0xf]  ;;  %v7334_v60 = vor.u32 %v8023_v25, %v7331_v20  ;;  %v8009_v25 = vld [vmem:[#allocation9 + $0x6c] sm:$0xf0] }
 0x7e0   :  { %4474 = vmatpush.bf16.msrb.mxu0 %v7122_v19  ;;  %4487 = vmatpush.bf16.msra.mxu1 %v7126_v42 }
 0x7e1   :  { %4499 = vmatpush.bf16.msrb.mxu2 %v7146_v47 }
 0x7e3   :  { %4515 = vmatpush.bf16.msrb.mxu3 %v7102_v26  ;;  %v7313_v26 = vld [vmem:[#allocation9 + $0xc0] sm:$0xf] }
 0x7e4   :  { %4475 = vmatpush.bf16.msrb.mxu0 %v7106_v29  ;;  %4488 = vmatpush.bf16.msra.mxu1 %v7110_v39 }
 0x7e5   :  { %4500 = vmatpush.bf16.msrb.mxu2 %v7130_v14 }
 0x7e8   :  { %4476 = vmatpush.bf16.msrb.mxu0 %v7090_v24  ;;  %4489 = vmatpush.bf16.msra.mxu1 %v7094_v34  ;;  %v7337_v24 = vld [vmem:[#allocation9 + $0xe8] sm:$0xf]  ;;  %v8024_v34 = vld [vmem:[#allocation9 + $0xec] sm:$0xf] }
 0x7e9   :  { %4501 = vmatpush.bf16.msrb.mxu2 %v7114_v23  ;;  %v7338_v56 = vor.u32 %v8026_v37, %v7337_v24  ;;  %v7267_v24 = vld [vmem:[#allocation9 + $0x70] sm:$0xf0]  ;;  %v7273_v37 = vld [vmem:[#allocation9 + $0x68] sm:$0xf] }
 0x7ec   :  { %4754 = vmatpush.bf16.msrb.mxu1 %v7334_v60  ;;  %v8010_v60 = vld [vmem:[#allocation9 + $0x74] sm:$0xf0] }
 0x7ed   :  { %4502 = vmatpush.bf16.msrb.mxu2 %v7098_v54  ;;  %v7339_v54 = vld [vmem:[#allocation9 + $0xf8] sm:$0xf0] }
 0x7ee   :  { %v7342_v35 = vor.u32 %v8024_v34, %v7339_v54  ;;  %v7274_v34 = vor.u32 %v8010_v60, %v7273_v37  ;;  %v8008_v54 = vld [vmem:[#allocation9 + $0x6c] sm:$0xf] }
 0x7f0   :  { %4780 = vmatpush.bf16.msra.mxu3 %v7342_v35  ;;  %v7275_v35 = vld [vmem:[#allocation9 + $0x78] sm:$0xf0] }
 0x7f1   :  { %4767 = vmatpush.bf16.msra.mxu2 %v7338_v56 }
 0x856   :  { %v4206_v61 = vpop.f32.mrf.mxu0  ;;  %v4219_v47 = vpop.f32.mrf.mxu1 }
 0x857   :  { %v4249_v5 = vadd.f32 %v4206_v61, %v2780_v40  ;;  %v4250_v48 = vadd.f32 %v4219_v47, %v2809_v33  ;;  %v8021_v40 = vld [vmem:[#allocation9 + $0xcc] sm:$0xf0]  ;;  %v8019_v33 = vld [vmem:[#allocation9 + $0xc4] sm:$0xf]  ;;  %v7315_v47 = vld [vmem:[#allocation9 + $0xd0] sm:$0xf0] }
 0x858   :  { %v7314_v61 = vor.u32 %v8021_v40, %v7313_v26  ;;  %v7278_v26 = vor.u32 %v8008_v54, %v7275_v35  ;;  %v7249_v40 = vld [vmem:[#allocation9 + $0x40] sm:$0xf]  ;;  %v2840_v54 = vadd.f32 %v8746_v28, %v8777_v59  ;;  %v2869_v35 = vadd.f32 %v8748_v51, %v8779_v31 }
 0x859   :  { %v4253_v50 = vmul.f32 0.5, %v4249_v5  ;;  %v4254_v21 = vmul.f32 0.5, %v4250_v48  ;;  %v7321_v5 = vld [vmem:[#allocation9 + $0xc8] sm:$0xf]  ;;  %v8022_v48 = vld [vmem:[#allocation9 + $0xd4] sm:$0xf0] }
 0x85b   :  { %8198 = vtanh.f32 %v4253_v50  ;;  %v7318_v50 = vor.u32 %v8019_v33, %v7315_v47  ;;  %v8005_v33 = vld [vmem:[#allocation9 + $0x4c] sm:$0xf0] }
 0x85c   :  { %8200 = vtanh.f32 %v4254_v21  ;;  %v7322_v21 = vor.u32 %v8022_v48, %v7321_v5  ;;  %v7250_v47 = vor.u32 %v8005_v33, %v7249_v40  ;;  %v7251_v5 = vld [vmem:[#allocation9 + $0x50] sm:$0xf0]  ;;  %v7257_v48 = vld [vmem:[#allocation9 + $0x48] sm:$0xf] }
 0x85d   :  { %v4232_v19 = vpop.f32.mrf.mxu2  ;;  %v4245_v45 = vpop.f32.mrf.mxu3  ;;  %4755 = vmatpush.bf16.msrb.mxu1 %v7318_v50  ;;  %v8006_v50 = vld [vmem:[#allocation9 + $0x54] sm:$0xf0] }
 0x85e   :  { %v4251_v0 = vadd.f32 %v4232_v19, %v2838_v53  ;;  %v4252_v10 = vadd.f32 %v4245_v45, %v2867_v41  ;;  %v4208_v44 = vpop.f32.mrf.mxu0  ;;  %v4221_v57 = vpop.f32.mrf.mxu1  ;;  %v8020_v53 = vld [vmem:[#allocation9 + $0xcc] sm:$0xf]  ;;  %v7323_v41 = vld [vmem:[#allocation9 + $0xd8] sm:$0xf0]  ;;  %4768 = vmatpush.bf16.msra.mxu2 %v7322_v21  ;;  %v7297_v45 = vld [vmem:[#allocation9 + $0xa0] sm:$0xf] }
 0x85f   :  { %v7326_v19 = vor.u32 %v8020_v53, %v7323_v41  ;;  %v7299_v57 = vld [vmem:[#allocation9 + $0xb0] sm:$0xf0]  ;;  %v7258_v53 = vor.u32 %v8006_v50, %v7257_v48  ;;  %v8004_v41 = vld [vmem:[#allocation9 + $0x4c] sm:$0xf] }
 0x860   :  { %v4255_v42 = vmul.f32 0.5, %v4251_v0  ;;  %8202 = vtanh.f32 %v4252_v10  ;;  %v8017_v0 = vld [vmem:[#allocation9 + $0xac] sm:$0xf0]  ;;  %v8015_v10 = vld [vmem:[#allocation9 + $0xa4] sm:$0xf] }
 0x861   :  { %v8199_v14 = vpop.eup %8198  ;;  %4781 = vmatpush.bf16.msra.mxu3 %v7326_v19  ;;  %v7298_v44 = vor.u32 %v8017_v0, %v7297_v45  ;;  %v7259_v19 = vld [vmem:[#allocation9 + $0x58] sm:$0xf0]  ;;  %v7233_v0 = vld [vmem:[#allocation9 + $0x20] sm:$0xf] }
 0x862   :  { %v8201_v27 = vpop.eup %8200  ;;  %v4259_v6 = vmul.f32 0.5, %v8199_v14  ;;  %8204 = vtanh.f32 %v4255_v42  ;;  %v7305_v42 = vld [vmem:[#allocation9 + $0xa8] sm:$0xf]  ;;  %v8018_v14 = vld [vmem:[#allocation9 + $0xb4] sm:$0xf0]  ;;  %v7262_v45 = vor.u32 %v8004_v41, %v7259_v19 }
 0x863   :  { %v4260_v36 = vmul.f32 0.5, %v8201_v27  ;;  %v7302_v27 = vor.u32 %v8015_v10, %v7299_v57  ;;  %v8001_v10 = vld [vmem:[#allocation9 + $0x2c] sm:$0xf0] }
 0x864   :  { %v4262_v38 = vadd.f32 0.5, %v4259_v6  ;;  %v7306_v6 = vor.u32 %v8018_v14, %v7305_v42  ;;  %v7234_v57 = vor.u32 %v8001_v10, %v7233_v0  ;;  %v7235_v42 = vld [vmem:[#allocation9 + $0x30] sm:$0xf0]  ;;  %v7241_v14 = vld [vmem:[#allocation9 + $0x28] sm:$0xf] }
 0x865   :  { %v4263_v52 = vadd.f32 0.5, %v4260_v36  ;;  %v4234_v4 = vpop.f32.mrf.mxu2  ;;  %v4247_v58 = vpop.f32.mrf.mxu3  ;;  %v8016_v36 = vld [vmem:[#allocation9 + $0xac] sm:$0xf]  ;;  %4756 = vmatpush.bf16.msrb.mxu1 %v7302_v27  ;;  %v8002_v27 = vld [vmem:[#allocation9 + $0x34] sm:$0xf0] }
 0x866   :  { %v8203_v29 = vpop.eup %8202  ;;  %4769 = vmatpush.bf16.msra.mxu2 %v7306_v6  ;;  %v7281_v4 = vld [vmem:[#allocation9 + $0x80] sm:$0xf]  ;;  %v8013_v58 = vld [vmem:[#allocation9 + $0x8c] sm:$0xf0] }
 0x867   :  { %v4266_v15 = vmul.f32 %v4263_v52, %v8824_v2  ;;  %v4267_v11 = vmul.f32 %v8203_v29, %v4262_v38  ;;  %v7330_v2 = vor.u32 %v8025_v63, %v7329_v12  ;;  %v7307_v38 = vld [vmem:[#allocation9 + $0xb8] sm:$0xf0]  ;;  %v8011_v29 = vld [vmem:[#allocation9 + $0x84] sm:$0xf]  ;;  %v7265_v63 = vld [vmem:[#allocation9 + $0x60] sm:$0xf] }
 0x868   :  { %v8205_v32 = vpop.eup %8204  ;;  %v7310_v52 = vor.u32 %v8016_v36, %v7307_v38  ;;  %v7266_v20 = vor.u32 %v8009_v25, %v7265_v63  ;;  %v7242_v36 = vor.u32 %v8002_v27, %v7241_v14  ;;  %v8000_v38 = vld [vmem:[#allocation9 + $0x2c] sm:$0xf]  ;;  %v2782_v25 = vadd.f32 %v8742_v55, %v8765_v17 }
 0x869   :  { %v8836_v43 = vadd.f32 %v4267_v11, %v4266_v15  ;;  %v4261_v39 = vmul.f32 0.5, %v8205_v32  ;;  %4741 = vmatpush.bf16.msra.mxu0 %v7330_v2  ;;  %v7282_v15 = vor.u32 %v8013_v58, %v7281_v4  ;;  %v7283_v11 = vld [vmem:[#allocation9 + $0x90] sm:$0xf0]  ;;  %v7289_v32 = vld [vmem:[#allocation9 + $0x88] sm:$0xf] }
 0x86a   :  { %4782 = vmatpush.bf16.msra.mxu3 %v7310_v52  ;;  %v8007_v2 = vld [vmem:[#allocation9 + $0x64] sm:$0xf]  ;;  %v7243_v52 = vld [vmem:[#allocation9 + $0x38] sm:$0xf0]  ;;  %v7217_v4 = vld [vmem:[#allocation9] sm:$0xf] }
 0x86b   :  { %8206 = vtanh.f32 %v8836_v43  ;;  %v4264_v23 = vadd.f32 0.5, %v4261_v39  ;;  %v8014_v39 = vld [vmem:[#allocation9 + $0x94] sm:$0xf0]  ;;  %v7270_v56 = vor.u32 %v8007_v2, %v7267_v24  ;;  %v7246_v58 = vor.u32 %v8000_v38, %v7243_v52  ;;  %v8057_v38 = vld [vmem:[#allocation9 + $0xec] sm:$0xf0] }
 0x86c   :  { %v2811_v2 = vadd.f32 %v8744_v30, %v8767_v9  ;;  %v8055_v52 = vld [vmem:[#allocation9 + $0xe4] sm:$0xf] }
 0x86d   :  { %4742 = vmatpush.bf16.msra.mxu0 %v7314_v61  ;;  %v8003_v61 = vld [vmem:[#allocation9 + $0x44] sm:$0xf] }
 0x86e   :  { %v7254_v21 = vor.u32 %v8003_v61, %v7251_v5 }
 0x871   :  { %v8207_v7 = vpop.eup %8206  ;;  %4743 = vmatpush.bf16.msra.mxu0 %v7298_v44  ;;  %v7999_v44 = vld [vmem:[#allocation9 + $0x24] sm:$0xf] }
 0x872   :  { %v4270_v1 = vmul.f32 %v8207_v7, %v4264_v23  ;;  %v7286_v23 = vor.u32 %v8011_v29, %v7283_v11  ;;  %v7290_v7 = vor.u32 %v8014_v39, %v7289_v32  ;;  %v7238_v6 = vor.u32 %v7999_v44, %v7235_v42  ;;  %v7997_v29 = vld [vmem:[#allocation9 + $0xc] sm:$0xf0]  ;;  %v7219_v11 = vld [vmem:[#allocation9 + $0x10] sm:$0xf0]  ;;  %v7225_v39 = vld [vmem:[#allocation9 + $0x8] sm:$0xf] }
 0x873   :  { %v7218_v32 = vor.u32 %v7997_v29, %v7217_v4  ;;  %v7459_v4 = vld [vmem:[#allocation9 + $0xf0] sm:$0xf0]  ;;  %v8058_v29 = vld [vmem:[#allocation9 + $0xf4] sm:$0xf0] }
 0x874   :  { %v4271_v18 = vpack.c.bf16 %v4270_v1, %v4270_v1  ;;  %v8012_v1 = vld [vmem:[#allocation9 + $0x8c] sm:$0xf]  ;;  %4757 = vmatpush.bf16.msrb.mxu1 %v7286_v23  ;;  %4770 = vmatpush.bf16.msra.mxu2 %v7290_v7  ;;  %v7998_v23 = vld [vmem:[#allocation9 + $0x14] sm:$0xf0] }
 0x875   :  { %4744 = vmatpush.bf16.msra.mxu0 %v7282_v15  ;;  %v7995_v15 = vld [vmem:[#allocation9 + $0x4] sm:$0xf]  ;;  %v7996_v7 = vld [vmem:[#allocation9 + $0xc] sm:$0xf] }
 0x876   :  { %4272 = vst [vmem:[#allocation2 + $0x10] sm:$0xf] %v4271_v18  ;;  %4477 = vmatmul.bf16.vlgmr.msrb.gmra.mxu0 %v4271_v18  ;;  %4490 = vmatmul.bf16.vlgmr.msra.gmra.mxu1 %v4271_v18 }
 0x877   :  { %4503 = vmatmul.bf16.vlgmr.msrb.gmra.mxu2 %v4271_v18  ;;  %4516 = vmatmul.bf16.vlgmr.msrb.gmra.mxu3 %v4271_v18  ;;  %v7291_v18 = vld [vmem:[#allocation9 + $0x98] sm:$0xf0] }
 0x878   :  { %v7294_v12 = vor.u32 %v8012_v1, %v7291_v18  ;;  %4758 = vmatpush.bf16.msrb.mxu1 %v7270_v56  ;;  %4771 = vmatpush.bf16.msra.mxu2 %v7274_v34  ;;  %v7222_v1 = vor.u32 %v7995_v15, %v7219_v11  ;;  %v7226_v18 = vor.u32 %v7998_v23, %v7225_v39  ;;  %v7467_v39 = vld [vmem:[#allocation9 + $0xf8] sm:$0xf0] }
 0x879   :  { %4745 = vmatpush.bf16.msra.mxu0 %v7266_v20  ;;  %v7462_v15 = vor.u32 %v8055_v52, %v7459_v4  ;;  %v7401_v52 = vld [vmem:[#allocation9 + $0x68] sm:$0xf] }
 0x87a   :  { %4783 = vmatpush.bf16.msra.mxu3 %v7294_v12  ;;  %v7227_v12 = vld [vmem:[#allocation9 + $0x18] sm:$0xf0] }
 0x87b   :  { %v7230_v63 = vor.u32 %v7996_v7, %v7227_v12  ;;  %v7441_v7 = vld [vmem:[#allocation9 + $0xc0] sm:$0xf] }
 0x87c   :  { %4759 = vmatpush.bf16.msrb.mxu1 %v7254_v21  ;;  %4772 = vmatpush.bf16.msra.mxu2 %v7258_v53 }
 0x87d   :  { %4746 = vmatpush.bf16.msra.mxu0 %v7250_v47 }
 0x87e   :  { %4784 = vmatpush.bf16.msra.mxu3 %v7278_v26 }
 0x880   :  { %4760 = vmatpush.bf16.msrb.mxu1 %v7238_v6  ;;  %4773 = vmatpush.bf16.msra.mxu2 %v7242_v36  ;;  %v7457_v36 = vld [vmem:[#allocation9 + $0xe0] sm:$0xf] }
 0x881   :  { %4747 = vmatpush.bf16.msra.mxu0 %v7234_v57 }
 0x882   :  { %4785 = vmatpush.bf16.msra.mxu3 %v7262_v45 }
 0x884   :  { %4761 = vmatpush.bf16.msrb.mxu1 %v7222_v1  ;;  %4774 = vmatpush.bf16.msra.mxu2 %v7226_v18  ;;  %v8053_v1 = vld [vmem:[#allocation9 + $0xcc] sm:$0xf0]  ;;  %v8051_v18 = vld [vmem:[#allocation9 + $0xc4] sm:$0xf] }
 0x885   :  { %4748 = vmatpush.bf16.msra.mxu0 %v7218_v32  ;;  %v8056_v32 = vld [vmem:[#allocation9 + $0xec] sm:$0xf]  ;;  %v7442_v12 = vor.u32 %v8053_v1, %v7441_v7  ;;  %v7379_v1 = vld [vmem:[#allocation9 + $0x50] sm:$0xf0] }
 0x886   :  { %4786 = vmatpush.bf16.msra.mxu3 %v7246_v58  ;;  %v7465_v58 = vld [vmem:[#allocation9 + $0xe8] sm:$0xf]  ;;  %v7470_v23 = vor.u32 %v8056_v32, %v7467_v39  ;;  %v7377_v32 = vld [vmem:[#allocation9 + $0x40] sm:$0xf]  ;;  %v8037_v39 = vld [vmem:[#allocation9 + $0x4c] sm:$0xf0] }
 0x887   :  { %v7466_v11 = vor.u32 %v8058_v29, %v7465_v58  ;;  %v8040_v29 = vld [vmem:[#allocation9 + $0x6c] sm:$0xf]  ;;  %v7378_v7 = vor.u32 %v8037_v39, %v7377_v32 }
 0x888   :  { %5026 = vmatpush.bf16.msra.mxu1 %v7462_v15  ;;  %v7403_v15 = vld [vmem:[#allocation9 + $0x78] sm:$0xf0] }
 0x889   :  { %5039 = vmatpush.bf16.msrb.mxu2 %v7466_v11  ;;  %v7406_v11 = vor.u32 %v8040_v29, %v7403_v15 }
 0x88a   :  { %4787 = vmatpush.bf16.msra.mxu3 %v7230_v63  ;;  %v7443_v63 = vld [vmem:[#allocation9 + $0xd0] sm:$0xf0] }
 0x88e   :  { %5052 = vmatpush.bf16.msrb.mxu3 %v7470_v23  ;;  %v8035_v23 = vld [vmem:[#allocation9 + $0x44] sm:$0xf] }
 0x8f3   :  { %v4478_v20 = vpop.f32.mrf.mxu0  ;;  %v4491_v24 = vpop.f32.mrf.mxu1 }
 0x8f4   :  { %v4521_v37 = vadd.f32 %v4478_v20, %v2782_v25  ;;  %v4522_v60 = vadd.f32 %v4491_v24, %v2811_v2  ;;  %v7449_v25 = vld [vmem:[#allocation9 + $0xc8] sm:$0xf]  ;;  %v8054_v2 = vld [vmem:[#allocation9 + $0xd4] sm:$0xf0]  ;;  %v7446_v20 = vor.u32 %v8051_v18, %v7443_v63  ;;  %v7382_v63 = vor.u32 %v8035_v23, %v7379_v1 }
 0x8f5   :  { %v7450_v24 = vor.u32 %v8054_v2, %v7449_v25  ;;  %v7385_v18 = vld [vmem:[#allocation9 + $0x48] sm:$0xf]  ;;  %v8036_v2 = vld [vmem:[#allocation9 + $0x4c] sm:$0xf] }
 0x8f6   :  { %v4525_v56 = vmul.f32 0.5, %v4521_v37  ;;  %v4526_v34 = vmul.f32 0.5, %v4522_v60  ;;  %v8052_v37 = vld [vmem:[#allocation9 + $0xcc] sm:$0xf]  ;;  %v7451_v60 = vld [vmem:[#allocation9 + $0xd8] sm:$0xf0]  ;;  %5027 = vmatpush.bf16.msra.mxu1 %v7446_v20 }
 0x8f7   :  { %5040 = vmatpush.bf16.msrb.mxu2 %v7450_v24  ;;  %v7387_v20 = vld [vmem:[#allocation9 + $0x58] sm:$0xf0] }
 0x8f8   :  { %8208 = vtanh.f32 %v4525_v56  ;;  %v7454_v56 = vor.u32 %v8052_v37, %v7451_v60  ;;  %v7390_v24 = vor.u32 %v8036_v2, %v7387_v20  ;;  %v7361_v37 = vld [vmem:[#allocation9 + $0x20] sm:$0xf]  ;;  %v8033_v60 = vld [vmem:[#allocation9 + $0x2c] sm:$0xf0] }
 0x8f9   :  { %8210 = vtanh.f32 %v4526_v34  ;;  %v7425_v34 = vld [vmem:[#allocation9 + $0xa0] sm:$0xf] }
 0x8fa   :  { %v4504_v26 = vpop.f32.mrf.mxu2  ;;  %v4517_v55 = vpop.f32.mrf.mxu3  ;;  %5053 = vmatpush.bf16.msrb.mxu3 %v7454_v56  ;;  %v8031_v56 = vld [vmem:[#allocation9 + $0x24] sm:$0xf] }
 0x8fb   :  { %v4523_v40 = vadd.f32 %v4504_v26, %v2840_v54  ;;  %v4524_v33 = vadd.f32 %v4517_v55, %v2869_v35  ;;  %v4480_v30 = vpop.f32.mrf.mxu0  ;;  %v4493_v61 = vpop.f32.mrf.mxu1  ;;  %v8049_v54 = vld [vmem:[#allocation9 + $0xac] sm:$0xf0]  ;;  %v8047_v35 = vld [vmem:[#allocation9 + $0xa4] sm:$0xf]  ;;  %v7427_v55 = vld [vmem:[#allocation9 + $0xb0] sm:$0xf0] }
 0x8fc   :  { %v7426_v26 = vor.u32 %v8049_v54, %v7425_v34  ;;  %v7430_v30 = vor.u32 %v8047_v35, %v7427_v55  ;;  %v7362_v34 = vor.u32 %v8033_v60, %v7361_v37  ;;  %v7363_v54 = vld [vmem:[#allocation9 + $0x30] sm:$0xf0]  ;;  %v7369_v35 = vld [vmem:[#allocation9 + $0x28] sm:$0xf] }
 0x8fd   :  { %v4527_v47 = vmul.f32 0.5, %v4523_v40  ;;  %8212 = vtanh.f32 %v4524_v33  ;;  %v7433_v40 = vld [vmem:[#allocation9 + $0xa8] sm:$0xf]  ;;  %v8050_v33 = vld [vmem:[#allocation9 + $0xb4] sm:$0xf0]  ;;  %v7366_v55 = vor.u32 %v8031_v56, %v7363_v54 }
 0x8fe   :  { %v8209_v5 = vpop.eup %8208  ;;  %v7434_v61 = vor.u32 %v8050_v33, %v7433_v40  ;;  %5028 = vmatpush.bf16.msra.mxu1 %v7430_v30  ;;  %v8032_v33 = vld [vmem:[#allocation9 + $0x2c] sm:$0xf]  ;;  %v7371_v30 = vld [vmem:[#allocation9 + $0x38] sm:$0xf0] }
 0x8ff   :  { %v8211_v48 = vpop.eup %8210  ;;  %v4531_v50 = vmul.f32 0.5, %v8209_v5  ;;  %8214 = vtanh.f32 %v4527_v47  ;;  %v8048_v47 = vld [vmem:[#allocation9 + $0xac] sm:$0xf]  ;;  %v7435_v5 = vld [vmem:[#allocation9 + $0xb8] sm:$0xf0] }
 0x900   :  { %v4532_v21 = vmul.f32 0.5, %v8211_v48  ;;  %v7438_v48 = vor.u32 %v8048_v47, %v7435_v5  ;;  %5041 = vmatpush.bf16.msrb.mxu2 %v7434_v61  ;;  %v7345_v61 = vld [vmem:[#allocation9] sm:$0xf]  ;;  %v7374_v47 = vor.u32 %v8032_v33, %v7371_v30  ;;  %v8029_v5 = vld [vmem:[#allocation9 + $0xc] sm:$0xf0]  ;;  %v8066_v54 = vld [vmem:[%s8913_s9 + $0x38] sm:$0xff] }
 0x901   :  { %v4534_v53 = vadd.f32 0.5, %v4531_v50  ;;  %v7409_v50 = vld [vmem:[#allocation9 + $0x80] sm:$0xf]  ;;  %v8060_v33 = vld [vmem:[%s8913_s9 + $0x8] sm:$0xff] }
 0x902   :  { %v4535_v41 = vadd.f32 0.5, %v4532_v21  ;;  %v4506_v28 = vpop.f32.mrf.mxu2  ;;  %v4519_v19 = vpop.f32.mrf.mxu3  ;;  %v8045_v21 = vld [vmem:[#allocation9 + $0x8c] sm:$0xf0]  ;;  %5054 = vmatpush.bf16.msrb.mxu3 %v7438_v48  ;;  %v8027_v48 = vld [vmem:[#allocation9 + $0x4] sm:$0xf] }
 0x903   :  { %v8213_v45 = vpop.eup %8212  ;;  %v7411_v28 = vld [vmem:[#allocation9 + $0x90] sm:$0xf0]  ;;  %v7417_v19 = vld [vmem:[#allocation9 + $0x88] sm:$0xf]  ;;  %v8059_v30 = vld [vmem:[%s8913_s9] sm:$0xff] }
 0x904   :  { %v4538_v51 = vmul.f32 %v4535_v41, %v8836_v43  ;;  %v4539_v0 = vmul.f32 %v8213_v45, %v4534_v53  ;;  %v7458_v43 = vor.u32 %v8057_v38, %v7457_v36  ;;  %v8043_v53 = vld [vmem:[#allocation9 + $0x84] sm:$0xf]  ;;  %v7410_v41 = vor.u32 %v8045_v21, %v7409_v50  ;;  %v8046_v45 = vld [vmem:[#allocation9 + $0x94] sm:$0xf0]  ;;  %v7395_v38 = vld [vmem:[#allocation9 + $0x70] sm:$0xf0] }
 0x905   :  { %v8215_v10 = vpop.eup %8214  ;;  %v7347_v50 = vld [vmem:[#allocation9 + $0x10] sm:$0xf0]  ;;  %v7346_v21 = vor.u32 %v8029_v5, %v7345_v61  ;;  %v2787_v61 = vadd.f32 %v8761_v13, %v8765_v17 }
 0x906   :  { %v8848_v44 = vadd.f32 %v4539_v0, %v4538_v51  ;;  %v4533_v57 = vmul.f32 0.5, %v8215_v10  ;;  %5013 = vmatpush.bf16.msrb.mxu0 %v7458_v43  ;;  %v7414_v51 = vor.u32 %v8043_v53, %v7411_v28  ;;  %v7418_v0 = vor.u32 %v8046_v45, %v7417_v19  ;;  %v8044_v10 = vld [vmem:[#allocation9 + $0x8c] sm:$0xf]  ;;  %v8042_v43 = vld [vmem:[#allocation9 + $0x74] sm:$0xf0] }
 0x907   :  { %v7402_v58 = vor.u32 %v8042_v43, %v7401_v52  ;;  %v7353_v53 = vld [vmem:[#allocation9 + $0x8] sm:$0xf]  ;;  %v8028_v28 = vld [vmem:[#allocation9 + $0xc] sm:$0xf]  ;;  %v7350_v19 = vor.u32 %v8027_v48, %v7347_v50  ;;  %v2843_v52 = vadd.f32 %v8757_v62, %v8777_v59  ;;  %v2872_v43 = vadd.f32 %v8759_v16, %v8779_v31 }
 0x908   :  { %8216 = vtanh.f32 %v8848_v44  ;;  %v4536_v42 = vadd.f32 0.5, %v4533_v57  ;;  %v7419_v57 = vld [vmem:[#allocation9 + $0x98] sm:$0xf0]  ;;  %5029 = vmatpush.bf16.msra.mxu1 %v7414_v51  ;;  %5042 = vmatpush.bf16.msrb.mxu2 %v7418_v0 }
 0x909   :  { %v7355_v51 = vld [vmem:[#allocation9 + $0x18] sm:$0xf0] }
 0x90a   :  { %5014 = vmatpush.bf16.msrb.mxu0 %v7442_v12  ;;  %v8038_v12 = vld [vmem:[#allocation9 + $0x54] sm:$0xf0]  ;;  %v7358_v0 = vor.u32 %v8028_v28, %v7355_v51  ;;  %v2845_v28 = vadd.f32 %v8773_v49, %v8777_v59 }
 0x90b   :  { %v7386_v25 = vor.u32 %v8038_v12, %v7385_v18 }
 0x90c   :  { %5043 = vmatpush.bf16.msrb.mxu2 %v7402_v58 }
 0x90e   :  { %v8217_v14 = vpop.eup %8216  ;;  %5015 = vmatpush.bf16.msrb.mxu0 %v7426_v26  ;;  %v8034_v26 = vld [vmem:[#allocation9 + $0x34] sm:$0xf0] }
 0x90f   :  { %v4542_v27 = vmul.f32 %v8217_v14, %v4536_v42  ;;  %v7422_v42 = vor.u32 %v8044_v10, %v7419_v57  ;;  %v7393_v14 = vld [vmem:[#allocation9 + $0x60] sm:$0xf]  ;;  %v7370_v40 = vor.u32 %v8034_v26, %v7369_v35  ;;  %v2785_v10 = vadd.f32 %v8750_v3, %v8765_v17  ;;  %v8064_v35 = vld [vmem:[%s8913_s9 + $0x28] sm:$0xff] }
 0x910   :  { %5044 = vmatpush.bf16.msrb.mxu2 %v7386_v25  ;;  %v2814_v57 = vadd.f32 %v8752_v22, %v8767_v9  ;;  %v8063_v26 = vld [vmem:[%s8913_s9 + $0x20] sm:$0xff] }
 0x911   :  { %v4543_v6 = vpack.c.bf16 %v4542_v27, %v4542_v27  ;;  %v8041_v27 = vld [vmem:[#allocation9 + $0x6c] sm:$0xf0]  ;;  %5055 = vmatpush.bf16.msrb.mxu3 %v7422_v42 }
 0x912   :  { %5016 = vmatpush.bf16.msrb.mxu0 %v7410_v41  ;;  %v7394_v36 = vor.u32 %v8041_v27, %v7393_v14  ;;  %v8030_v41 = vld [vmem:[#allocation9 + $0x14] sm:$0xf0] }
 0x913   :  { %4544 = vst [vmem:[#allocation2 + $0x14] sm:$0xf] %v4543_v6  ;;  %4749 = vmatmul.bf16.vlgmr.msra.gmra.mxu0 %v4543_v6  ;;  %4762 = vmatmul.bf16.vlgmr.msrb.gmra.mxu1 %v4543_v6  ;;  %v7354_v45 = vor.u32 %v8030_v41, %v7353_v53 }
 0x914   :  { %4775 = vmatmul.bf16.vlgmr.msra.gmra.mxu2 %v4543_v6  ;;  %4788 = vmatmul.bf16.vlgmr.msra.gmra.mxu3 %v4543_v6  ;;  %v8039_v6 = vld [vmem:[#allocation9 + $0x64] sm:$0xf] }
 0x915   :  { %v7398_v4 = vor.u32 %v8039_v6, %v7395_v38  ;;  %5056 = vmatpush.bf16.msrb.mxu3 %v7406_v11  ;;  %5045 = vmatpush.bf16.msrb.mxu2 %v7370_v40  ;;  %v8061_v40 = vld [vmem:[%s8913_s9 + $0x10] sm:$0xff] }
 0x916   :  { %5017 = vmatpush.bf16.msrb.mxu0 %v7394_v36 }
 0x917   :  { %5030 = vmatpush.bf16.msra.mxu1 %v7398_v4 }
 0x919   :  { %5057 = vmatpush.bf16.msrb.mxu3 %v7390_v24  ;;  %5046 = vmatpush.bf16.msrb.mxu2 %v7354_v45 }
 0x91a   :  { %5018 = vmatpush.bf16.msrb.mxu0 %v7378_v7 }
 0x91b   :  { %5031 = vmatpush.bf16.msra.mxu1 %v7382_v63 }
 0x91d   :  { %5058 = vmatpush.bf16.msrb.mxu3 %v7374_v47  ;;  %v2816_v47 = vadd.f32 %v8763_v8, %v8767_v9 }
 0x91e   :  { %5019 = vmatpush.bf16.msrb.mxu0 %v7362_v34 }
 0x91f   :  { %5032 = vmatpush.bf16.msra.mxu1 %v7366_v55  ;;  %v8062_v55 = vld [vmem:[%s8913_s9 + $0x18] sm:$0xff] }
 0x921   :  { %5059 = vmatpush.bf16.msrb.mxu3 %v7358_v0 }
 0x922   :  { %5020 = vmatpush.bf16.msrb.mxu0 %v7346_v21 }
 0x923   :  { %5033 = vmatpush.bf16.msra.mxu1 %v7350_v19  ;;  %v2874_v19 = vadd.f32 %v8775_v46, %v8779_v31 }
 0x926   :  { %5161 = vmatpush.bf16.msra.mxu0 %v8066_v54 }
 0x990   :  { %v4750_v42 = vpop.f32.mrf.mxu0  ;;  %v4763_v14 = vpop.f32.mrf.mxu1 }
 0x991   :  { %v4793_v27 = vadd.f32 %v4750_v42, %v2785_v10  ;;  %v4794_v6 = vadd.f32 %v4763_v14, %v2814_v57 }
 0x993   :  { %v4797_v36 = vmul.f32 0.5, %v4793_v27  ;;  %v4798_v38 = vmul.f32 0.5, %v4794_v6 }
 0x995   :  { %8218 = vtanh.f32 %v4797_v36 }
 0x996   :  { %8220 = vtanh.f32 %v4798_v38 }
 0x997   :  { %v4776_v4 = vpop.f32.mrf.mxu2  ;;  %v4789_v3 = vpop.f32.mrf.mxu3 }
 0x998   :  { %v4795_v58 = vadd.f32 %v4776_v4, %v2843_v52  ;;  %v4796_v29 = vadd.f32 %v4789_v3, %v2872_v43  ;;  %v4752_v22 = vpop.f32.mrf.mxu0  ;;  %v4765_v15 = vpop.f32.mrf.mxu1 }
 0x999   :  { %v8077_v22 = vld [vmem:[%s8914_s10] ss:$0 sm:$0xff] }
 0x99a   :  { %v4799_v11 = vmul.f32 0.5, %v4795_v58  ;;  %8222 = vtanh.f32 %v4796_v29 }
 0x99b   :  { %v8219_v32 = vpop.eup %8218 }
 0x99c   :  { %v8221_v39 = vpop.eup %8220  ;;  %v4803_v23 = vmul.f32 0.5, %v8219_v32  ;;  %8224 = vtanh.f32 %v4799_v11 }
 0x99d   :  { %v4804_v7 = vmul.f32 0.5, %v8221_v39 }
 0x99e   :  { %v4806_v1 = vadd.f32 0.5, %v4803_v23 }
 0x99f   :  { %v4807_v18 = vadd.f32 0.5, %v4804_v7  ;;  %v4778_v62 = vpop.f32.mrf.mxu2  ;;  %v4791_v12 = vpop.f32.mrf.mxu3 }
 0x9a0   :  { %v8223_v63 = vpop.eup %8222 }
 0x9a1   :  { %v4810_v16 = vmul.f32 %v4807_v18, %v8848_v44  ;;  %v4811_v25 = vmul.f32 %v8223_v63, %v4806_v1  ;;  %v8065_v44 = vld [vmem:[%s8913_s9 + $0x30] sm:$0xff]  ;;  %s8373_s9 = smov [#allocation10]  }
 0x9a2   :  { %v8225_v2 = vpop.eup %8224  ;;  %5162 = vmatpush.bf16.msra.mxu0 %v8065_v44  ;;  %s5186_s7 = sshll.u32 %s8373_s9, 4  ;;  %s5187_s7 = int_to_ptr.vmem [resolvable:$true] %s5186_s7 }
 0x9a3   :  { %v4812_v20 = vadd.f32 %v4811_v25, %v4810_v16  ;;  %v4805_v24 = vmul.f32 0.5, %v8225_v2 }
 0x9a5   :  { %8226 = vtanh.f32 %v4812_v20  ;;  %v4808_v37 = vadd.f32 0.5, %v4805_v24 }
 0x9a6   :  { %5163 = vmatpush.bf16.msra.mxu0 %v8064_v35 }
 0x9aa   :  { %5164 = vmatpush.bf16.msra.mxu0 %v8063_v26 }
 0x9ab   :  { %v8227_v60 = vpop.eup %8226 }
 0x9ac   :  { %v4814_v56 = vmul.f32 %v8227_v60, %v4808_v37 }
 0x9ae   :  { %v4815_v34 = vpack.c.bf16 %v4814_v56, %v4814_v56  ;;  %5165 = vmatpush.bf16.msra.mxu0 %v8062_v55 }
 0x9b0   :  { %4816 = vst [vmem:[#allocation2 + $0x18] sm:$0xf] %v4815_v34  ;;  %5021 = vmatmul.bf16.vlgmr.msrb.gmra.mxu0 %v4815_v34  ;;  %5034 = vmatmul.bf16.vlgmr.msra.gmra.mxu1 %v4815_v34 }
 0x9b1   :  { %5047 = vmatmul.bf16.vlgmr.msrb.gmra.mxu2 %v4815_v34  ;;  %5060 = vmatmul.bf16.vlgmr.msrb.gmra.mxu3 %v4815_v34 }
 0x9b2   :  { %5166 = vmatpush.bf16.msra.mxu0 %v8061_v40 }
 0x9b6   :  { %5167 = vmatpush.bf16.msra.mxu0 %v8060_v33 }
 0x9ba   :  { %5168 = vmatpush.bf16.msra.mxu0 %v8059_v30 }
 0xa2d   :  { %v5022_v5 = vpop.f32.mrf.mxu0  ;;  %v5035_v48 = vpop.f32.mrf.mxu1 }
 0xa2e   :  { %v5065_v50 = vadd.f32 %v5022_v5, %v2787_v61  ;;  %v5066_v21 = vadd.f32 %v5035_v48, %v2816_v47 }
 0xa30   :  { %v5069_v53 = vmul.f32 0.5, %v5065_v50  ;;  %v5070_v41 = vmul.f32 0.5, %v5066_v21 }
 0xa32   :  { %8228 = vtanh.f32 %v5069_v53 }
 0xa33   :  { %8230 = vtanh.f32 %v5070_v41 }
 0xa34   :  { %v5048_v45 = vpop.f32.mrf.mxu2  ;;  %v5061_v51 = vpop.f32.mrf.mxu3 }
 0xa35   :  { %v5067_v13 = vadd.f32 %v5048_v45, %v2845_v28  ;;  %v5068_v17 = vadd.f32 %v5061_v51, %v2874_v19  ;;  %v5024_v0 = vpop.f32.mrf.mxu0  ;;  %v5037_v8 = vpop.f32.mrf.mxu1 }
 0xa37   :  { %v5071_v9 = vmul.f32 0.5, %v5067_v13  ;;  %8232 = vtanh.f32 %v5068_v17 }
 0xa38   :  { %v8229_v10 = vpop.eup %8228 }
 0xa39   :  { %v8231_v57 = vpop.eup %8230  ;;  %v5075_v42 = vmul.f32 0.5, %v8229_v10  ;;  %8234 = vtanh.f32 %v5071_v9 }
 0xa3a   :  { %v5076_v14 = vmul.f32 0.5, %v8231_v57 }
 0xa3b   :  { %v5078_v27 = vadd.f32 0.5, %v5075_v42 }
 0xa3c   :  { %v5079_v6 = vadd.f32 0.5, %v5076_v14  ;;  %v5050_v49 = vpop.f32.mrf.mxu2  ;;  %v5063_v59 = vpop.f32.mrf.mxu3 }
 0xa3d   :  { %v8233_v36 = vpop.eup %8232 }
 0xa3e   :  { %v5082_v46 = vmul.f32 %v5079_v6, %v4812_v20  ;;  %v5083_v31 = vmul.f32 %v8233_v36, %v5078_v27 }
 0xa3f   :  { %v8235_v38 = vpop.eup %8234 }
 0xa40   :  { %v5084_v52 = vadd.f32 %v5083_v31, %v5082_v46  ;;  %v5077_v43 = vmul.f32 0.5, %v8235_v38 }
 0xa42   :  { %8236 = vtanh.f32 %v5084_v52  ;;  %5092 = vst [vmem:[#allocation11 + $0x8] sm:$0xff] %v5084_v52  ;;  %v5080_v4 = vadd.f32 0.5, %v5077_v43 }
 0xa43   :  { %5207 = dma.vmem_to_hbm [thread:$0]  %s5200_s14, 256, %s5202_s2, [#allocation12], %s8374_s29, %s8374_s29, %s8375_s30  }
 0xa48   :  { %v8237_v3 = vpop.eup %8236 }
 0xa49   :  { %v5086_v58 = vmul.f32 %v8237_v3, %v5080_v4 }
 0xa4b   :  { %v5087_v29 = vpack.c.bf16 %v5086_v58, %v5086_v58  ;;  %5090 = vst [vmem:[#allocation10 + $0x8] sm:$0xff] %v5086_v58 }
 0xa4c   :  { %5194 = dma.vmem_to_hbm [thread:$0]  %s5187_s7, 256, %s5189_s28, [#allocation6], %s8374_s29, %s8374_s29, %s8375_s30  }
 0xa4d   :  { %5088 = vst [vmem:[#allocation2 + $0x1c] sm:$0xf] %v5087_v29  ;;  %5169 = vmatmul.bf16.vlgmr.msra.gmra.mxu0 %v5087_v29 }
 0xaca   :  { %v5170_v15 = vpop.f32.mrf.mxu0 }
 0xacb   :  { %v5171_v11 = vadd.f32 %v8077_v22, %v5170_v15 }
 0xacd   :  { %v5174_v32 = vmul.f32 0.5, %v5171_v11 }
 0xacf   :  { %8238 = vtanh.f32 %v5174_v32 }
 0xad2   :  { %v5172_v39 = vpop.f32.mrf.mxu0 }
 0xad5   :  { %v8239_v23 = vpop.eup %8238 }
 0xad6   :  { %v5176_v7 = vmul.f32 0.5, %v8239_v23 }
 0xad8   :  { %v5177_v1 = vadd.f32 0.5, %v5176_v7 }
 0xada   :  { %5179 = vst.msk [vmem:[%s8915_s11] sm:$0xff] %vm5178_vm1, %v5177_v1 }
 0xadb   :  { %8364 = dma.done.wait [#allocation6], 256  }
 0xadc   :  { %8365 = vsyncadd [#allocation6], 4294967040 }
 0xadd   :  { %8366 = dma.done.wait [#allocation12], 256  }
 0xade   :  { %8367 = vsyncadd [#allocation12], 4294967040 }
 0xadf   :  { %5218 = vsyncpa [#allocation5], 1 }
 0xae0   :  { %5219 = vsyncpa [#allocation8], 1 }
 0xae1   :  { %5220 = vsyncpa [#allocation6], 1 }
 0xae2   :  { %5221 = vsyncpa [#allocation12], 1 }

</bundles_post_ra>
